<compile_context>
chip_gen: v6e
topology: v6e:2x2x1
jax: 0.10.0
libtpu: 0.0.40
codegen_flags: <defaults>
</compile_context>

<pallas_src>
import jax
import jax.numpy as jnp
from jax import lax
from jax.experimental import pallas as pl
from jax.experimental.pallas import tpu as pltpu

_LANE = 128
_TILE_ALIGN = 16          # keeps in-kernel leading-dim merges tile-aligned (f32 & bf16)
_TM_TARGET = 2048         # conv1 kernel: patch rows per grid step
_TS_TARGET = 64           # conv2+fc kernel: samples per grid step
_VMEM_LIMIT = 40 * 1024 * 1024


def _round_up(x, m):
    return (x + m - 1) // m * m


def _pick_tile(m, target):
    """Largest tile <= target that still yields >=2 grid steps when m allows it
    (v7x shards the 'parallel' grid axis over its two TensorCores)."""
    half = _round_up(max(1, -(-m // 2)), _TILE_ALIGN)
    return max(_TILE_ALIGN, min(target, half))


def _pad_to(a, shape):
    return jnp.pad(a, [(0, t - s) for s, t in zip(a.shape, shape)])


# ---------------------------------------------------------------------------
# Pallas kernels
# ---------------------------------------------------------------------------
def _conv_pool_relu_kernel(p_ref, w_ref, b_ref, o_ref):
    """p: (4, TM, K) pool-offset patch slabs; w: (K, C); b: (1, C).
    o = relu(max_over_offsets(p @ w) + b) == maxpool2x2(relu(conv + b))."""
    n_off, tm, k = p_ref.shape
    x = p_ref[...].reshape(n_off * tm, k)                      # one long MXU push
    y = jnp.dot(x, w_ref[...], preferred_element_type=jnp.float32)
    y = jnp.max(y.reshape(n_off, tm, -1), axis=0)              # 2x2 max pool (VPU)
    o_ref[...] = jnp.maximum(y + b_ref[...], 0.0).astype(o_ref.dtype)


def _conv2_fc_kernel(p_ref, w2_ref, b2_ref, w1_ref, b1_ref,
                     wf2_ref, bf2_ref, wf3_ref, bf3_ref, o_ref):
    """Fused conv2(+bias+pool+relu) -> flatten(C,H,W) -> fc1 -> fc2 -> fc3.

    p:   (4*25, TS, 150)  pool-offset x output-position conv2 patch rows
    w2:  (150, 16), b2: (1, 16)        conv2 weight / bias
    w1:  (25, 16, 128), b1: (1, 128)   fc1 split into 25 per-position blocks
                                       (absorbs the PyTorch (C,H,W) flatten)
    wf2/wf3: (128, 128), bf2/bf3: (1, 128)  zero-padded fc2 / fc3
    o:   (TS, 128) logits in the first 10 lanes
    """
    g, ts, k = p_ref.shape
    npos = g // 4
    x = p_ref[...].reshape(g * ts, k)
    y = jnp.dot(x, w2_ref[...], preferred_element_type=jnp.float32)   # (g*ts, 16)
    y = jnp.max(y.reshape(4, npos, ts, -1), axis=0)                   # 2x2 max pool
    y = jnp.maximum(y + b2_ref[...], 0.0).astype(w1_ref.dtype)        # (25, ts, 16)

    h = jnp.zeros((ts, w1_ref.shape[-1]), jnp.float32)                # fc1 accumulate
    for p in range(npos):
        h = h + jnp.dot(y[p], w1_ref[p], preferred_element_type=jnp.float32)
    h = jnp.maximum(h + b1_ref[...], 0.0).astype(wf2_ref.dtype)

    h = jnp.dot(h, wf2_ref[...], preferred_element_type=jnp.float32) + bf2_ref[...]
    h = jnp.maximum(h, 0.0).astype(wf3_ref.dtype)                     # fc2 + relu
    o_ref[...] = (jnp.dot(h, wf3_ref[...], preferred_element_type=jnp.float32)
                  + bf3_ref[...]).astype(o_ref.dtype)                 # fc3


# ---------------------------------------------------------------------------
# Pallas wrappers (row-gridded, 'parallel' for megacore, explicit VMEM limit)
# ---------------------------------------------------------------------------
def conv_pool_relu_pallas(p4, w, b):
    """p4: (4, M, K) patch slabs -> (M, C) = maxpool2x2(relu(conv + bias)) rows."""
    _, m, k = p4.shape
    c = w.shape[1]
    tm = _pick_tile(m, _TM_TARGET)
    m_pad = _round_up(m, tm)
    if m_pad != m:
        p4 = jnp.pad(p4, ((0, 0), (0, m_pad - m), (0, 0)))
    out = pl.pallas_call(
        _conv_pool_relu_kernel,
        out_shape=jax.ShapeDtypeStruct((m_pad, c), p4.dtype),
        grid=(m_pad // tm,),
        in_specs=[
            pl.BlockSpec((4, tm, k), lambda i: (0, i, 0)),
            pl.BlockSpec((k, c), lambda i: (0, 0)),
            pl.BlockSpec((1, c), lambda i: (0, 0)),
        ],
        out_specs=pl.BlockSpec((tm, c), lambda i: (i, 0)),
        compiler_params=pltpu.CompilerParams(
            dimension_semantics=("parallel",), vmem_limit_bytes=_VMEM_LIMIT),
    )(p4, w, b)
    return out[:m]


def conv2_fc_stack_pallas(p2, pk):
    """p2: (100, B, 150) conv2 patch rows -> (B, 128) logits (first 10 lanes)."""
    g, b, k = p2.shape
    ts = _pick_tile(b, _TS_TARGET)
    b_pad = _round_up(b, ts)
    if b_pad != b:
        p2 = jnp.pad(p2, ((0, 0), (0, b_pad - b), (0, 0)))
    out = pl.pallas_call(
        _conv2_fc_kernel,
        out_shape=jax.ShapeDtypeStruct((b_pad, _LANE), jnp.float32),
        grid=(b_pad // ts,),
        in_specs=[
            pl.BlockSpec((g, ts, k), lambda i: (0, i, 0)),
            pl.BlockSpec(pk["c2_w"].shape, lambda i: (0, 0)),
            pl.BlockSpec(pk["c2_b"].shape, lambda i: (0, 0)),
            pl.BlockSpec(pk["f1_w"].shape, lambda i: (0, 0, 0)),
            pl.BlockSpec(pk["f1_b"].shape, lambda i: (0, 0)),
            pl.BlockSpec(pk["f2_w"].shape, lambda i: (0, 0)),
            pl.BlockSpec(pk["f2_b"].shape, lambda i: (0, 0)),
            pl.BlockSpec(pk["f3_w"].shape, lambda i: (0, 0)),
            pl.BlockSpec(pk["f3_b"].shape, lambda i: (0, 0)),
        ],
        out_specs=pl.BlockSpec((ts, _LANE), lambda i: (i, 0)),
        compiler_params=pltpu.CompilerParams(
            dimension_semantics=("parallel",), vmem_limit_bytes=_VMEM_LIMIT),
    )(p2, pk["c2_w"], pk["c2_b"], pk["f1_w"], pk["f1_b"],
      pk["f2_w"], pk["f2_b"], pk["f3_w"], pk["f3_b"])
    return out[:b]


# ---------------------------------------------------------------------------
# One-time parameter packing (outside jit)
# ---------------------------------------------------------------------------
def pack_params(params, dtype=jnp.float32):
    """Repack PyTorch-layout weights into matmul form.  `dtype` is the matmul
    operand dtype (f32 or bf16); biases stay f32 (added to f32 accumulators)."""
    c1_w = params["conv1_w"].reshape(6, 25).T.astype(dtype)              # (25, 6)
    c2_w = params["conv2_w"].reshape(16, 150).T.astype(dtype)            # (150, 16)
    # fc1 split per pool pixel: torch feature (c*25 + p) -> block p, row c.
    f1_w = params["fc1_w"].reshape(120, 16, 25).transpose(2, 1, 0)       # (25, 16, 120)
    f1_w = _pad_to(f1_w, (25, 16, _LANE)).astype(dtype)
    f2_w = _pad_to(params["fc2_w"].T, (_LANE, _LANE)).astype(dtype)      # (120,84)->(128,128)
    f3_w = _pad_to(params["fc3_w"].T, (_LANE, _LANE)).astype(dtype)      # (84,10) ->(128,128)
    return {
        "c1_w": c1_w, "c1_b": params["conv1_b"].reshape(1, 6),
        "c2_w": c2_w, "c2_b": params["conv2_b"].reshape(1, 16),
        "f1_w": f1_w, "f1_b": _pad_to(params["fc1_b"], (_LANE,)).reshape(1, _LANE),
        "f2_w": f2_w, "f2_b": _pad_to(params["fc2_b"], (_LANE,)).reshape(1, _LANE),
        "f3_w": f3_w, "f3_b": _pad_to(params["fc3_b"], (_LANE,)).reshape(1, _LANE),
    }


# ---------------------------------------------------------------------------
# LeNet-5 forward
# ---------------------------------------------------------------------------
def lenet5_forward(packed, x):
    """x: (B, 1, 32, 32) NCHW f32 -> (B, 10) logits (same semantics as PyTorch)."""
    b = x.shape[0]
    cdt = packed["c1_w"].dtype
    hp = lax.Precision.HIGHEST    # exact patch extraction (identity-kernel conv)

    # conv1 + bias + maxpool2x2 + relu: one fused dilated-patches conv per pool
    # offset (feature order (c, kh, kw) matches flattened OIHW weights).
    p1 = []
    for dy in range(2):
        for dx in range(2):
            p = lax.conv_general_dilated_patches(
                x[:, :, dy:dy + 31, dx:dx + 31], (5, 5), (2, 2), "VALID",
                dimension_numbers=("NCHW", "OIHW", "NHWC"), precision=hp)
            p1.append(p.reshape(b * 196, 25))                  # rows = (b, ph, pw)
    p1 = jnp.stack(p1, axis=0).astype(cdt)                     # (4, B*196, 25)
    y1 = conv_pool_relu_pallas(p1, packed["c1_w"], packed["c1_b"])
    y1 = y1.reshape(b, 14, 14, 6)                              # NHWC, stored 6-wide

    # conv2 patch slabs; rows reordered (position, sample) so the fused kernel's
    # per-position fc1 blocks read contiguous (TS, 16) slabs.
    p2 = []
    for dy in range(2):
        for dx in range(2):
            p = lax.conv_general_dilated_patches(
                y1[:, dy:dy + 13, dx:dx + 13, :], (5, 5), (2, 2), "VALID",
                dimension_numbers=("NHWC", "HWIO", "NHWC"), precision=hp)
            p2.append(jnp.transpose(p.reshape(b, 25, 150), (1, 0, 2)))
    p2 = jnp.stack(p2, axis=0).reshape(4 * 25, b, 150).astype(cdt)

    # conv2 + bias + pool + relu + flatten + fc1 + fc2 + fc3, fused in one kernel.
    logits = conv2_fc_stack_pallas(p2, packed)                 # (B, 128)
    return logits[:, :10]


def lenet5_reference(params, x):
    """Pure-JAX reference with identical semantics (validation only)."""
    hp = lax.Precision.HIGHEST

    def conv(x, w, b):
        y = lax.conv_general_dilated(x, w, (1, 1), "VALID",
                                     dimension_numbers=("NCHW", "OIHW", "NCHW"),
                                     precision=hp)
        return y + b.reshape(1, -1, 1, 1)

    def pool(x):
        return lax.reduce_window(x, -jnp.inf, lax.max,
                                 (1, 1, 2, 2), (1, 1, 2, 2), "VALID")

    def dense(x, w, b):
        return jnp.dot(x, w.T, precision=hp) + b

    x = pool(jax.nn.relu(conv(x, params["conv1_w"], params["conv1_b"])))
    x = pool(jax.nn.relu(conv(x, params["conv2_w"], params["conv2_b"])))
    x = x.reshape(x.shape[0], -1)
    x = jax.nn.relu(dense(x, params["fc1_w"], params["fc1_b"]))
    x = jax.nn.relu(dense(x, params["fc2_w"], params["fc2_b"]))
    return dense(x, params["fc3_w"], params["fc3_b"])


def init_params(key):
    """Deterministic PyTorch-style uniform(-1/sqrt(fan_in), 1/sqrt(fan_in)) init."""
    ks = jax.random.split(key, 10)

    def u(k, shape, fan_in):
        bound = 1.0 / float(fan_in) ** 0.5
        return jax.random.uniform(k, shape, jnp.float32, -bound, bound)

    return {
        "conv1_w": u(ks[0], (6, 1, 5, 5), 1 * 5 * 5),
        "conv1_b": u(ks[1], (6,), 1 * 5 * 5),
        "conv2_w": u(ks[2], (16, 6, 5, 5), 6 * 5 * 5),
        "conv2_b": u(ks[3], (16,), 6 * 5 * 5),
        "fc1_w": u(ks[4], (120, 400), 400),
        "fc1_b": u(ks[5], (120,), 400),
        "fc2_w": u(ks[6], (84, 120), 120),
        "fc2_b": u(ks[7], (84,), 120),
        "fc3_w": u(ks[8], (10, 84), 84),
        "fc3_b": u(ks[9], (10,), 84),
    }


if __name__ == "__main__":
    key = jax.random.PRNGKey(0)
    pkey, xkey = jax.random.split(key)
    params = init_params(pkey)
    # Canonical LeNet-5 input: fc1 size (16*5*5) implies 1x32x32 images.
    x = jax.random.normal(xkey, (2, 1, 32, 32), jnp.float32)

    ref = lenet5_reference(params, x)
    fwd = jax.jit(lenet5_forward)

    # f32 matmul operands: tight parity with the reference.
    packed = pack_params(params, jnp.float32)
    out = jax.block_until_ready(fwd(packed, x))
    assert out.shape == (2, 10) and out.dtype == jnp.float32
    err = float(jnp.max(jnp.abs(out - ref)))
    assert jnp.allclose(out, ref, atol=1e-3, rtol=1e-3), f"f32 max abs diff {err}"

    # bf16 matmul operands (f32 accumulation): halves the dominant HBM streams
    # on v6e/v7x; deliberately looser tolerance.
    packed_bf16 = pack_params(params, jnp.bfloat16)
    out_bf16 = jax.block_until_ready(fwd(packed_bf16, x))
    err16 = float(jnp.max(jnp.abs(out_bf16 - ref)))
    assert jnp.allclose(out_bf16, ref, atol=5e-2, rtol=5e-2), f"bf16 max abs diff {err16}"

    print("KERNEL_OK")
</pallas_src>

<mosaic_0001>
module attributes {stable_mosaic.version = 11 : i64} {
  func.func @_conv_pool_relu_kernel(%arg0: i32, %arg1: memref<4x208x25xf32, #tpu.memory_space<vmem>>, %arg2: memref<25x6xf32, #tpu.memory_space<vmem>>, %arg3: memref<1x6xf32, #tpu.memory_space<vmem>>, %arg4: memref<208x6xf32, #tpu.memory_space<vmem>>) attributes {dimension_semantics = [#tpu.dimension_semantics<parallel>], iteration_bounds = array<i64: 2>, scalar_prefetch = 0 : i64, scratch_operands = 0 : i64, tpu.core_type = #tpu.core_type<tc>, window_params = [{transform_indices = @transform_0, window_bounds = array<i64: 4, 208, 25>}, {pipeline_mode = #tpu.pipeline_mode<synchronous>, transform_indices = @transform_1, window_bounds = array<i64: 25, 6>}, {pipeline_mode = #tpu.pipeline_mode<synchronous>, transform_indices = @transform_2, window_bounds = array<i64: 1, 6>}, {transform_indices = @transform_3, window_bounds = array<i64: 208, 6>}]} {
    %c0 = arith.constant 0 : index
    %c0_0 = arith.constant 0 : index
    %c0_1 = arith.constant 0 : index
    %0 = vector.load %arg1[%c0, %c0_0, %c0_1] : memref<4x208x25xf32, #tpu.memory_space<vmem>>, vector<4x208x25xf32>
    %1 = vector.shape_cast %0 : vector<4x208x25xf32> to vector<832x25xf32>
    %c0_2 = arith.constant 0 : index
    %c0_3 = arith.constant 0 : index
    %2 = vector.load %arg2[%c0_2, %c0_3] : memref<25x6xf32, #tpu.memory_space<vmem>>, vector<25x6xf32>
    %cst = arith.constant dense<0.000000e+00> : vector<832x6xf32>
    %3 = tpu.matmul %1, %2, %cst {dimension_numbers = #tpu.dot_dimension_numbers<[1], [0], [0], [1], [0, 0, 1, 1], [], []>} : vector<832x25xf32>, vector<25x6xf32>, vector<832x6xf32> -> vector<832x6xf32>
    %4 = vector.shape_cast %3 : vector<832x6xf32> to vector<4x208x6xf32>
    %cst_4 = arith.constant dense<0xFF800000> : vector<208x6xf32>
    %5 = vector.multi_reduction <maximumf>, %4, %cst_4 [0] : vector<4x208x6xf32> to vector<208x6xf32>
    %c0_5 = arith.constant 0 : index
    %c0_6 = arith.constant 0 : index
    %6 = vector.load %arg3[%c0_5, %c0_6] : memref<1x6xf32, #tpu.memory_space<vmem>>, vector<1x6xf32>
    %7 = vector.broadcast %6 : vector<1x6xf32> to vector<208x6xf32>
    %8 = arith.addf %5, %7 : vector<208x6xf32>
    %cst_7 = arith.constant 0.000000e+00 : f32
    %9 = vector.broadcast %cst_7 : f32 to vector<208x6xf32>
    %10 = arith.maximumf %8, %9 : vector<208x6xf32>
    %c0_8 = arith.constant 0 : index
    %c0_9 = arith.constant 0 : index
    %11 = vector.load %arg4[%c0_8, %c0_9] : memref<208x6xf32, #tpu.memory_space<vmem>>, vector<208x6xf32>
    tpu.vector_store %arg4[%c0_8, %c0_9], %10 {strides = array<i32>} : memref<208x6xf32, #tpu.memory_space<vmem>>, vector<208x6xf32>,
    return
  }
  func.func @transform_0(%arg0: i32) -> (i32, i32, i32) {
    %c0_i32 = arith.constant 0 : i32
    %c0_i32_0 = arith.constant 0 : i32
    %c0_i32_1 = arith.constant 0 : i32
    return %c0_i32, %arg0, %c0_i32_0 : i32, i32, i32
  }
  func.func @transform_1(%arg0: i32) -> (i32, i32) {
    %c0_i32 = arith.constant 0 : i32
    %c0_i32_0 = arith.constant 0 : i32
    %c0_i32_1 = arith.constant 0 : i32
    return %c0_i32, %c0_i32_0 : i32, i32
  }
  func.func @transform_2(%arg0: i32) -> (i32, i32) {
    %c0_i32 = arith.constant 0 : i32
    %c0_i32_0 = arith.constant 0 : i32
    %c0_i32_1 = arith.constant 0 : i32
    return %c0_i32, %c0_i32_0 : i32, i32
  }
  func.func @transform_3(%arg0: i32) -> (i32, i32) {
    %c0_i32 = arith.constant 0 : i32
    %c0_i32_0 = arith.constant 0 : i32
    return %arg0, %c0_i32 : i32, i32
  }
}

module attributes {stable_mosaic.version = 11 : i64} {
  func.func @_conv2_fc_kernel(%arg0: i32, %arg1: memref<100x16x150xf32, #tpu.memory_space<vmem>>, %arg2: memref<150x16xf32, #tpu.memory_space<vmem>>, %arg3: memref<1x16xf32, #tpu.memory_space<vmem>>, %arg4: memref<25x16x128xf32, #tpu.memory_space<vmem>>, %arg5: memref<1x128xf32, #tpu.memory_space<vmem>>, %arg6: memref<128x128xf32, #tpu.memory_space<vmem>>, %arg7: memref<1x128xf32, #tpu.memory_space<vmem>>, %arg8: memref<128x128xf32, #tpu.memory_space<vmem>>, %arg9: memref<1x128xf32, #tpu.memory_space<vmem>>, %arg10: memref<16x128xf32, #tpu.memory_space<vmem>>) attributes {dimension_semantics = [#tpu.dimension_semantics<parallel>], iteration_bounds = array<i64: 1>, scalar_prefetch = 0 : i64, scratch_operands = 0 : i64, tpu.core_type = #tpu.core_type<tc>, window_params = [{transform_indices = @transform_0, window_bounds = array<i64: 100, 16, 150>}, {pipeline_mode = #tpu.pipeline_mode<synchronous>, transform_indices = @transform_1, window_bounds = array<i64: 150, 16>}, {pipeline_mode = #tpu.pipeline_mode<synchronous>, transform_indices = @transform_2, window_bounds = array<i64: 1, 16>}, {pipeline_mode = #tpu.pipeline_mode<synchronous>, transform_indices = @transform_3, window_bounds = array<i64: 25, 16, 128>}, {pipeline_mode = #tpu.pipeline_mode<synchronous>, transform_indices = @transform_4, window_bounds = array<i64: 1, 128>}, {pipeline_mode = #tpu.pipeline_mode<synchronous>, transform_indices = @transform_5, window_bounds = array<i64: 128, 128>}, {pipeline_mode = #tpu.pipeline_mode<synchronous>, transform_indices = @transform_6, window_bounds = array<i64: 1, 128>}, {pipeline_mode = #tpu.pipeline_mode<synchronous>, transform_indices = @transform_7, window_bounds = array<i64: 128, 128>}, {pipeline_mode = #tpu.pipeline_mode<synchronous>, transform_indices = @transform_8, window_bounds = array<i64: 1, 128>}, {transform_indices = @transform_9, window_bounds = array<i64: 16, 128>}]} {
    %c0 = arith.constant 0 : index
    %c0_0 = arith.constant 0 : index
    %c0_1 = arith.constant 0 : index
    %0 = vector.load %arg1[%c0, %c0_0, %c0_1] : memref<100x16x150xf32, #tpu.memory_space<vmem>>, vector<100x16x150xf32>
    %1 = vector.shape_cast %0 : vector<100x16x150xf32> to vector<1600x150xf32>
    %c0_2 = arith.constant 0 : index
    %c0_3 = arith.constant 0 : index
    %2 = vector.load %arg2[%c0_2, %c0_3] : memref<150x16xf32, #tpu.memory_space<vmem>>, vector<150x16xf32>
    %cst = arith.constant dense<0.000000e+00> : vector<1600x16xf32>
    %3 = tpu.matmul %1, %2, %cst {dimension_numbers = #tpu.dot_dimension_numbers<[1], [0], [0], [1], [0, 0, 1, 1], [], []>} : vector<1600x150xf32>, vector<150x16xf32>, vector<1600x16xf32> -> vector<1600x16xf32>
    %4 = vector.shape_cast %3 : vector<1600x16xf32> to vector<4x25x16x16xf32>
    %cst_4 = arith.constant dense<0xFF800000> : vector<25x16x16xf32>
    %5 = vector.multi_reduction <maximumf>, %4, %cst_4 [0] : vector<4x25x16x16xf32> to vector<25x16x16xf32>
    %c0_5 = arith.constant 0 : index
    %c0_6 = arith.constant 0 : index
    %6 = vector.load %arg3[%c0_5, %c0_6] : memref<1x16xf32, #tpu.memory_space<vmem>>, vector<1x16xf32>
    %7 = vector.shape_cast %6 : vector<1x16xf32> to vector<1x1x16xf32>
    %8 = vector.broadcast %7 : vector<1x1x16xf32> to vector<25x16x16xf32>
    %9 = arith.addf %5, %8 : vector<25x16x16xf32>
    %cst_7 = arith.constant 0.000000e+00 : f32
    %10 = vector.broadcast %cst_7 : f32 to vector<25x16x16xf32>
    %11 = arith.maximumf %9, %10 : vector<25x16x16xf32>
    %cst_8 = arith.constant 0.000000e+00 : f32
    %12 = vector.broadcast %cst_8 : f32 to vector<16x128xf32>
    %13 = vector.extract_strided_slice %11 {offsets = [0, 0, 0], sizes = [1, 16, 16], strides = [1, 1, 1]} : vector<25x16x16xf32> to vector<1x16x16xf32>
    %14 = vector.shape_cast %13 : vector<1x16x16xf32> to vector<16x16xf32>
    %c0_9 = arith.constant 0 : index
    %c0_10 = arith.constant 0 : index
    %c0_11 = arith.constant 0 : index
    %15 = vector.load %arg4[%c0_9, %c0_10, %c0_11] : memref<25x16x128xf32, #tpu.memory_space<vmem>>, vector<1x16x128xf32>
    %16 = vector.shape_cast %15 : vector<1x16x128xf32> to vector<16x128xf32>
    %cst_12 = arith.constant dense<0.000000e+00> : vector<16x128xf32>
    %17 = tpu.matmul %14, %16, %cst_12 {dimension_numbers = #tpu.dot_dimension_numbers<[1], [0], [0], [1], [0, 0, 1, 1], [], []>} : vector<16x16xf32>, vector<16x128xf32>, vector<16x128xf32> -> vector<16x128xf32>
    %18 = arith.addf %12, %17 : vector<16x128xf32>
    %19 = vector.extract_strided_slice %11 {offsets = [1, 0, 0], sizes = [1, 16, 16], strides = [1, 1, 1]} : vector<25x16x16xf32> to vector<1x16x16xf32>
    %20 = vector.shape_cast %19 : vector<1x16x16xf32> to vector<16x16xf32>
    %c1 = arith.constant 1 : index
    %c0_13 = arith.constant 0 : index
    %c0_14 = arith.constant 0 : index
    %21 = vector.load %arg4[%c1, %c0_13, %c0_14] : memref<25x16x128xf32, #tpu.memory_space<vmem>>, vector<1x16x128xf32>
    %22 = vector.shape_cast %21 : vector<1x16x128xf32> to vector<16x128xf32>
    %cst_15 = arith.constant dense<0.000000e+00> : vector<16x128xf32>
    %23 = tpu.matmul %20, %22, %cst_15 {dimension_numbers = #tpu.dot_dimension_numbers<[1], [0], [0], [1], [0, 0, 1, 1], [], []>} : vector<16x16xf32>, vector<16x128xf32>, vector<16x128xf32> -> vector<16x128xf32>
    %24 = arith.addf %18, %23 : vector<16x128xf32>
    %25 = vector.extract_strided_slice %11 {offsets = [2, 0, 0], sizes = [1, 16, 16], strides = [1, 1, 1]} : vector<25x16x16xf32> to vector<1x16x16xf32>
    %26 = vector.shape_cast %25 : vector<1x16x16xf32> to vector<16x16xf32>
    %c2 = arith.constant 2 : index
    %c0_16 = arith.constant 0 : index
    %c0_17 = arith.constant 0 : index
    %27 = vector.load %arg4[%c2, %c0_16, %c0_17] : memref<25x16x128xf32, #tpu.memory_space<vmem>>, vector<1x16x128xf32>
    %28 = vector.shape_cast %27 : vector<1x16x128xf32> to vector<16x128xf32>
    %cst_18 = arith.constant dense<0.000000e+00> : vector<16x128xf32>
    %29 = tpu.matmul %26, %28, %cst_18 {dimension_numbers = #tpu.dot_dimension_numbers<[1], [0], [0], [1], [0, 0, 1, 1], [], []>} : vector<16x16xf32>, vector<16x128xf32>, vector<16x128xf32> -> vector<16x128xf32>
    %30 = arith.addf %24, %29 : vector<16x128xf32>
    %31 = vector.extract_strided_slice %11 {offsets = [3, 0, 0], sizes = [1, 16, 16], strides = [1, 1, 1]} : vector<25x16x16xf32> to vector<1x16x16xf32>
    %32 = vector.shape_cast %31 : vector<1x16x16xf32> to vector<16x16xf32>
    %c3 = arith.constant 3 : index
    %c0_19 = arith.constant 0 : index
    %c0_20 = arith.constant 0 : index
    %33 = vector.load %arg4[%c3, %c0_19, %c0_20] : memref<25x16x128xf32, #tpu.memory_space<vmem>>, vector<1x16x128xf32>
    %34 = vector.shape_cast %33 : vector<1x16x128xf32> to vector<16x128xf32>
    %cst_21 = arith.constant dense<0.000000e+00> : vector<16x128xf32>
    %35 = tpu.matmul %32, %34, %cst_21 {dimension_numbers = #tpu.dot_dimension_numbers<[1], [0], [0], [1], [0, 0, 1, 1], [], []>} : vector<16x16xf32>, vector<16x128xf32>, vector<16x128xf32> -> vector<16x128xf32>
    %36 = arith.addf %30, %35 : vector<16x128xf32>
    %37 = vector.extract_strided_slice %11 {offsets = [4, 0, 0], sizes = [1, 16, 16], strides = [1, 1, 1]} : vector<25x16x16xf32> to vector<1x16x16xf32>
    %38 = vector.shape_cast %37 : vector<1x16x16xf32> to vector<16x16xf32>
    %c4 = arith.constant 4 : index
    %c0_22 = arith.constant 0 : index
    %c0_23 = arith.constant 0 : index
    %39 = vector.load %arg4[%c4, %c0_22, %c0_23] : memref<25x16x128xf32, #tpu.memory_space<vmem>>, vector<1x16x128xf32>
    %40 = vector.shape_cast %39 : vector<1x16x128xf32> to vector<16x128xf32>
    %cst_24 = arith.constant dense<0.000000e+00> : vector<16x128xf32>
    %41 = tpu.matmul %38, %40, %cst_24 {dimension_numbers = #tpu.dot_dimension_numbers<[1], [0], [0], [1], [0, 0, 1, 1], [], []>} : vector<16x16xf32>, vector<16x128xf32>, vector<16x128xf32> -> vector<16x128xf32>
    %42 = arith.addf %36, %41 : vector<16x128xf32>
    %43 = vector.extract_strided_slice %11 {offsets = [5, 0, 0], sizes = [1, 16, 16], strides = [1, 1, 1]} : vector<25x16x16xf32> to vector<1x16x16xf32>
    %44 = vector.shape_cast %43 : vector<1x16x16xf32> to vector<16x16xf32>
    %c5 = arith.constant 5 : index
    %c0_25 = arith.constant 0 : index
    %c0_26 = arith.constant 0 : index
    %45 = vector.load %arg4[%c5, %c0_25, %c0_26] : memref<25x16x128xf32, #tpu.memory_space<vmem>>, vector<1x16x128xf32>
    %46 = vector.shape_cast %45 : vector<1x16x128xf32> to vector<16x128xf32>
    %cst_27 = arith.constant dense<0.000000e+00> : vector<16x128xf32>
    %47 = tpu.matmul %44, %46, %cst_27 {dimension_numbers = #tpu.dot_dimension_numbers<[1], [0], [0], [1], [0, 0, 1, 1], [], []>} : vector<16x16xf32>, vector<16x128xf32>, vector<16x128xf32> -> vector<16x128xf32>
    %48 = arith.addf %42, %47 : vector<16x128xf32>
    %49 = vector.extract_strided_slice %11 {offsets = [6, 0, 0], sizes = [1, 16, 16], strides = [1, 1, 1]} : vector<25x16x16xf32> to vector<1x16x16xf32>
    %50 = vector.shape_cast %49 : vector<1x16x16xf32> to vector<16x16xf32>
    %c6 = arith.constant 6 : index
    %c0_28 = arith.constant 0 : index
    %c0_29 = arith.constant 0 : index
    %51 = vector.load %arg4[%c6, %c0_28, %c0_29] : memref<25x16x128xf32, #tpu.memory_space<vmem>>, vector<1x16x128xf32>
    %52 = vector.shape_cast %51 : vector<1x16x128xf32> to vector<16x128xf32>
    %cst_30 = arith.constant dense<0.000000e+00> : vector<16x128xf32>
    %53 = tpu.matmul %50, %52, %cst_30 {dimension_numbers = #tpu.dot_dimension_numbers<[1], [0], [0], [1], [0, 0, 1, 1], [], []>} : vector<16x16xf32>, vector<16x128xf32>, vector<16x128xf32> -> vector<16x128xf32>
    %54 = arith.addf %48, %53 : vector<16x128xf32>
    %55 = vector.extract_strided_slice %11 {offsets = [7, 0, 0], sizes = [1, 16, 16], strides = [1, 1, 1]} : vector<25x16x16xf32> to vector<1x16x16xf32>
    %56 = vector.shape_cast %55 : vector<1x16x16xf32> to vector<16x16xf32>
    %c7 = arith.constant 7 : index
    %c0_31 = arith.constant 0 : index
    %c0_32 = arith.constant 0 : index
    %57 = vector.load %arg4[%c7, %c0_31, %c0_32] : memref<25x16x128xf32, #tpu.memory_space<vmem>>, vector<1x16x128xf32>
    %58 = vector.shape_cast %57 : vector<1x16x128xf32> to vector<16x128xf32>
    %cst_33 = arith.constant dense<0.000000e+00> : vector<16x128xf32>
    %59 = tpu.matmul %56, %58, %cst_33 {dimension_numbers = #tpu.dot_dimension_numbers<[1], [0], [0], [1], [0, 0, 1, 1], [], []>} : vector<16x16xf32>, vector<16x128xf32>, vector<16x128xf32> -> vector<16x128xf32>
    %60 = arith.addf %54, %59 : vector<16x128xf32>
    %61 = vector.extract_strided_slice %11 {offsets = [8, 0, 0], sizes = [1, 16, 16], strides = [1, 1, 1]} : vector<25x16x16xf32> to vector<1x16x16xf32>
    %62 = vector.shape_cast %61 : vector<1x16x16xf32> to vector<16x16xf32>
    %c8 = arith.constant 8 : index
    %c0_34 = arith.constant 0 : index
    %c0_35 = arith.constant 0 : index
    %63 = vector.load %arg4[%c8, %c0_34, %c0_35] : memref<25x16x128xf32, #tpu.memory_space<vmem>>, vector<1x16x128xf32>
    %64 = vector.shape_cast %63 : vector<1x16x128xf32> to vector<16x128xf32>
    %cst_36 = arith.constant dense<0.000000e+00> : vector<16x128xf32>
    %65 = tpu.matmul %62, %64, %cst_36 {dimension_numbers = #tpu.dot_dimension_numbers<[1], [0], [0], [1], [0, 0, 1, 1], [], []>} : vector<16x16xf32>, vector<16x128xf32>, vector<16x128xf32> -> vector<16x128xf32>
    %66 = arith.addf %60, %65 : vector<16x128xf32>
    %67 = vector.extract_strided_slice %11 {offsets = [9, 0, 0], sizes = [1, 16, 16], strides = [1, 1, 1]} : vector<25x16x16xf32> to vector<1x16x16xf32>
    %68 = vector.shape_cast %67 : vector<1x16x16xf32> to vector<16x16xf32>
    %c9 = arith.constant 9 : index
    %c0_37 = arith.constant 0 : index
    %c0_38 = arith.constant 0 : index
    %69 = vector.load %arg4[%c9, %c0_37, %c0_38] : memref<25x16x128xf32, #tpu.memory_space<vmem>>, vector<1x16x128xf32>
    %70 = vector.shape_cast %69 : vector<1x16x128xf32> to vector<16x128xf32>
    %cst_39 = arith.constant dense<0.000000e+00> : vector<16x128xf32>
    %71 = tpu.matmul %68, %70, %cst_39 {dimension_numbers = #tpu.dot_dimension_numbers<[1], [0], [0], [1], [0, 0, 1, 1], [], []>} : vector<16x16xf32>, vector<16x128xf32>, vector<16x128xf32> -> vector<16x128xf32>
    %72 = arith.addf %66, %71 : vector<16x128xf32>
    %73 = vector.extract_strided_slice %11 {offsets = [10, 0, 0], sizes = [1, 16, 16], strides = [1, 1, 1]} : vector<25x16x16xf32> to vector<1x16x16xf32>
    %74 = vector.shape_cast %73 : vector<1x16x16xf32> to vector<16x16xf32>
    %c10 = arith.constant 10 : index
    %c0_40 = arith.constant 0 : index
    %c0_41 = arith.constant 0 : index
    %75 = vector.load %arg4[%c10, %c0_40, %c0_41] : memref<25x16x128xf32, #tpu.memory_space<vmem>>, vector<1x16x128xf32>
    %76 = vector.shape_cast %75 : vector<1x16x128xf32> to vector<16x128xf32>
    %cst_42 = arith.constant dense<0.000000e+00> : vector<16x128xf32>
    %77 = tpu.matmul %74, %76, %cst_42 {dimension_numbers = #tpu.dot_dimension_numbers<[1], [0], [0], [1], [0, 0, 1, 1], [], []>} : vector<16x16xf32>, vector<16x128xf32>, vector<16x128xf32> -> vector<16x128xf32>
    %78 = arith.addf %72, %77 : vector<16x128xf32>
    %79 = vector.extract_strided_slice %11 {offsets = [11, 0, 0], sizes = [1, 16, 16], strides = [1, 1, 1]} : vector<25x16x16xf32> to vector<1x16x16xf32>
    %80 = vector.shape_cast %79 : vector<1x16x16xf32> to vector<16x16xf32>
    %c11 = arith.constant 11 : index
    %c0_43 = arith.constant 0 : index
    %c0_44 = arith.constant 0 : index
    %81 = vector.load %arg4[%c11, %c0_43, %c0_44] : memref<25x16x128xf32, #tpu.memory_space<vmem>>, vector<1x16x128xf32>
    %82 = vector.shape_cast %81 : vector<1x16x128xf32> to vector<16x128xf32>
    %cst_45 = arith.constant dense<0.000000e+00> : vector<16x128xf32>
    %83 = tpu.matmul %80, %82, %cst_45 {dimension_numbers = #tpu.dot_dimension_numbers<[1], [0], [0], [1], [0, 0, 1, 1], [], []>} : vector<16x16xf32>, vector<16x128xf32>, vector<16x128xf32> -> vector<16x128xf32>
    %84 = arith.addf %78, %83 : vector<16x128xf32>
    %85 = vector.extract_strided_slice %11 {offsets = [12, 0, 0], sizes = [1, 16, 16], strides = [1, 1, 1]} : vector<25x16x16xf32> to vector<1x16x16xf32>
    %86 = vector.shape_cast %85 : vector<1x16x16xf32> to vector<16x16xf32>
    %c12 = arith.constant 12 : index
    %c0_46 = arith.constant 0 : index
    %c0_47 = arith.constant 0 : index
    %87 = vector.load %arg4[%c12, %c0_46, %c0_47] : memref<25x16x128xf32, #tpu.memory_space<vmem>>, vector<1x16x128xf32>
    %88 = vector.shape_cast %87 : vector<1x16x128xf32> to vector<16x128xf32>
    %cst_48 = arith.constant dense<0.000000e+00> : vector<16x128xf32>
    %89 = tpu.matmul %86, %88, %cst_48 {dimension_numbers = #tpu.dot_dimension_numbers<[1], [0], [0], [1], [0, 0, 1, 1], [], []>} : vector<16x16xf32>, vector<16x128xf32>, vector<16x128xf32> -> vector<16x128xf32>
    %90 = arith.addf %84, %89 : vector<16x128xf32>
    %91 = vector.extract_strided_slice %11 {offsets = [13, 0, 0], sizes = [1, 16, 16], strides = [1, 1, 1]} : vector<25x16x16xf32> to vector<1x16x16xf32>
    %92 = vector.shape_cast %91 : vector<1x16x16xf32> to vector<16x16xf32>
    %c13 = arith.constant 13 : index
    %c0_49 = arith.constant 0 : index
    %c0_50 = arith.constant 0 : index
    %93 = vector.load %arg4[%c13, %c0_49, %c0_50] : memref<25x16x128xf32, #tpu.memory_space<vmem>>, vector<1x16x128xf32>
    %94 = vector.shape_cast %93 : vector<1x16x128xf32> to vector<16x128xf32>
    %cst_51 = arith.constant dense<0.000000e+00> : vector<16x128xf32>
    %95 = tpu.matmul %92, %94, %cst_51 {dimension_numbers = #tpu.dot_dimension_numbers<[1], [0], [0], [1], [0, 0, 1, 1], [], []>} : vector<16x16xf32>, vector<16x128xf32>, vector<16x128xf32> -> vector<16x128xf32>
    %96 = arith.addf %90, %95 : vector<16x128xf32>
    %97 = vector.extract_strided_slice %11 {offsets = [14, 0, 0], sizes = [1, 16, 16], strides = [1, 1, 1]} : vector<25x16x16xf32> to vector<1x16x16xf32>
    %98 = vector.shape_cast %97 : vector<1x16x16xf32> to vector<16x16xf32>
    %c14 = arith.constant 14 : index
    %c0_52 = arith.constant 0 : index
    %c0_53 = arith.constant 0 : index
    %99 = vector.load %arg4[%c14, %c0_52, %c0_53] : memref<25x16x128xf32, #tpu.memory_space<vmem>>, vector<1x16x128xf32>
    %100 = vector.shape_cast %99 : vector<1x16x128xf32> to vector<16x128xf32>
    %cst_54 = arith.constant dense<0.000000e+00> : vector<16x128xf32>
    %101 = tpu.matmul %98, %100, %cst_54 {dimension_numbers = #tpu.dot_dimension_numbers<[1], [0], [0], [1], [0, 0, 1, 1], [], []>} : vector<16x16xf32>, vector<16x128xf32>, vector<16x128xf32> -> vector<16x128xf32>
    %102 = arith.addf %96, %101 : vector<16x128xf32>
    %103 = vector.extract_strided_slice %11 {offsets = [15, 0, 0], sizes = [1, 16, 16], strides = [1, 1, 1]} : vector<25x16x16xf32> to vector<1x16x16xf32>
    %104 = vector.shape_cast %103 : vector<1x16x16xf32> to vector<16x16xf32>
    %c15 = arith.constant 15 : index
    %c0_55 = arith.constant 0 : index
    %c0_56 = arith.constant 0 : index
    %105 = vector.load %arg4[%c15, %c0_55, %c0_56] : memref<25x16x128xf32, #tpu.memory_space<vmem>>, vector<1x16x128xf32>
    %106 = vector.shape_cast %105 : vector<1x16x128xf32> to vector<16x128xf32>
    %cst_57 = arith.constant dense<0.000000e+00> : vector<16x128xf32>
    %107 = tpu.matmul %104, %106, %cst_57 {dimension_numbers = #tpu.dot_dimension_numbers<[1], [0], [0], [1], [0, 0, 1, 1], [], []>} : vector<16x16xf32>, vector<16x128xf32>, vector<16x128xf32> -> vector<16x128xf32>
    %108 = arith.addf %102, %107 : vector<16x128xf32>
    %109 = vector.extract_strided_slice %11 {offsets = [16, 0, 0], sizes = [1, 16, 16], strides = [1, 1, 1]} : vector<25x16x16xf32> to vector<1x16x16xf32>
    %110 = vector.shape_cast %109 : vector<1x16x16xf32> to vector<16x16xf32>
    %c16 = arith.constant 16 : index
    %c0_58 = arith.constant 0 : index
    %c0_59 = arith.constant 0 : index
    %111 = vector.load %arg4[%c16, %c0_58, %c0_59] : memref<25x16x128xf32, #tpu.memory_space<vmem>>, vector<1x16x128xf32>
    %112 = vector.shape_cast %111 : vector<1x16x128xf32> to vector<16x128xf32>
    %cst_60 = arith.constant dense<0.000000e+00> : vector<16x128xf32>
    %113 = tpu.matmul %110, %112, %cst_60 {dimension_numbers = #tpu.dot_dimension_numbers<[1], [0], [0], [1], [0, 0, 1, 1], [], []>} : vector<16x16xf32>, vector<16x128xf32>, vector<16x128xf32> -> vector<16x128xf32>
    %114 = arith.addf %108, %113 : vector<16x128xf32>
    %115 = vector.extract_strided_slice %11 {offsets = [17, 0, 0], sizes = [1, 16, 16], strides = [1, 1, 1]} : vector<25x16x16xf32> to vector<1x16x16xf32>
    %116 = vector.shape_cast %115 : vector<1x16x16xf32> to vector<16x16xf32>
    %c17 = arith.constant 17 : index
    %c0_61 = arith.constant 0 : index
    %c0_62 = arith.constant 0 : index
    %117 = vector.load %arg4[%c17, %c0_61, %c0_62] : memref<25x16x128xf32, #tpu.memory_space<vmem>>, vector<1x16x128xf32>
    %118 = vector.shape_cast %117 : vector<1x16x128xf32> to vector<16x128xf32>
    %cst_63 = arith.constant dense<0.000000e+00> : vector<16x128xf32>
    %119 = tpu.matmul %116, %118, %cst_63 {dimension_numbers = #tpu.dot_dimension_numbers<[1], [0], [0], [1], [0, 0, 1, 1], [], []>} : vector<16x16xf32>, vector<16x128xf32>, vector<16x128xf32> -> vector<16x128xf32>
    %120 = arith.addf %114, %119 : vector<16x128xf32>
    %121 = vector.extract_strided_slice %11 {offsets = [18, 0, 0], sizes = [1, 16, 16], strides = [1, 1, 1]} : vector<25x16x16xf32> to vector<1x16x16xf32>
    %122 = vector.shape_cast %121 : vector<1x16x16xf32> to vector<16x16xf32>
    %c18 = arith.constant 18 : index
    %c0_64 = arith.constant 0 : index
    %c0_65 = arith.constant 0 : index
    %123 = vector.load %arg4[%c18, %c0_64, %c0_65] : memref<25x16x128xf32, #tpu.memory_space<vmem>>, vector<1x16x128xf32>
    %124 = vector.shape_cast %123 : vector<1x16x128xf32> to vector<16x128xf32>
    %cst_66 = arith.constant dense<0.000000e+00> : vector<16x128xf32>
    %125 = tpu.matmul %122, %124, %cst_66 {dimension_numbers = #tpu.dot_dimension_numbers<[1], [0], [0], [1], [0, 0, 1, 1], [], []>} : vector<16x16xf32>, vector<16x128xf32>, vector<16x128xf32> -> vector<16x128xf32>
    %126 = arith.addf %120, %125 : vector<16x128xf32>
    %127 = vector.extract_strided_slice %11 {offsets = [19, 0, 0], sizes = [1, 16, 16], strides = [1, 1, 1]} : vector<25x16x16xf32> to vector<1x16x16xf32>
    %128 = vector.shape_cast %127 : vector<1x16x16xf32> to vector<16x16xf32>
    %c19 = arith.constant 19 : index
    %c0_67 = arith.constant 0 : index
    %c0_68 = arith.constant 0 : index
    %129 = vector.load %arg4[%c19, %c0_67, %c0_68] : memref<25x16x128xf32, #tpu.memory_space<vmem>>, vector<1x16x128xf32>
    %130 = vector.shape_cast %129 : vector<1x16x128xf32> to vector<16x128xf32>
    %cst_69 = arith.constant dense<0.000000e+00> : vector<16x128xf32>
    %131 = tpu.matmul %128, %130, %cst_69 {dimension_numbers = #tpu.dot_dimension_numbers<[1], [0], [0], [1], [0, 0, 1, 1], [], []>} : vector<16x16xf32>, vector<16x128xf32>, vector<16x128xf32> -> vector<16x128xf32>
    %132 = arith.addf %126, %131 : vector<16x128xf32>
    %133 = vector.extract_strided_slice %11 {offsets = [20, 0, 0], sizes = [1, 16, 16], strides = [1, 1, 1]} : vector<25x16x16xf32> to vector<1x16x16xf32>
    %134 = vector.shape_cast %133 : vector<1x16x16xf32> to vector<16x16xf32>
    %c20 = arith.constant 20 : index
    %c0_70 = arith.constant 0 : index
    %c0_71 = arith.constant 0 : index
    %135 = vector.load %arg4[%c20, %c0_70, %c0_71] : memref<25x16x128xf32, #tpu.memory_space<vmem>>, vector<1x16x128xf32>
    %136 = vector.shape_cast %135 : vector<1x16x128xf32> to vector<16x128xf32>
    %cst_72 = arith.constant dense<0.000000e+00> : vector<16x128xf32>
    %137 = tpu.matmul %134, %136, %cst_72 {dimension_numbers = #tpu.dot_dimension_numbers<[1], [0], [0], [1], [0, 0, 1, 1], [], []>} : vector<16x16xf32>, vector<16x128xf32>, vector<16x128xf32> -> vector<16x128xf32>
    %138 = arith.addf %132, %137 : vector<16x128xf32>
    %139 = vector.extract_strided_slice %11 {offsets = [21, 0, 0], sizes = [1, 16, 16], strides = [1, 1, 1]} : vector<25x16x16xf32> to vector<1x16x16xf32>
    %140 = vector.shape_cast %139 : vector<1x16x16xf32> to vector<16x16xf32>
    %c21 = arith.constant 21 : index
    %c0_73 = arith.constant 0 : index
    %c0_74 = arith.constant 0 : index
    %141 = vector.load %arg4[%c21, %c0_73, %c0_74] : memref<25x16x128xf32, #tpu.memory_space<vmem>>, vector<1x16x128xf32>
    %142 = vector.shape_cast %141 : vector<1x16x128xf32> to vector<16x128xf32>
    %cst_75 = arith.constant dense<0.000000e+00> : vector<16x128xf32>
    %143 = tpu.matmul %140, %142, %cst_75 {dimension_numbers = #tpu.dot_dimension_numbers<[1], [0], [0], [1], [0, 0, 1, 1], [], []>} : vector<16x16xf32>, vector<16x128xf32>, vector<16x128xf32> -> vector<16x128xf32>
    %144 = arith.addf %138, %143 : vector<16x128xf32>
    %145 = vector.extract_strided_slice %11 {offsets = [22, 0, 0], sizes = [1, 16, 16], strides = [1, 1, 1]} : vector<25x16x16xf32> to vector<1x16x16xf32>
    %146 = vector.shape_cast %145 : vector<1x16x16xf32> to vector<16x16xf32>
    %c22 = arith.constant 22 : index
    %c0_76 = arith.constant 0 : index
    %c0_77 = arith.constant 0 : index
    %147 = vector.load %arg4[%c22, %c0_76, %c0_77] : memref<25x16x128xf32, #tpu.memory_space<vmem>>, vector<1x16x128xf32>
    %148 = vector.shape_cast %147 : vector<1x16x128xf32> to vector<16x128xf32>
    %cst_78 = arith.constant dense<0.000000e+00> : vector<16x128xf32>
    %149 = tpu.matmul %146, %148, %cst_78 {dimension_numbers = #tpu.dot_dimension_numbers<[1], [0], [0], [1], [0, 0, 1, 1], [], []>} : vector<16x16xf32>, vector<16x128xf32>, vector<16x128xf32> -> vector<16x128xf32>
    %150 = arith.addf %144, %149 : vector<16x128xf32>
    %151 = vector.extract_strided_slice %11 {offsets = [23, 0, 0], sizes = [1, 16, 16], strides = [1, 1, 1]} : vector<25x16x16xf32> to vector<1x16x16xf32>
    %152 = vector.shape_cast %151 : vector<1x16x16xf32> to vector<16x16xf32>
    %c23 = arith.constant 23 : index
    %c0_79 = arith.constant 0 : index
    %c0_80 = arith.constant 0 : index
    %153 = vector.load %arg4[%c23, %c0_79, %c0_80] : memref<25x16x128xf32, #tpu.memory_space<vmem>>, vector<1x16x128xf32>
    %154 = vector.shape_cast %153 : vector<1x16x128xf32> to vector<16x128xf32>
    %cst_81 = arith.constant dense<0.000000e+00> : vector<16x128xf32>
    %155 = tpu.matmul %152, %154, %cst_81 {dimension_numbers = #tpu.dot_dimension_numbers<[1], [0], [0], [1], [0, 0, 1, 1], [], []>} : vector<16x16xf32>, vector<16x128xf32>, vector<16x128xf32> -> vector<16x128xf32>
    %156 = arith.addf %150, %155 : vector<16x128xf32>
    %157 = vector.extract_strided_slice %11 {offsets = [24, 0, 0], sizes = [1, 16, 16], strides = [1, 1, 1]} : vector<25x16x16xf32> to vector<1x16x16xf32>
    %158 = vector.shape_cast %157 : vector<1x16x16xf32> to vector<16x16xf32>
    %c24 = arith.constant 24 : index
    %c0_82 = arith.constant 0 : index
    %c0_83 = arith.constant 0 : index
    %159 = vector.load %arg4[%c24, %c0_82, %c0_83] : memref<25x16x128xf32, #tpu.memory_space<vmem>>, vector<1x16x128xf32>
    %160 = vector.shape_cast %159 : vector<1x16x128xf32> to vector<16x128xf32>
    %cst_84 = arith.constant dense<0.000000e+00> : vector<16x128xf32>
    %161 = tpu.matmul %158, %160, %cst_84 {dimension_numbers = #tpu.dot_dimension_numbers<[1], [0], [0], [1], [0, 0, 1, 1], [], []>} : vector<16x16xf32>, vector<16x128xf32>, vector<16x128xf32> -> vector<16x128xf32>
    %162 = arith.addf %156, %161 : vector<16x128xf32>
    %c0_85 = arith.constant 0 : index
    %c0_86 = arith.constant 0 : index
    %163 = vector.load %arg5[%c0_85, %c0_86] : memref<1x128xf32, #tpu.memory_space<vmem>>, vector<1x128xf32>
    %164 = vector.broadcast %163 : vector<1x128xf32> to vector<16x128xf32>
    %165 = arith.addf %162, %164 : vector<16x128xf32>
    %cst_87 = arith.constant 0.000000e+00 : f32
    %166 = vector.broadcast %cst_87 : f32 to vector<16x128xf32>
    %167 = arith.maximumf %165, %166 : vector<16x128xf32>
    %c0_88 = arith.constant 0 : index
    %c0_89 = arith.constant 0 : index
    %168 = vector.load %arg6[%c0_88, %c0_89] : memref<128x128xf32, #tpu.memory_space<vmem>>, vector<128x128xf32>
    %cst_90 = arith.constant dense<0.000000e+00> : vector<16x128xf32>
    %169 = tpu.matmul %167, %168, %cst_90 {dimension_numbers = #tpu.dot_dimension_numbers<[1], [0], [0], [1], [0, 0, 1, 1], [], []>} : vector<16x128xf32>, vector<128x128xf32>, vector<16x128xf32> -> vector<16x128xf32>
    %c0_91 = arith.constant 0 : index
    %c0_92 = arith.constant 0 : index
    %170 = vector.load %arg7[%c0_91, %c0_92] : memref<1x128xf32, #tpu.memory_space<vmem>>, vector<1x128xf32>
    %171 = vector.broadcast %170 : vector<1x128xf32> to vector<16x128xf32>
    %172 = arith.addf %169, %171 : vector<16x128xf32>
    %cst_93 = arith.constant 0.000000e+00 : f32
    %173 = vector.broadcast %cst_93 : f32 to vector<16x128xf32>
    %174 = arith.maximumf %172, %173 : vector<16x128xf32>
    %c0_94 = arith.constant 0 : index
    %c0_95 = arith.constant 0 : index
    %175 = vector.load %arg8[%c0_94, %c0_95] : memref<128x128xf32, #tpu.memory_space<vmem>>, vector<128x128xf32>
    %cst_96 = arith.constant dense<0.000000e+00> : vector<16x128xf32>
    %176 = tpu.matmul %174, %175, %cst_96 {dimension_numbers = #tpu.dot_dimension_numbers<[1], [0], [0], [1], [0, 0, 1, 1], [], []>} : vector<16x128xf32>, vector<128x128xf32>, vector<16x128xf32> -> vector<16x128xf32>
    %c0_97 = arith.constant 0 : index
    %c0_98 = arith.constant 0 : index
    %177 = vector.load %arg9[%c0_97, %c0_98] : memref<1x128xf32, #tpu.memory_space<vmem>>, vector<1x128xf32>
    %178 = vector.broadcast %177 : vector<1x128xf32> to vector<16x128xf32>
    %179 = arith.addf %176, %178 : vector<16x128xf32>
    %c0_99 = arith.constant 0 : index
    %c0_100 = arith.constant 0 : index
    %180 = vector.load %arg10[%c0_99, %c0_100] : memref<16x128xf32, #tpu.memory_space<vmem>>, vector<16x128xf32>
    tpu.vector_store %arg10[%c0_99, %c0_100], %179 {strides = array<i32>} : memref<16x128xf32, #tpu.memory_space<vmem>>, vector<16x128xf32>,
    return
  }
  func.func @transform_0(%arg0: i32) -> (i32, i32, i32) {
    %c0_i32 = arith.constant 0 : i32
    %c0_i32_0 = arith.constant 0 : i32
    %c0_i32_1 = arith.constant 0 : i32
    return %c0_i32, %arg0, %c0_i32_0 : i32, i32, i32
  }
  func.func @transform_1(%arg0: i32) -> (i32, i32) {
    %c0_i32 = arith.constant 0 : i32
    %c0_i32_0 = arith.constant 0 : i32
    %c0_i32_1 = arith.constant 0 : i32
    return %c0_i32, %c0_i32_0 : i32, i32
  }
  func.func @transform_2(%arg0: i32) -> (i32, i32) {
    %c0_i32 = arith.constant 0 : i32
    %c0_i32_0 = arith.constant 0 : i32
    %c0_i32_1 = arith.constant 0 : i32
    return %c0_i32, %c0_i32_0 : i32, i32
  }
  func.func @transform_3(%arg0: i32) -> (i32, i32, i32) {
    %c0_i32 = arith.constant 0 : i32
    %c0_i32_0 = arith.constant 0 : i32
    %c0_i32_1 = arith.constant 0 : i32
    %c0_i32_2 = arith.constant 0 : i32
    return %c0_i32, %c0_i32_0, %c0_i32_1 : i32, i32, i32
  }
  func.func @transform_4(%arg0: i32) -> (i32, i32) {
    %c0_i32 = arith.constant 0 : i32
    %c0_i32_0 = arith.constant 0 : i32
    %c0_i32_1 = arith.constant 0 : i32
    return %c0_i32, %c0_i32_0 : i32, i32
  }
  func.func @transform_5(%arg0: i32) -> (i32, i32) {
    %c0_i32 = arith.constant 0 : i32
    %c0_i32_0 = arith.constant 0 : i32
    %c0_i32_1 = arith.constant 0 : i32
    return %c0_i32, %c0_i32_0 : i32, i32
  }
  func.func @transform_6(%arg0: i32) -> (i32, i32) {
    %c0_i32 = arith.constant 0 : i32
    %c0_i32_0 = arith.constant 0 : i32
    %c0_i32_1 = arith.constant 0 : i32
    return %c0_i32, %c0_i32_0 : i32, i32
  }
  func.func @transform_7(%arg0: i32) -> (i32, i32) {
    %c0_i32 = arith.constant 0 : i32
    %c0_i32_0 = arith.constant 0 : i32
    %c0_i32_1 = arith.constant 0 : i32
    return %c0_i32, %c0_i32_0 : i32, i32
  }
  func.func @transform_8(%arg0: i32) -> (i32, i32) {
    %c0_i32 = arith.constant 0 : i32
    %c0_i32_0 = arith.constant 0 : i32
    %c0_i32_1 = arith.constant 0 : i32
    return %c0_i32, %c0_i32_0 : i32, i32
  }
  func.func @transform_9(%arg0: i32) -> (i32, i32) {
    %c0_i32 = arith.constant 0 : i32
    %c0_i32_0 = arith.constant 0 : i32
    return %arg0, %c0_i32 : i32, i32
  }
}

</mosaic_0001>

<bundles_post_ra>
// kernel: lenet5_forward.2
= control target key start
LH: loop header
LB: loop body
LE: loop exit
PB: predicated region body
PF: predicated region fallthrough
CT: control target
= control target key end

     0   :  { %s2427_s12 = smov 0   ;;  %s2429_s13 = smov 0   ;;  %s3312_s0 = inlined_call_operand.vmem [shape: f32[4,416,25], index: 0, kind: input, shape index: {}]   ;;  %s3313_s1 = inlined_call_operand.vmem [shape: f32[25,6], index: 1, kind: input, shape index: {}]   ;;  %s3314_s2 = inlined_call_operand.vmem [shape: f32[1,6], index: 2, kind: input, shape index: {}]   ;;  %s3315_s3 = inlined_call_operand.vmem [shape: f32[416,6], index: 3, kind: output, shape index: {}]  }
   0x1   :  { %s2431_s14 = smov 0  }
   0x2 LB: > { %s1961_s15 = sadd.s32 4294967295, %s2405_s14   ;;  %s2444_s16 = sadd.s32 1, %s2405_s14   ;;  %s2405_s14 = sphi %s2431_s14, %s3324_s14   ;;  %s2401_s13 = sphi %s2429_s13, %s3323_s13   ;;  %s2397_s12 = sphi %s2427_s12, %s3322_s12  }
   0x3   : > { %s17_s17 = ssub.s32 %s2405_s14, %s2444_s16  ;;  %s20_s18 = sadd.s32 1, %s2401_s13 }
   0x4   : > { %p18_p0 = scmp.eq.s32.totalorder %s17_s17, 0  ;;  %p27_p1 = scmp.ne.s32.totalorder %s2401_s13, %s2397_s12 }
   0x5   : > { %p28_p2 = scmp.eq.s32.totalorder %s2405_s14, 0  ;;  %p1964_p4 = scmp.ge.s32.totalorder %s2405_s14, 2 }
   0x6   : > { %s2453_s19 = scalar_select %p18_p0, %s2401_s13, %s20_s18  }
   0x7   : > { %p29_p3 = por %p28_p2, %p27_p1  ;;  %127 = sbr.rel (%p1964_p4) target bundleno = 69 (0x45), region = 24 }
   0xc   : > { %130 = sbr.rel (!%p29_p3) target bundleno = 69 (0x45), region = 28  ;;  %s132_s20 = sand.u32 (%p29_p3), 1, %s2401_s13  }
   0xd   : > { %s2076_s21 = smul.u32 (%p29_p3), 208, %s2405_s14 }
   0xe   : > { %s2357_s22 = smul.u32 (%p29_p3), 832, %s132_s20 }
   0xf   : > { %s2461_s25 = scalar_lea.vmem (%p29_p3), %s3312_s0, %s2076_s21 }
  0x10   : > { %v372_v0 = vld [vmem:[%s2461_s25] sm:$0xff] (%p29_p3)  ;;  %v374_v1 = vld [vmem:[%s2461_s25 + $0x8] sm:$0xff] (%p29_p3)  ;;  %v376_v2 = vld [vmem:[%s2461_s25 + $0x10] sm:$0xff] (%p29_p3)  ;;  %s2466_s26 = scalar_lea.vmem (%p29_p3), [#allocation2], %s2357_s22 }
  0x11   : > { %373 = vst [vmem:[%s2466_s26] sm:$0xff] %v372_v0  ;;  %375 = vst [vmem:[%s2466_s26 + $0x8] sm:$0xff] %v374_v1  ;;  %v378_v3 = vld [vmem:[%s2461_s25 + $0x18] sm:$0xff]  ;;  %v380_v4 = vld [vmem:[%s2461_s25 + $0x20] sm:$0xff] }
  0x12   : > { %377 = vst [vmem:[%s2466_s26 + $0x10] sm:$0xff] %v376_v2  ;;  %v382_v5 = vld [vmem:[%s2461_s25 + $0x28] sm:$0xff]  ;;  %379 = vst [vmem:[%s2466_s26 + $0x18] sm:$0xff] %v378_v3  ;;  %v384_v6 = vld [vmem:[%s2461_s25 + $0x30] sm:$0xff] }
  0x13   : > { %381 = vst [vmem:[%s2466_s26 + $0x20] sm:$0xff] %v380_v4  ;;  %383 = vst [vmem:[%s2466_s26 + $0x28] sm:$0xff] %v382_v5  ;;  %v386_v7 = vld [vmem:[%s2461_s25 + $0x38] sm:$0xff]  ;;  %v388_v8 = vld [vmem:[%s2461_s25 + $0x40] sm:$0xff] }
  0x14   : > { %385 = vst [vmem:[%s2466_s26 + $0x30] sm:$0xff] %v384_v6  ;;  %387 = vst [vmem:[%s2466_s26 + $0x38] sm:$0xff] %v386_v7  ;;  %v390_v9 = vld [vmem:[%s2461_s25 + $0x48] sm:$0xff]  ;;  %v392_v10 = vld [vmem:[%s2461_s25 + $0x50] sm:$0xff] }
  0x15   : > { %389 = vst [vmem:[%s2466_s26 + $0x40] sm:$0xff] %v388_v8  ;;  %v394_v11 = vld [vmem:[%s2461_s25 + $0x58] sm:$0xff]  ;;  %391 = vst [vmem:[%s2466_s26 + $0x48] sm:$0xff] %v390_v9  ;;  %v396_v12 = vld [vmem:[%s2461_s25 + $0x60] sm:$0xff] }
  0x16   : > { %393 = vst [vmem:[%s2466_s26 + $0x50] sm:$0xff] %v392_v10  ;;  %395 = vst [vmem:[%s2466_s26 + $0x58] sm:$0xff] %v394_v11  ;;  %v398_v13 = vld [vmem:[%s2461_s25 + $0x68] sm:$0xff]  ;;  %v400_v14 = vld [vmem:[%s2461_s25 + $0x70] sm:$0xff] }
  0x17   : > { %397 = vst [vmem:[%s2466_s26 + $0x60] sm:$0xff] %v396_v12  ;;  %399 = vst [vmem:[%s2466_s26 + $0x68] sm:$0xff] %v398_v13  ;;  %v402_v15 = vld [vmem:[%s2461_s25 + $0x78] sm:$0xff]  ;;  %v404_v16 = vld [vmem:[%s2461_s25 + $0x80] sm:$0xff] }
  0x18   : > { %401 = vst [vmem:[%s2466_s26 + $0x70] sm:$0xff] %v400_v14  ;;  %v406_v17 = vld [vmem:[%s2461_s25 + $0x88] sm:$0xff]  ;;  %403 = vst [vmem:[%s2466_s26 + $0x78] sm:$0xff] %v402_v15  ;;  %v408_v18 = vld [vmem:[%s2461_s25 + $0x90] sm:$0xff] }
  0x19   : > { %405 = vst [vmem:[%s2466_s26 + $0x80] sm:$0xff] %v404_v16  ;;  %407 = vst [vmem:[%s2466_s26 + $0x88] sm:$0xff] %v406_v17  ;;  %v410_v19 = vld [vmem:[%s2461_s25 + $0x98] sm:$0xff]  ;;  %v412_v20 = vld [vmem:[%s2461_s25 + $0xa0] sm:$0xff] }
  0x1a   : > { %409 = vst [vmem:[%s2466_s26 + $0x90] sm:$0xff] %v408_v18  ;;  %411 = vst [vmem:[%s2466_s26 + $0x98] sm:$0xff] %v410_v19  ;;  %v414_v21 = vld [vmem:[%s2461_s25 + $0xa8] sm:$0xff]  ;;  %v416_v22 = vld [vmem:[%s2461_s25 + $0xb0] sm:$0xff] }
  0x1b   : > { %413 = vst [vmem:[%s2466_s26 + $0xa0] sm:$0xff] %v412_v20  ;;  %v418_v23 = vld [vmem:[%s2461_s25 + $0xb8] sm:$0xff]  ;;  %415 = vst [vmem:[%s2466_s26 + $0xa8] sm:$0xff] %v414_v21  ;;  %v420_v24 = vld [vmem:[%s2461_s25 + $0xc0] sm:$0xff] }
  0x1c   : > { %417 = vst [vmem:[%s2466_s26 + $0xb0] sm:$0xff] %v416_v22  ;;  %419 = vst [vmem:[%s2466_s26 + $0xb8] sm:$0xff] %v418_v23  ;;  %v422_v25 = vld [vmem:[%s2461_s25 + $0xc8] sm:$0xff]  ;;  %v424_v26 = vld [vmem:[%s2461_s25 + $0x1a0] sm:$0xff] }
  0x1d   : > { %421 = vst [vmem:[%s2466_s26 + $0xc0] sm:$0xff] %v420_v24  ;;  %423 = vst [vmem:[%s2466_s26 + $0xc8] sm:$0xff] %v422_v25  ;;  %v426_v27 = vld [vmem:[%s2461_s25 + $0x1a8] sm:$0xff]  ;;  %v428_v28 = vld [vmem:[%s2461_s25 + $0x1b0] sm:$0xff] }
  0x1e   : > { %425 = vst [vmem:[%s2466_s26 + $0xd0] sm:$0xff] %v424_v26  ;;  %v430_v29 = vld [vmem:[%s2461_s25 + $0x1b8] sm:$0xff]  ;;  %427 = vst [vmem:[%s2466_s26 + $0xd8] sm:$0xff] %v426_v27  ;;  %v432_v30 = vld [vmem:[%s2461_s25 + $0x1c0] sm:$0xff] }
  0x1f   : > { %429 = vst [vmem:[%s2466_s26 + $0xe0] sm:$0xff] %v428_v28  ;;  %431 = vst [vmem:[%s2466_s26 + $0xe8] sm:$0xff] %v430_v29  ;;  %v434_v31 = vld [vmem:[%s2461_s25 + $0x1c8] sm:$0xff]  ;;  %v436_v32 = vld [vmem:[%s2461_s25 + $0x1d0] sm:$0xff] }
  0x20   : > { %433 = vst [vmem:[%s2466_s26 + $0xf0] sm:$0xff] %v432_v30  ;;  %435 = vst [vmem:[%s2466_s26 + $0xf8] sm:$0xff] %v434_v31  ;;  %v438_v33 = vld [vmem:[%s2461_s25 + $0x1d8] sm:$0xff]  ;;  %v440_v34 = vld [vmem:[%s2461_s25 + $0x1e0] sm:$0xff] }
  0x21   : > { %437 = vst [vmem:[%s2466_s26 + $0x100] sm:$0xff] %v436_v32  ;;  %v442_v35 = vld [vmem:[%s2461_s25 + $0x1e8] sm:$0xff]  ;;  %439 = vst [vmem:[%s2466_s26 + $0x108] sm:$0xff] %v438_v33  ;;  %v444_v36 = vld [vmem:[%s2461_s25 + $0x1f0] sm:$0xff] }
  0x22   : > { %441 = vst [vmem:[%s2466_s26 + $0x110] sm:$0xff] %v440_v34  ;;  %443 = vst [vmem:[%s2466_s26 + $0x118] sm:$0xff] %v442_v35  ;;  %v446_v37 = vld [vmem:[%s2461_s25 + $0x1f8] sm:$0xff]  ;;  %v448_v38 = vld [vmem:[%s2461_s25 + $0x200] sm:$0xff] }
  0x23   : > { %445 = vst [vmem:[%s2466_s26 + $0x120] sm:$0xff] %v444_v36  ;;  %447 = vst [vmem:[%s2466_s26 + $0x128] sm:$0xff] %v446_v37  ;;  %v450_v39 = vld [vmem:[%s2461_s25 + $0x208] sm:$0xff]  ;;  %v452_v40 = vld [vmem:[%s2461_s25 + $0x210] sm:$0xff] }
  0x24   : > { %449 = vst [vmem:[%s2466_s26 + $0x130] sm:$0xff] %v448_v38  ;;  %v454_v41 = vld [vmem:[%s2461_s25 + $0x218] sm:$0xff]  ;;  %451 = vst [vmem:[%s2466_s26 + $0x138] sm:$0xff] %v450_v39  ;;  %v456_v42 = vld [vmem:[%s2461_s25 + $0x220] sm:$0xff] }
  0x25   : > { %453 = vst [vmem:[%s2466_s26 + $0x140] sm:$0xff] %v452_v40  ;;  %455 = vst [vmem:[%s2466_s26 + $0x148] sm:$0xff] %v454_v41  ;;  %v458_v43 = vld [vmem:[%s2461_s25 + $0x228] sm:$0xff]  ;;  %v460_v44 = vld [vmem:[%s2461_s25 + $0x230] sm:$0xff] }
  0x26   : > { %457 = vst [vmem:[%s2466_s26 + $0x150] sm:$0xff] %v456_v42  ;;  %459 = vst [vmem:[%s2466_s26 + $0x158] sm:$0xff] %v458_v43  ;;  %v462_v45 = vld [vmem:[%s2461_s25 + $0x238] sm:$0xff]  ;;  %v464_v46 = vld [vmem:[%s2461_s25 + $0x240] sm:$0xff] }
  0x27   : > { %461 = vst [vmem:[%s2466_s26 + $0x160] sm:$0xff] %v460_v44  ;;  %v466_v47 = vld [vmem:[%s2461_s25 + $0x248] sm:$0xff]  ;;  %463 = vst [vmem:[%s2466_s26 + $0x168] sm:$0xff] %v462_v45  ;;  %v468_v48 = vld [vmem:[%s2461_s25 + $0x250] sm:$0xff] }
  0x28   : > { %465 = vst [vmem:[%s2466_s26 + $0x170] sm:$0xff] %v464_v46  ;;  %467 = vst [vmem:[%s2466_s26 + $0x178] sm:$0xff] %v466_v47  ;;  %v470_v49 = vld [vmem:[%s2461_s25 + $0x258] sm:$0xff]  ;;  %v472_v50 = vld [vmem:[%s2461_s25 + $0x260] sm:$0xff] }
  0x29   : > { %469 = vst [vmem:[%s2466_s26 + $0x180] sm:$0xff] %v468_v48  ;;  %471 = vst [vmem:[%s2466_s26 + $0x188] sm:$0xff] %v470_v49  ;;  %v474_v51 = vld [vmem:[%s2461_s25 + $0x268] sm:$0xff]  ;;  %v476_v52 = vld [vmem:[%s2461_s25 + $0x340] sm:$0xff] }
  0x2a   : > { %473 = vst [vmem:[%s2466_s26 + $0x190] sm:$0xff] %v472_v50  ;;  %v478_v53 = vld [vmem:[%s2461_s25 + $0x348] sm:$0xff]  ;;  %475 = vst [vmem:[%s2466_s26 + $0x198] sm:$0xff] %v474_v51  ;;  %v480_v54 = vld [vmem:[%s2461_s25 + $0x350] sm:$0xff] }
  0x2b   : > { %477 = vst [vmem:[%s2466_s26 + $0x1a0] sm:$0xff] %v476_v52  ;;  %479 = vst [vmem:[%s2466_s26 + $0x1a8] sm:$0xff] %v478_v53  ;;  %v482_v55 = vld [vmem:[%s2461_s25 + $0x358] sm:$0xff]  ;;  %v484_v56 = vld [vmem:[%s2461_s25 + $0x360] sm:$0xff] }
  0x2c   : > { %481 = vst [vmem:[%s2466_s26 + $0x1b0] sm:$0xff] %v480_v54  ;;  %483 = vst [vmem:[%s2466_s26 + $0x1b8] sm:$0xff] %v482_v55  ;;  %v486_v57 = vld [vmem:[%s2461_s25 + $0x368] sm:$0xff]  ;;  %v488_v58 = vld [vmem:[%s2461_s25 + $0x370] sm:$0xff] }
  0x2d   : > { %485 = vst [vmem:[%s2466_s26 + $0x1c0] sm:$0xff] %v484_v56  ;;  %v490_v59 = vld [vmem:[%s2461_s25 + $0x378] sm:$0xff]  ;;  %487 = vst [vmem:[%s2466_s26 + $0x1c8] sm:$0xff] %v486_v57  ;;  %v492_v60 = vld [vmem:[%s2461_s25 + $0x380] sm:$0xff] }
  0x2e   : > { %489 = vst [vmem:[%s2466_s26 + $0x1d0] sm:$0xff] %v488_v58  ;;  %491 = vst [vmem:[%s2466_s26 + $0x1d8] sm:$0xff] %v490_v59  ;;  %v494_v61 = vld [vmem:[%s2461_s25 + $0x388] sm:$0xff]  ;;  %v496_v62 = vld [vmem:[%s2461_s25 + $0x390] sm:$0xff] }
  0x2f   : > { %493 = vst [vmem:[%s2466_s26 + $0x1e0] sm:$0xff] %v492_v60  ;;  %495 = vst [vmem:[%s2466_s26 + $0x1e8] sm:$0xff] %v494_v61  ;;  %v498_v63 = vld [vmem:[%s2461_s25 + $0x398] sm:$0xff]  ;;  %v500_v0 = vld [vmem:[%s2461_s25 + $0x3a0] sm:$0xff] }
  0x30   : > { %497 = vst [vmem:[%s2466_s26 + $0x1f0] sm:$0xff] %v496_v62  ;;  %v502_v1 = vld [vmem:[%s2461_s25 + $0x3a8] sm:$0xff]  ;;  %499 = vst [vmem:[%s2466_s26 + $0x1f8] sm:$0xff] %v498_v63  ;;  %v504_v2 = vld [vmem:[%s2461_s25 + $0x3b0] sm:$0xff] }
  0x31   : > { %501 = vst [vmem:[%s2466_s26 + $0x200] sm:$0xff] %v500_v0  ;;  %503 = vst [vmem:[%s2466_s26 + $0x208] sm:$0xff] %v502_v1  ;;  %v506_v3 = vld [vmem:[%s2461_s25 + $0x3b8] sm:$0xff]  ;;  %v508_v4 = vld [vmem:[%s2461_s25 + $0x3c0] sm:$0xff] }
  0x32   : > { %505 = vst [vmem:[%s2466_s26 + $0x210] sm:$0xff] %v504_v2  ;;  %507 = vst [vmem:[%s2466_s26 + $0x218] sm:$0xff] %v506_v3  ;;  %v510_v5 = vld [vmem:[%s2461_s25 + $0x3c8] sm:$0xff]  ;;  %v512_v6 = vld [vmem:[%s2461_s25 + $0x3d0] sm:$0xff] }
  0x33   : > { %509 = vst [vmem:[%s2466_s26 + $0x220] sm:$0xff] %v508_v4  ;;  %v514_v7 = vld [vmem:[%s2461_s25 + $0x3d8] sm:$0xff]  ;;  %511 = vst [vmem:[%s2466_s26 + $0x228] sm:$0xff] %v510_v5  ;;  %v516_v8 = vld [vmem:[%s2461_s25 + $0x3e0] sm:$0xff] }
  0x34   : > { %513 = vst [vmem:[%s2466_s26 + $0x230] sm:$0xff] %v512_v6  ;;  %515 = vst [vmem:[%s2466_s26 + $0x238] sm:$0xff] %v514_v7  ;;  %v518_v9 = vld [vmem:[%s2461_s25 + $0x3e8] sm:$0xff]  ;;  %v520_v10 = vld [vmem:[%s2461_s25 + $0x3f0] sm:$0xff] }
  0x35   : > { %517 = vst [vmem:[%s2466_s26 + $0x240] sm:$0xff] %v516_v8  ;;  %519 = vst [vmem:[%s2466_s26 + $0x248] sm:$0xff] %v518_v9  ;;  %v522_v11 = vld [vmem:[%s2461_s25 + $0x3f8] sm:$0xff]  ;;  %v524_v12 = vld [vmem:[%s2461_s25 + $0x400] sm:$0xff] }
  0x36   : > { %521 = vst [vmem:[%s2466_s26 + $0x250] sm:$0xff] %v520_v10  ;;  %v526_v13 = vld [vmem:[%s2461_s25 + $0x408] sm:$0xff]  ;;  %523 = vst [vmem:[%s2466_s26 + $0x258] sm:$0xff] %v522_v11  ;;  %v528_v14 = vld [vmem:[%s2461_s25 + $0x4e0] sm:$0xff] }
  0x37   : > { %525 = vst [vmem:[%s2466_s26 + $0x260] sm:$0xff] %v524_v12  ;;  %527 = vst [vmem:[%s2466_s26 + $0x268] sm:$0xff] %v526_v13  ;;  %v530_v15 = vld [vmem:[%s2461_s25 + $0x4e8] sm:$0xff]  ;;  %v532_v16 = vld [vmem:[%s2461_s25 + $0x4f0] sm:$0xff] }
  0x38   : > { %529 = vst [vmem:[%s2466_s26 + $0x270] sm:$0xff] %v528_v14  ;;  %531 = vst [vmem:[%s2466_s26 + $0x278] sm:$0xff] %v530_v15  ;;  %v534_v17 = vld [vmem:[%s2461_s25 + $0x4f8] sm:$0xff]  ;;  %v536_v18 = vld [vmem:[%s2461_s25 + $0x500] sm:$0xff] }
  0x39   : > { %533 = vst [vmem:[%s2466_s26 + $0x280] sm:$0xff] %v532_v16  ;;  %v538_v19 = vld [vmem:[%s2461_s25 + $0x508] sm:$0xff]  ;;  %535 = vst [vmem:[%s2466_s26 + $0x288] sm:$0xff] %v534_v17  ;;  %v540_v20 = vld [vmem:[%s2461_s25 + $0x510] sm:$0xff] }
  0x3a   : > { %537 = vst [vmem:[%s2466_s26 + $0x290] sm:$0xff] %v536_v18  ;;  %539 = vst [vmem:[%s2466_s26 + $0x298] sm:$0xff] %v538_v19  ;;  %v542_v21 = vld [vmem:[%s2461_s25 + $0x518] sm:$0xff]  ;;  %v544_v22 = vld [vmem:[%s2461_s25 + $0x520] sm:$0xff] }
  0x3b   : > { %541 = vst [vmem:[%s2466_s26 + $0x2a0] sm:$0xff] %v540_v20  ;;  %543 = vst [vmem:[%s2466_s26 + $0x2a8] sm:$0xff] %v542_v21  ;;  %v546_v23 = vld [vmem:[%s2461_s25 + $0x528] sm:$0xff]  ;;  %v548_v24 = vld [vmem:[%s2461_s25 + $0x530] sm:$0xff] }
  0x3c   : > { %545 = vst [vmem:[%s2466_s26 + $0x2b0] sm:$0xff] %v544_v22  ;;  %v550_v25 = vld [vmem:[%s2461_s25 + $0x538] sm:$0xff]  ;;  %547 = vst [vmem:[%s2466_s26 + $0x2b8] sm:$0xff] %v546_v23  ;;  %v552_v26 = vld [vmem:[%s2461_s25 + $0x540] sm:$0xff] }
  0x3d   : > { %549 = vst [vmem:[%s2466_s26 + $0x2c0] sm:$0xff] %v548_v24  ;;  %551 = vst [vmem:[%s2466_s26 + $0x2c8] sm:$0xff] %v550_v25  ;;  %v554_v27 = vld [vmem:[%s2461_s25 + $0x548] sm:$0xff]  ;;  %v556_v28 = vld [vmem:[%s2461_s25 + $0x550] sm:$0xff] }
  0x3e   : > { %553 = vst [vmem:[%s2466_s26 + $0x2d0] sm:$0xff] %v552_v26  ;;  %555 = vst [vmem:[%s2466_s26 + $0x2d8] sm:$0xff] %v554_v27  ;;  %v558_v29 = vld [vmem:[%s2461_s25 + $0x558] sm:$0xff]  ;;  %v560_v30 = vld [vmem:[%s2461_s25 + $0x560] sm:$0xff] }
  0x3f   : > { %557 = vst [vmem:[%s2466_s26 + $0x2e0] sm:$0xff] %v556_v28  ;;  %v562_v31 = vld [vmem:[%s2461_s25 + $0x568] sm:$0xff]  ;;  %559 = vst [vmem:[%s2466_s26 + $0x2e8] sm:$0xff] %v558_v29  ;;  %v564_v32 = vld [vmem:[%s2461_s25 + $0x570] sm:$0xff] }
  0x40   : > { %561 = vst [vmem:[%s2466_s26 + $0x2f0] sm:$0xff] %v560_v30  ;;  %563 = vst [vmem:[%s2466_s26 + $0x2f8] sm:$0xff] %v562_v31  ;;  %v566_v33 = vld [vmem:[%s2461_s25 + $0x578] sm:$0xff]  ;;  %v568_v34 = vld [vmem:[%s2461_s25 + $0x580] sm:$0xff] }
  0x41   : > { %565 = vst [vmem:[%s2466_s26 + $0x300] sm:$0xff] %v564_v32  ;;  %567 = vst [vmem:[%s2466_s26 + $0x308] sm:$0xff] %v566_v33  ;;  %v570_v35 = vld [vmem:[%s2461_s25 + $0x588] sm:$0xff]  ;;  %v572_v36 = vld [vmem:[%s2461_s25 + $0x590] sm:$0xff] }
  0x42   : > { %569 = vst [vmem:[%s2466_s26 + $0x310] sm:$0xff] %v568_v34  ;;  %v574_v37 = vld [vmem:[%s2461_s25 + $0x598] sm:$0xff]  ;;  %571 = vst [vmem:[%s2466_s26 + $0x318] sm:$0xff] %v570_v35  ;;  %v576_v38 = vld [vmem:[%s2461_s25 + $0x5a0] sm:$0xff] }
  0x43   : > { %573 = vst [vmem:[%s2466_s26 + $0x320] sm:$0xff] %v572_v36  ;;  %575 = vst [vmem:[%s2466_s26 + $0x328] sm:$0xff] %v574_v37  ;;  %v578_v39 = vld [vmem:[%s2461_s25 + $0x5a8] sm:$0xff] }
  0x44   : > { %577 = vst [vmem:[%s2466_s26 + $0x330] sm:$0xff] %v576_v38  ;;  %579 = vst [vmem:[%s2466_s26 + $0x338] sm:$0xff] %v578_v39 }
  0x45 PF: > { %p1966_p5 = scmp.ge.s32.totalorder %s2405_s14, 1  ;;  %p584_p6 = scmp.lt.s32.totalorder %s2405_s14, 3 }
  0x47   : > { %p585_p7 = pnand %p1966_p5, %p584_p6 }
  0x49   : > { %588 = sbr.rel (%p585_p7) target bundleno = 394 (0x18a), region = 66 }
  0x4e   : > { %v728_v40 = vld [vmem:[%s3313_s1 + $0x18] sm:$0x1]  ;;  %vm1042_vm0 = vcmask 1040384   ;;  %v727_v41 = vld [vmem:[%s3313_s1 + $0x10] sm:$0xff]  ;;  %s591_s4 = sand.u32 1, %s2397_s12   ;;  %v726_v42 = vld [vmem:[%s3313_s1 + $0x8] sm:$0xff] }
  0x4f   : > { %2185 = vmatprep.subr.msk.mxu0 %vm1042_vm0, %v728_v40  ;;  %2349 = vmatprep.subr.msk.mxu1 %vm1042_vm0, %v728_v40  ;;  %s2358_s5 = smul.u32 832, %s591_s4  ;;  %v725_v43 = vld [vmem:[%s3313_s1] sm:$0xff]  ;;  %vm729_vm1 = vcmask 203776   ;;  %vm1631_vm2 = vcmask 48128  }
  0x50   : > { %2186 = vmatpush3.msk.msra.mxu0 %vm1042_vm0, %v728_v40  ;;  %2353 = vmatpush3.msk.msra.mxu1 %vm1042_vm0, %v728_v40  ;;  %s2952_s11 = smul.u32 26, %s1961_s15 }
  0x51   : > { %2187 = vmatprep.subr.mxu0 %v727_v41  ;;  %2350 = vmatprep.subr.mxu1 %v727_v41  ;;  %s2688_s10 = scalar_lea.vmem [#allocation2], %s2358_s5 }
  0x52   : > { %2188 = vmatpush3.msra.mxu0 %v727_v41  ;;  %2354 = vmatpush3.msra.mxu1 %v727_v41  ;;  %v621_v44 = vld [vmem:[%s2688_s10] sm:$0xff]  ;;  %v622_v45 = vld [vmem:[%s2688_s10 + $0x8] sm:$0xff]  ;;  %v623_v47 = vld [vmem:[%s2688_s10 + $0x10] sm:$0xff]  ;;  %p616_p8 = scmp.lt.s32.totalorder %s2952_s11, 51 }
  0x53   : > { %2189 = vmatprep.subr.mxu0 %v726_v42  ;;  %2351 = vmatprep.subr.mxu1 %v726_v42  ;;  %v673_v46 = vld [vmem:[%s2688_s10 + $0x1a0] sm:$0xff]  ;;  %v674_v48 = vld [vmem:[%s2688_s10 + $0x1a8] sm:$0xff]  ;;  %v675_v49 = vld [vmem:[%s2688_s10 + $0x1b0] sm:$0xff] }
  0x54   : > { %2190 = vmatpush3.msra.mxu0 %v726_v42  ;;  %2355 = vmatpush3.msra.mxu1 %v726_v42  ;;  %v624_v50 = vld [vmem:[%s2688_s10 + $0x18] sm:$0xff]  ;;  %v625_v51 = vld [vmem:[%s2688_s10 + $0x20] sm:$0xff]  ;;  %v626_v54 = vld [vmem:[%s2688_s10 + $0x28] sm:$0xff]  ;;  %s3326_s11 = smov (!%p616_p8, %s2952_s11), 51 }
  0x55   : > { %2191 = vmatprep.subr.mxu0 %v725_v43  ;;  %2193 = vmatprep.mubr.msk.f32.mxu0 %vm729_vm1, %v621_v44  ;;  %v676_v52 = vld [vmem:[%s2688_s10 + $0x1b8] sm:$0xff]  ;;  %v677_v53 = vld [vmem:[%s2688_s10 + $0x1c0] sm:$0xff]  ;;  %v627_v55 = vld [vmem:[%s2688_s10 + $0x30] sm:$0xff]  ;;  %s1967_s15 = sshll.u32 %s3326_s11, 3 }
  0x56   : > { %2192 = vmatpush3.msra.mxu0 %v725_v43  ;;  %2352 = vmatprep.subr.mxu1 %v725_v43  ;;  %v678_v56 = vld [vmem:[%s2688_s10 + $0x1c8] sm:$0xff]  ;;  %v679_v57 = vld [vmem:[%s2688_s10 + $0x1d0] sm:$0xff]  ;;  %v628_v58 = vld [vmem:[%s2688_s10 + $0x38] sm:$0xff]  ;;  %s3077_s20 = scalar_lea.vmem %s3315_s3, %s1967_s15 }
  0x57   : > { %2194 = vmatmul.mubr.msk.f32.vlgmr.msra.gmra.mxu0 %vm729_vm1, %v622_v45  ;;  %2356 = vmatpush3.msra.mxu1 %v725_v43  ;;  %v629_v59 = vld [vmem:[%s2688_s10 + $0x40] sm:$0xff]  ;;  %v680_v60 = vld [vmem:[%s2688_s10 + $0x1d8] sm:$0xff]  ;;  %v630_v62 = vld [vmem:[%s2688_s10 + $0x48] sm:$0xff] }
  0x58   : > { %2271 = vmatprep.mubr.msk.f32.mxu1 %vm729_vm1, %v673_v46  ;;  %2196 = vmatprep.mubr.msk.f32.mxu0 %vm729_vm1, %v623_v47  ;;  %v681_v61 = vld [vmem:[%s2688_s10 + $0x1e0] sm:$0xff]  ;;  %v631_v63 = vld [vmem:[%s2688_s10 + $0x50] sm:$0xff]  ;;  %v682_v0 = vld [vmem:[%s2688_s10 + $0x1e8] sm:$0xff] }
  0x59   : > { %2272 = vmatmul.mubr.msk.f32.vlgmr.msra.gmra.mxu1 %vm729_vm1, %v674_v48  ;;  %v683_v1 = vld [vmem:[%s2688_s10 + $0x1f0] sm:$0xff]  ;;  %v632_v2 = vld [vmem:[%s2688_s10 + $0x58] sm:$0xff]  ;;  %v633_v3 = vld [vmem:[%s2688_s10 + $0x60] sm:$0xff] }
  0x5a   : > { %2274 = vmatprep.mubr.msk.f32.mxu1 %vm729_vm1, %v675_v49  ;;  %v684_v4 = vld [vmem:[%s2688_s10 + $0x1f8] sm:$0xff]  ;;  %v685_v5 = vld [vmem:[%s2688_s10 + $0x200] sm:$0xff]  ;;  %v634_v6 = vld [vmem:[%s2688_s10 + $0x68] sm:$0xff] }
  0x5b   : > { %2197 = vmatmul.mubr.msk.f32.gmra.mxu0 %vm729_vm1, %v624_v50  ;;  %v635_v7 = vld [vmem:[%s2688_s10 + $0x70] sm:$0xff]  ;;  %v686_v8 = vld [vmem:[%s2688_s10 + $0x208] sm:$0xff]  ;;  %v636_v10 = vld [vmem:[%s2688_s10 + $0x78] sm:$0xff] }
  0x5c   : > { %2199 = vmatprep.mubr.msk.f32.mxu0 %vm729_vm1, %v625_v51  ;;  %v687_v9 = vld [vmem:[%s2688_s10 + $0x210] sm:$0xff]  ;;  %v637_v11 = vld [vmem:[%s2688_s10 + $0x80] sm:$0xff]  ;;  %v688_v12 = vld [vmem:[%s2688_s10 + $0x218] sm:$0xff] }
  0x5d   : > { %2275 = vmatmul.mubr.msk.f32.gmra.mxu1 %vm729_vm1, %v676_v52  ;;  %v689_v13 = vld [vmem:[%s2688_s10 + $0x220] sm:$0xff]  ;;  %v638_v14 = vld [vmem:[%s2688_s10 + $0x88] sm:$0xff]  ;;  %v639_v15 = vld [vmem:[%s2688_s10 + $0x90] sm:$0xff] }
  0x5e   : > { %2277 = vmatprep.mubr.msk.f32.mxu1 %vm729_vm1, %v677_v53  ;;  %v690_v16 = vld [vmem:[%s2688_s10 + $0x228] sm:$0xff]  ;;  %v691_v17 = vld [vmem:[%s2688_s10 + $0x230] sm:$0xff]  ;;  %v640_v18 = vld [vmem:[%s2688_s10 + $0x98] sm:$0xff] }
  0x5f   : > { %2200 = vmatmul.mubr.msk.f32.gmra.mxu0 %vm729_vm1, %v626_v54  ;;  %v641_v19 = vld [vmem:[%s2688_s10 + $0xa0] sm:$0xff]  ;;  %v692_v20 = vld [vmem:[%s2688_s10 + $0x238] sm:$0xff]  ;;  %v642_v22 = vld [vmem:[%s2688_s10 + $0xa8] sm:$0xff] }
  0x60   : > { %2202 = vmatprep.mubr.msk.f32.mxu0 %vm729_vm1, %v627_v55  ;;  %v693_v21 = vld [vmem:[%s2688_s10 + $0x240] sm:$0xff]  ;;  %v643_v23 = vld [vmem:[%s2688_s10 + $0xb0] sm:$0xff]  ;;  %v694_v24 = vld [vmem:[%s2688_s10 + $0x248] sm:$0xff] }
  0x61   : > { %2278 = vmatmul.mubr.msk.f32.gmra.mxu1 %vm729_vm1, %v678_v56  ;;  %v695_v25 = vld [vmem:[%s2688_s10 + $0x250] sm:$0xff]  ;;  %v644_v26 = vld [vmem:[%s2688_s10 + $0xb8] sm:$0xff]  ;;  %v645_v27 = vld [vmem:[%s2688_s10 + $0xc0] sm:$0xff] }
  0x62   : > { %2280 = vmatprep.mubr.msk.f32.mxu1 %vm729_vm1, %v679_v57  ;;  %v696_v28 = vld [vmem:[%s2688_s10 + $0x258] sm:$0xff]  ;;  %v697_v29 = vld [vmem:[%s2688_s10 + $0x260] sm:$0xff]  ;;  %v646_v30 = vld [vmem:[%s2688_s10 + $0xc8] sm:$0xff] }
  0x63   : > { %2203 = vmatmul.mubr.msk.f32.gmra.mxu0 %vm729_vm1, %v628_v58  ;;  %v647_v31 = vld [vmem:[%s2688_s10 + $0xd0] sm:$0xff]  ;;  %v698_v32 = vld [vmem:[%s2688_s10 + $0x268] sm:$0xff]  ;;  %v648_v34 = vld [vmem:[%s2688_s10 + $0xd8] sm:$0xff] }
  0x64   : > { %2205 = vmatprep.mubr.msk.f32.mxu0 %vm729_vm1, %v629_v59  ;;  %v699_v33 = vld [vmem:[%s2688_s10 + $0x270] sm:$0xff]  ;;  %v649_v35 = vld [vmem:[%s2688_s10 + $0xe0] sm:$0xff]  ;;  %v700_v36 = vld [vmem:[%s2688_s10 + $0x278] sm:$0xff] }
  0x65   : > { %2281 = vmatmul.mubr.msk.f32.gmra.mxu1 %vm729_vm1, %v680_v60  ;;  %v701_v37 = vld [vmem:[%s2688_s10 + $0x280] sm:$0xff]  ;;  %v650_v38 = vld [vmem:[%s2688_s10 + $0xe8] sm:$0xff]  ;;  %v651_v39 = vld [vmem:[%s2688_s10 + $0xf0] sm:$0xff] }
  0x66   : > { %2283 = vmatprep.mubr.msk.f32.mxu1 %vm729_vm1, %v681_v61  ;;  %v702_v40 = vld [vmem:[%s2688_s10 + $0x288] sm:$0xff]  ;;  %v703_v41 = vld [vmem:[%s2688_s10 + $0x290] sm:$0xff]  ;;  %v652_v42 = vld [vmem:[%s2688_s10 + $0xf8] sm:$0xff] }
  0x67   : > { %2206 = vmatmul.mubr.msk.f32.gmra.mxu0 %vm729_vm1, %v630_v62  ;;  %v653_v43 = vld [vmem:[%s2688_s10 + $0x100] sm:$0xff]  ;;  %v704_v44 = vld [vmem:[%s2688_s10 + $0x298] sm:$0xff]  ;;  %v654_v46 = vld [vmem:[%s2688_s10 + $0x108] sm:$0xff] }
  0x68   : > { %2208 = vmatprep.mubr.msk.f32.mxu0 %vm729_vm1, %v631_v63  ;;  %v705_v45 = vld [vmem:[%s2688_s10 + $0x2a0] sm:$0xff]  ;;  %v655_v47 = vld [vmem:[%s2688_s10 + $0x110] sm:$0xff]  ;;  %v706_v48 = vld [vmem:[%s2688_s10 + $0x2a8] sm:$0xff] }
  0x69   : > { %2284 = vmatmul.mubr.msk.f32.gmra.mxu1 %vm729_vm1, %v682_v0  ;;  %v707_v49 = vld [vmem:[%s2688_s10 + $0x2b0] sm:$0xff]  ;;  %v656_v50 = vld [vmem:[%s2688_s10 + $0x118] sm:$0xff]  ;;  %v657_v51 = vld [vmem:[%s2688_s10 + $0x120] sm:$0xff] }
  0x6a   : > { %2286 = vmatprep.mubr.msk.f32.mxu1 %vm729_vm1, %v683_v1  ;;  %v708_v52 = vld [vmem:[%s2688_s10 + $0x2b8] sm:$0xff]  ;;  %v709_v53 = vld [vmem:[%s2688_s10 + $0x2c0] sm:$0xff]  ;;  %v658_v54 = vld [vmem:[%s2688_s10 + $0x128] sm:$0xff] }
  0x6b   : > { %2209 = vmatmul.mubr.msk.f32.gmra.mxu0 %vm729_vm1, %v632_v2  ;;  %v659_v55 = vld [vmem:[%s2688_s10 + $0x130] sm:$0xff]  ;;  %v710_v56 = vld [vmem:[%s2688_s10 + $0x2c8] sm:$0xff]  ;;  %v660_v58 = vld [vmem:[%s2688_s10 + $0x138] sm:$0xff] }
  0x6c   : > { %2211 = vmatprep.mubr.msk.f32.mxu0 %vm729_vm1, %v633_v3  ;;  %v711_v57 = vld [vmem:[%s2688_s10 + $0x2d0] sm:$0xff]  ;;  %v661_v59 = vld [vmem:[%s2688_s10 + $0x140] sm:$0xff]  ;;  %v712_v60 = vld [vmem:[%s2688_s10 + $0x2d8] sm:$0xff] }
  0x6d   : > { %2287 = vmatmul.mubr.msk.f32.gmra.mxu1 %vm729_vm1, %v684_v4  ;;  %v713_v61 = vld [vmem:[%s2688_s10 + $0x2e0] sm:$0xff]  ;;  %v662_v62 = vld [vmem:[%s2688_s10 + $0x148] sm:$0xff]  ;;  %v663_v63 = vld [vmem:[%s2688_s10 + $0x150] sm:$0xff] }
  0x6e   : > { %2289 = vmatprep.mubr.msk.f32.mxu1 %vm729_vm1, %v685_v5  ;;  %v714_v0 = vld [vmem:[%s2688_s10 + $0x2e8] sm:$0xff]  ;;  %v715_v1 = vld [vmem:[%s2688_s10 + $0x2f0] sm:$0xff]  ;;  %v664_v2 = vld [vmem:[%s2688_s10 + $0x158] sm:$0xff] }
  0x6f   : > { %2212 = vmatmul.mubr.msk.f32.gmra.mxu0 %vm729_vm1, %v634_v6  ;;  %v665_v3 = vld [vmem:[%s2688_s10 + $0x160] sm:$0xff]  ;;  %v716_v4 = vld [vmem:[%s2688_s10 + $0x2f8] sm:$0xff]  ;;  %v666_v6 = vld [vmem:[%s2688_s10 + $0x168] sm:$0xff] }
  0x70   : > { %2214 = vmatprep.mubr.msk.f32.mxu0 %vm729_vm1, %v635_v7  ;;  %v717_v5 = vld [vmem:[%s2688_s10 + $0x300] sm:$0xff]  ;;  %v667_v7 = vld [vmem:[%s2688_s10 + $0x170] sm:$0xff] }
  0x71   : > { %2290 = vmatmul.mubr.msk.f32.gmra.mxu1 %vm729_vm1, %v686_v8  ;;  %v718_v8 = vld [vmem:[%s2688_s10 + $0x308] sm:$0xff] }
  0x72   : > { %2292 = vmatprep.mubr.msk.f32.mxu1 %vm729_vm1, %v687_v9  ;;  %v719_v9 = vld [vmem:[%s2688_s10 + $0x310] sm:$0xff] }
  0x73   : > { %2215 = vmatmul.mubr.msk.f32.gmra.mxu0 %vm729_vm1, %v636_v10  ;;  %v668_v10 = vld [vmem:[%s2688_s10 + $0x178] sm:$0xff] }
  0x74   : > { %2217 = vmatprep.mubr.msk.f32.mxu0 %vm729_vm1, %v637_v11  ;;  %v669_v11 = vld [vmem:[%s2688_s10 + $0x180] sm:$0xff] }
  0x75   : > { %2293 = vmatmul.mubr.msk.f32.gmra.mxu1 %vm729_vm1, %v688_v12  ;;  %v720_v12 = vld [vmem:[%s2688_s10 + $0x318] sm:$0xff] }
  0x76   : > { %2295 = vmatprep.mubr.msk.f32.mxu1 %vm729_vm1, %v689_v13  ;;  %v721_v13 = vld [vmem:[%s2688_s10 + $0x320] sm:$0xff] }
  0x77   : > { %2218 = vmatmul.mubr.msk.f32.gmra.mxu0 %vm729_vm1, %v638_v14  ;;  %v670_v14 = vld [vmem:[%s2688_s10 + $0x188] sm:$0xff] }
  0x78   : > { %2220 = vmatprep.mubr.msk.f32.mxu0 %vm729_vm1, %v639_v15  ;;  %v671_v15 = vld [vmem:[%s2688_s10 + $0x190] sm:$0xff] }
  0x79   : > { %2296 = vmatmul.mubr.msk.f32.gmra.mxu1 %vm729_vm1, %v690_v16  ;;  %v722_v16 = vld [vmem:[%s2688_s10 + $0x328] sm:$0xff] }
  0x7a   : > { %2298 = vmatprep.mubr.msk.f32.mxu1 %vm729_vm1, %v691_v17  ;;  %v723_v17 = vld [vmem:[%s2688_s10 + $0x330] sm:$0xff] }
  0x7b   : > { %2221 = vmatmul.mubr.msk.f32.gmra.mxu0 %vm729_vm1, %v640_v18  ;;  %v672_v18 = vld [vmem:[%s2688_s10 + $0x198] sm:$0xff] }
  0x7c   : > { %2223 = vmatprep.mubr.msk.f32.mxu0 %vm729_vm1, %v641_v19  ;;  %v724_v19 = vld [vmem:[%s2688_s10 + $0x338] sm:$0xff] }
  0x7d   : > { %2299 = vmatmul.mubr.msk.f32.gmra.mxu1 %vm729_vm1, %v692_v20 }
  0x7e   : > { %2301 = vmatprep.mubr.msk.f32.mxu1 %vm729_vm1, %v693_v21 }
  0x7f   : > { %2224 = vmatmul.mubr.msk.f32.gmra.mxu0 %vm729_vm1, %v642_v22 }
  0x80   : > { %2226 = vmatprep.mubr.msk.f32.mxu0 %vm729_vm1, %v643_v23 }
  0x81   : > { %2302 = vmatmul.mubr.msk.f32.gmra.mxu1 %vm729_vm1, %v694_v24 }
  0x82   : > { %2304 = vmatprep.mubr.msk.f32.mxu1 %vm729_vm1, %v695_v25 }
  0x83   : > { %2227 = vmatmul.mubr.msk.f32.gmra.mxu0 %vm729_vm1, %v644_v26 }
  0x84   : > { %2229 = vmatprep.mubr.msk.f32.mxu0 %vm729_vm1, %v645_v27 }
  0x85   : > { %2305 = vmatmul.mubr.msk.f32.gmra.mxu1 %vm729_vm1, %v696_v28 }
  0x86   : > { %2307 = vmatprep.mubr.msk.f32.mxu1 %vm729_vm1, %v697_v29 }
  0x87   : > { %2230 = vmatmul.mubr.msk.f32.gmra.mxu0 %vm729_vm1, %v646_v30 }
  0x88   : > { %2232 = vmatprep.mubr.msk.f32.mxu0 %vm729_vm1, %v647_v31 }
  0x89   : > { %2308 = vmatmul.mubr.msk.f32.gmra.mxu1 %vm729_vm1, %v698_v32 }
  0x8a   : > { %2310 = vmatprep.mubr.msk.f32.mxu1 %vm729_vm1, %v699_v33 }
  0x8b   : > { %2233 = vmatmul.mubr.msk.f32.gmra.mxu0 %vm729_vm1, %v648_v34 }
  0x8c   : > { %2235 = vmatprep.mubr.msk.f32.mxu0 %vm729_vm1, %v649_v35 }
  0x8d   : > { %2311 = vmatmul.mubr.msk.f32.gmra.mxu1 %vm729_vm1, %v700_v36 }
  0x8e   : > { %2313 = vmatprep.mubr.msk.f32.mxu1 %vm729_vm1, %v701_v37 }
  0x8f   : > { %2236 = vmatmul.mubr.msk.f32.gmra.mxu0 %vm729_vm1, %v650_v38 }
  0x90   : > { %2238 = vmatprep.mubr.msk.f32.mxu0 %vm729_vm1, %v651_v39 }
  0x91   : > { %2314 = vmatmul.mubr.msk.f32.gmra.mxu1 %vm729_vm1, %v702_v40 }
  0x92   : > { %2316 = vmatprep.mubr.msk.f32.mxu1 %vm729_vm1, %v703_v41 }
  0x93   : > { %2239 = vmatmul.mubr.msk.f32.gmra.mxu0 %vm729_vm1, %v652_v42 }
  0x94   : > { %2241 = vmatprep.mubr.msk.f32.mxu0 %vm729_vm1, %v653_v43 }
  0x95   : > { %2317 = vmatmul.mubr.msk.f32.gmra.mxu1 %vm729_vm1, %v704_v44 }
  0x96   : > { %2319 = vmatprep.mubr.msk.f32.mxu1 %vm729_vm1, %v705_v45 }
  0x97   : > { %2242 = vmatmul.mubr.msk.f32.gmra.mxu0 %vm729_vm1, %v654_v46 }
  0x98   : > { %2244 = vmatprep.mubr.msk.f32.mxu0 %vm729_vm1, %v655_v47 }
  0x99   : > { %2320 = vmatmul.mubr.msk.f32.gmra.mxu1 %vm729_vm1, %v706_v48 }
  0x9a   : > { %2322 = vmatprep.mubr.msk.f32.mxu1 %vm729_vm1, %v707_v49 }
  0x9b   : > { %2245 = vmatmul.mubr.msk.f32.gmra.mxu0 %vm729_vm1, %v656_v50 }
  0x9c   : > { %2247 = vmatprep.mubr.msk.f32.mxu0 %vm729_vm1, %v657_v51 }
  0x9d   : > { %2323 = vmatmul.mubr.msk.f32.gmra.mxu1 %vm729_vm1, %v708_v52 }
  0x9e   : > { %2325 = vmatprep.mubr.msk.f32.mxu1 %vm729_vm1, %v709_v53 }
  0x9f   : > { %2248 = vmatmul.mubr.msk.f32.gmra.mxu0 %vm729_vm1, %v658_v54 }
  0xa0   : > { %2250 = vmatprep.mubr.msk.f32.mxu0 %vm729_vm1, %v659_v55 }
  0xa1   : > { %2326 = vmatmul.mubr.msk.f32.gmra.mxu1 %vm729_vm1, %v710_v56 }
  0xa2   : > { %2328 = vmatprep.mubr.msk.f32.mxu1 %vm729_vm1, %v711_v57 }
  0xa3   : > { %2251 = vmatmul.mubr.msk.f32.gmra.mxu0 %vm729_vm1, %v660_v58 }
  0xa4   : > { %2253 = vmatprep.mubr.msk.f32.mxu0 %vm729_vm1, %v661_v59 }
  0xa5   : > { %2329 = vmatmul.mubr.msk.f32.gmra.mxu1 %vm729_vm1, %v712_v60 }
  0xa6   : > { %2331 = vmatprep.mubr.msk.f32.mxu1 %vm729_vm1, %v713_v61 }
  0xa7   : > { %2254 = vmatmul.mubr.msk.f32.gmra.mxu0 %vm729_vm1, %v662_v62 }
  0xa8   : > { %2256 = vmatprep.mubr.msk.f32.mxu0 %vm729_vm1, %v663_v63 }
  0xa9   : > { %2332 = vmatmul.mubr.msk.f32.gmra.mxu1 %vm729_vm1, %v714_v0 }
  0xaa   : > { %2334 = vmatprep.mubr.msk.f32.mxu1 %vm729_vm1, %v715_v1 }
  0xab   : > { %2257 = vmatmul.mubr.msk.f32.gmra.mxu0 %vm729_vm1, %v664_v2 }
  0xac   : > { %2259 = vmatprep.mubr.msk.f32.mxu0 %vm729_vm1, %v665_v3 }
  0xad   : > { %2335 = vmatmul.mubr.msk.f32.gmra.mxu1 %vm729_vm1, %v716_v4 }
  0xae   : > { %2337 = vmatprep.mubr.msk.f32.mxu1 %vm729_vm1, %v717_v5 }
  0xaf   : > { %2260 = vmatmul.mubr.msk.f32.gmra.mxu0 %vm729_vm1, %v666_v6 }
  0xb0   : > { %2262 = vmatprep.mubr.msk.f32.mxu0 %vm729_vm1, %v667_v7 }
  0xb1   : > { %2338 = vmatmul.mubr.msk.f32.gmra.mxu1 %vm729_vm1, %v718_v8 }
  0xb2   : > { %2340 = vmatprep.mubr.msk.f32.mxu1 %vm729_vm1, %v719_v9 }
  0xb3   : > { %2263 = vmatmul.mubr.msk.f32.gmra.mxu0 %vm729_vm1, %v668_v10 }
  0xb4   : > { %2265 = vmatprep.mubr.msk.f32.mxu0 %vm729_vm1, %v669_v11 }
  0xb5   : > { %2341 = vmatmul.mubr.msk.f32.gmra.mxu1 %vm729_vm1, %v720_v12 }
  0xb6   : > { %2343 = vmatprep.mubr.msk.f32.mxu1 %vm729_vm1, %v721_v13 }
  0xb7   : > { %2266 = vmatmul.mubr.msk.f32.gmra.mxu0 %vm729_vm1, %v670_v14 }
  0xb8   : > { %2268 = vmatprep.mubr.msk.f32.mxu0 %vm729_vm1, %v671_v15 }
  0xb9   : > { %2344 = vmatmul.mubr.msk.f32.gmra.mxu1 %vm729_vm1, %v722_v16 }
  0xba   : > { %2346 = vmatprep.mubr.msk.f32.mxu1 %vm729_vm1, %v723_v17 }
  0xbb   : > { %2269 = vmatmul.mubr.msk.f32.gmra.mxu0 %vm729_vm1, %v672_v18 }
  0xbd   : > { %2347 = vmatmul.mubr.msk.f32.gmra.mxu1 %vm729_vm1, %v724_v19 }
 0x117   : > { %v2195_v20 = vpop.f32.mrf.mxu0 }
 0x118   : > { %v1639_v5 = vsel %vm1631_vm2, %v2195_v20, -inf }
 0x119   : > { %v1112_v21 = vpop.f32.mrf.mxu0  ;;  %v2273_v22 = vpop.f32.mrf.mxu1 }
 0x11a   : > { %v1632_v6 = vsel %vm1631_vm2, %v1112_v21, -inf  ;;  %v1642_v7 = vsel %vm1631_vm2, %v2273_v22, -inf }
 0x11b   : > { %v2198_v23 = vpop.f32.mrf.mxu0  ;;  %v1372_v24 = vpop.f32.mrf.mxu1 }
 0x11c   : > { %v1653_v8 = vsel %vm1631_vm2, %v2198_v23, -inf  ;;  %v1635_v9 = vsel %vm1631_vm2, %v1372_v24, -inf }
 0x11d   : > { %v1122_v25 = vpop.f32.mrf.mxu0  ;;  %v2276_v26 = vpop.f32.mrf.mxu1 }
 0x11e   : > { %v2969_v12 = vsel %vm1631_vm2, %v1122_v25, -inf  ;;  %v1656_v13 = vsel %vm1631_vm2, %v2276_v26, -inf }
 0x11f   : > { %v2201_v27 = vpop.f32.mrf.mxu0  ;;  %v1382_v28 = vpop.f32.mrf.mxu1 }
 0x120   : > { %v2973_v14 = vsel %vm1631_vm2, %v2201_v27, -inf  ;;  %v1649_v15 = vsel %vm1631_vm2, %v1382_v28, -inf }
 0x121   : > { %v1132_v29 = vpop.f32.mrf.mxu0  ;;  %v2279_v30 = vpop.f32.mrf.mxu1 }
 0x122   : > { %v2977_v16 = vsel %vm1631_vm2, %v1132_v29, -inf  ;;  %v2980_v17 = vsel %vm1631_vm2, %v2279_v30, -inf }
 0x123   : > { %v2204_v31 = vpop.f32.mrf.mxu0  ;;  %v1392_v32 = vpop.f32.mrf.mxu1 }
 0x124   : > { %v2983_v18 = vsel %vm1631_vm2, %v2204_v31, -inf  ;;  %v2986_v19 = vsel %vm1631_vm2, %v1392_v32, -inf }
 0x125   : > { %v1142_v33 = vpop.f32.mrf.mxu0  ;;  %v2282_v34 = vpop.f32.mrf.mxu1 }
 0x126   : > { %v2991_v22 = vsel %vm1631_vm2, %v1142_v33, -inf  ;;  %v2994_v23 = vsel %vm1631_vm2, %v2282_v34, -inf }
 0x127   : > { %v2207_v35 = vpop.f32.mrf.mxu0  ;;  %v1402_v36 = vpop.f32.mrf.mxu1 }
 0x128   : > { %v2997_v24 = vsel %vm1631_vm2, %v2207_v35, -inf  ;;  %v3001_v26 = vsel %vm1631_vm2, %v1402_v36, -inf }
 0x129   : > { %v1152_v37 = vpop.f32.mrf.mxu0  ;;  %v2285_v38 = vpop.f32.mrf.mxu1 }
 0x12a   : > { %v3004_v27 = vsel %vm1631_vm2, %v1152_v37, -inf  ;;  %v3007_v28 = vsel %vm1631_vm2, %v2285_v38, -inf }
 0x12b   : > { %v2210_v39 = vpop.f32.mrf.mxu0  ;;  %v1412_v40 = vpop.f32.mrf.mxu1 }
 0x12c   : > { %v3015_v32 = vsel %vm1631_vm2, %v2210_v39, -inf  ;;  %v3018_v33 = vsel %vm1631_vm2, %v1412_v40, -inf }
 0x12d   : > { %v2898_v41 = vpop.f32.mrf.mxu0  ;;  %v2900_v42 = vpop.f32.mrf.mxu1 }
 0x12e   : > { %v3024_v36 = vsel %vm1631_vm2, %v2898_v41, -inf  ;;  %v3028_v37 = vsel %vm1631_vm2, %v2900_v42, -inf  ;;  %v3045_v42 = vld [vmem:[%s3314_s2] ss:$0 sm:$0xff] }
 0x12f   : > { %v2902_v43 = vpop.f32.mrf.mxu0  ;;  %v2904_v44 = vpop.f32.mrf.mxu1 }
 0x130   : > { %v3032_v40 = vsel %vm1631_vm2, %v2902_v43, -inf }
 0x131   : > { %v2906_v45 = vpop.f32.mrf.mxu0  ;;  %v2908_v46 = vpop.f32.mrf.mxu1 }
 0x132   : > { %v3040_v41 = vsel %vm1631_vm2, %v2906_v45, -inf }
 0x133   : > { %v2910_v47 = vpop.f32.mrf.mxu0  ;;  %v2912_v48 = vpop.f32.mrf.mxu1 }
 0x134   : > { %v3055_v45 = vsel %vm1631_vm2, %v2910_v47, -inf }
 0x135   : > { %v2914_v49 = vpop.f32.mrf.mxu0  ;;  %v2916_v50 = vpop.f32.mrf.mxu1 }
 0x136   : > { %v3068_v47 = vsel %vm1631_vm2, %v2914_v49, -inf }
 0x137   : > { %v2918_v51 = vpop.f32.mrf.mxu0  ;;  %v2920_v52 = vpop.f32.mrf.mxu1 }
 0x139   : > { %v2922_v53 = vpop.f32.mrf.mxu0  ;;  %v2924_v54 = vpop.f32.mrf.mxu1 }
 0x13b   : > { %v2926_v55 = vpop.f32.mrf.mxu0  ;;  %v2928_v56 = vpop.f32.mrf.mxu1 }
 0x13d   : > { %v2930_v57 = vpop.f32.mrf.mxu0  ;;  %v2932_v58 = vpop.f32.mrf.mxu1 }
 0x13f   : > { %v2934_v59 = vpop.f32.mrf.mxu0  ;;  %v2936_v60 = vpop.f32.mrf.mxu1 }
 0x141   : > { %v2938_v61 = vpop.f32.mrf.mxu0  ;;  %v2940_v62 = vpop.f32.mrf.mxu1 }
 0x143   : > { %v2942_v63 = vpop.f32.mrf.mxu0  ;;  %v2944_v0 = vpop.f32.mrf.mxu1 }
 0x145   : > { %v2946_v1 = vpop.f32.mrf.mxu0  ;;  %v2948_v2 = vpop.f32.mrf.mxu1 }
 0x147   : > { %v2954_v3 = vpop.f32.mrf.mxu0  ;;  %v2956_v4 = vpop.f32.mrf.mxu1 }
 0x149   : > { %v2963_v10 = vpop.f32.mrf.mxu0  ;;  %v2965_v11 = vpop.f32.mrf.mxu1 }
 0x14a   : > { %3316 = vst [vmem:[#allocation3_spill] sm:$0xff] %v2963_v10  ;;  %3317 = vst [vmem:[#allocation4_spill] sm:$0xff] %v2965_v11 }
 0x14b   : > { %v2234_v20 = vpop.f32.mrf.mxu0  ;;  %v2988_v21 = vpop.f32.mrf.mxu1 }
 0x14c   : > { %3318 = vst [vmem:[#allocation5_spill] sm:$0xff] %v2988_v21  ;;  %v1640_v25 = vsel %vm1631_vm2, %v2234_v20, -inf }
 0x14d   : > { %v1641_v29 = vmax.f32 %v1639_v5, %v1640_v25  ;;  %v1242_v30 = vpop.f32.mrf.mxu0  ;;  %v2312_v31 = vpop.f32.mrf.mxu1  ;;  %v3036_v25 = vsel %vm1631_vm2, %v2904_v44, -inf }
 0x14e   : > { %v1633_v34 = vsel %vm1631_vm2, %v1242_v30, -inf  ;;  %v1644_v35 = vsel %vm1631_vm2, %v2312_v31, -inf }
 0x14f   : > { %v1634_v38 = vmax.f32 %v1632_v6, %v1633_v34  ;;  %v1643_v5 = vmax.f32 %v1641_v29, %v1642_v7  ;;  %v2237_v39 = vpop.f32.mrf.mxu0  ;;  %v1502_v20 = vpop.f32.mrf.mxu1  ;;  %v3050_v7 = vsel %vm1631_vm2, %v2908_v46, -inf }
 0x150   : > { %v1654_v6 = vsel %vm1631_vm2, %v2237_v39, -inf  ;;  %v1637_v34 = vsel %vm1631_vm2, %v1502_v20, -inf }
 0x151   : > { %v1645_v43 = vmax.f32 %v1643_v5, %v1644_v35  ;;  %v1655_v29 = vmax.f32 %v1653_v8, %v1654_v6  ;;  %v1636_v44 = vmax.f32 %v1634_v38, %v1635_v9  ;;  %v1252_v30 = vpop.f32.mrf.mxu0  ;;  %v2315_v31 = vpop.f32.mrf.mxu1  ;;  %v3064_v38 = vsel %vm1631_vm2, %v2912_v48, -inf }
 0x152   : > { %v1647_v21 = vsel %vm1631_vm2, %v1252_v30, -inf  ;;  %v1658_v39 = vsel %vm1631_vm2, %v2315_v31, -inf  ;;  %v3072_v5 = vsel %vm1631_vm2, %v2916_v50, -inf }
 0x153   : > { %v1822_v11 = vadd.f32 %v3045_v42, %v1645_v43  ;;  %v1638_v46 = vmax.f32 %v1636_v44, %v1637_v34  ;;  %v1648_v10 = vmax.f32 %v2969_v12, %v1647_v21  ;;  %v1657_v35 = vmax.f32 %v1655_v29, %v1656_v13  ;;  %v2240_v8 = vpop.f32.mrf.mxu0  ;;  %v1512_v9 = vpop.f32.mrf.mxu1 }
 0x154   : > { %v1668_v12 = vsel %vm1631_vm2, %v2240_v8, -inf  ;;  %v1651_v50 = vsel %vm1631_vm2, %v1512_v9, -inf }
 0x155   : > { %v1848_v13 = vmax.f32 %v1822_v11, 0.0  ;;  %v1821_v48 = vadd.f32 %v3045_v42, %v1638_v46  ;;  %v1659_v21 = vmax.f32 %v1657_v35, %v1658_v39  ;;  %v1669_v20 = vmax.f32 %v2973_v14, %v1668_v12  ;;  %v1262_v49 = vpop.f32.mrf.mxu0  ;;  %v2318_v6 = vpop.f32.mrf.mxu1 }
 0x156   : > { %v1650_v43 = vmax.f32 %v1648_v10, %v1649_v15  ;;  %v1661_v29 = vsel %vm1631_vm2, %v1262_v49, -inf  ;;  %v1672_v44 = vsel %vm1631_vm2, %v2318_v6, -inf  ;;  %v3092_v10 = vsel %vm1631_vm2, %v2918_v51, -inf }
 0x157   : > { %1874 = vst.msk [vmem:[%s3077_s20 + $0x8] sm:$0xff] %vm1631_vm2, %v1848_v13  ;;  %v1847_v30 = vmax.f32 %v1821_v48, 0.0  ;;  %v1824_v11 = vadd.f32 %v3045_v42, %v1659_v21  ;;  %v1662_v31 = vmax.f32 %v2977_v16, %v1661_v29  ;;  %v1671_v34 = vmax.f32 %v1669_v20, %v2980_v17  ;;  %v2243_v14 = vpop.f32.mrf.mxu0  ;;  %v1522_v39 = vpop.f32.mrf.mxu1 }
 0x158   : > { %v3096_v15 = vsel %vm1631_vm2, %v2920_v52, -inf  ;;  %v1652_v46 = vmax.f32 %v1650_v43, %v1651_v50  ;;  %v1682_v35 = vsel %vm1631_vm2, %v2243_v14, -inf  ;;  %v1665_v48 = vsel %vm1631_vm2, %v1522_v39, -inf }
 0x159   : > { %1873 = vst.msk [vmem:[%s3077_s20] sm:$0xff] %vm1631_vm2, %v1847_v30  ;;  %v1850_v8 = vmax.f32 %v1824_v11, 0.0  ;;  %v1673_v16 = vmax.f32 %v1671_v34, %v1672_v44  ;;  %v1683_v17 = vmax.f32 %v2983_v18, %v1682_v35  ;;  %v1664_v9 = vmax.f32 %v1662_v31, %v2986_v19  ;;  %v1272_v12 = vpop.f32.mrf.mxu0  ;;  %v2321_v13 = vpop.f32.mrf.mxu1 }
 0x15a   : > { %v1823_v51 = vadd.f32 %v3045_v42, %v1652_v46  ;;  %v1675_v52 = vsel %vm1631_vm2, %v1272_v12, -inf  ;;  %v1686_v21 = vsel %vm1631_vm2, %v2321_v13, -inf  ;;  %v3114_v50 = vsel %vm1631_vm2, %v2922_v53, -inf }
 0x15b   : > { %1876 = vst.msk [vmem:[%s3077_s20 + $0x18] sm:$0xff] %vm1631_vm2, %v1850_v8  ;;  %v1826_v20 = vadd.f32 %v3045_v42, %v1673_v16  ;;  %v1666_v49 = vmax.f32 %v1664_v9, %v1665_v48  ;;  %v1676_v18 = vmax.f32 %v2991_v22, %v1675_v52  ;;  %v1685_v19 = vmax.f32 %v1683_v17, %v2994_v23  ;;  %v2246_v6 = vpop.f32.mrf.mxu0  ;;  %v1532_v43 = vpop.f32.mrf.mxu1 }
 0x15c   : > { %v3118_v29 = vsel %vm1631_vm2, %v2924_v54, -inf  ;;  %v1849_v44 = vmax.f32 %v1823_v51, 0.0  ;;  %v1696_v30 = vsel %vm1631_vm2, %v2246_v6, -inf  ;;  %v1679_v39 = vsel %vm1631_vm2, %v1532_v43, -inf }
 0x15d   : > { %v1852_v11 = vmax.f32 %v1826_v20, 0.0  ;;  %v1825_v31 = vadd.f32 %v3045_v42, %v1666_v49  ;;  %v1687_v22 = vmax.f32 %v1685_v19, %v1686_v21  ;;  %v1697_v23 = vmax.f32 %v2997_v24, %v1696_v30  ;;  %v1282_v34 = vpop.f32.mrf.mxu0  ;;  %v2324_v14 = vpop.f32.mrf.mxu1 }
 0x15e   : > { %1875 = vst.msk [vmem:[%s3077_s20 + $0x10] sm:$0xff] %vm1631_vm2, %v1849_v44  ;;  %v1678_v53 = vmax.f32 %v1676_v18, %v3001_v26  ;;  %v1689_v54 = vsel %vm1631_vm2, %v1282_v34, -inf  ;;  %v1700_v46 = vsel %vm1631_vm2, %v2324_v14, -inf  ;;  %v3136_v26 = vsel %vm1631_vm2, %v2926_v55, -inf }
 0x15f   : > { %1878 = vst.msk [vmem:[%s3077_s20 + $0x28] sm:$0xff] %vm1631_vm2, %v1852_v11  ;;  %v1851_v35 = vmax.f32 %v1825_v31, 0.0  ;;  %v1828_v8 = vadd.f32 %v3045_v42, %v1687_v22  ;;  %v1690_v24 = vmax.f32 %v3004_v27, %v1689_v54  ;;  %v1699_v16 = vmax.f32 %v1697_v23, %v3007_v28  ;;  %v2249_v17 = vpop.f32.mrf.mxu0  ;;  %v1542_v9 = vpop.f32.mrf.mxu1 }
 0x160   : > { %v3140_v12 = vsel %vm1631_vm2, %v2928_v56, -inf  ;;  %v1680_v13 = vmax.f32 %v1678_v53, %v1679_v39  ;;  %v1710_v51 = vsel %vm1631_vm2, %v2249_v17, -inf  ;;  %v1693_v49 = vsel %vm1631_vm2, %v1542_v9, -inf }
 0x161   : > { %1877 = vst.msk [vmem:[%s3077_s20 + $0x20] sm:$0xff] %vm1631_vm2, %v1851_v35  ;;  %v1854_v48 = vmax.f32 %v1828_v8, 0.0  ;;  %v1701_v27 = vmax.f32 %v1699_v16, %v1700_v46  ;;  %v1711_v28 = vmax.f32 %v3015_v32, %v1710_v51  ;;  %v1692_v52 = vmax.f32 %v1690_v24, %v3018_v33  ;;  %v1292_v21 = vpop.f32.mrf.mxu0  ;;  %v2327_v20 = vpop.f32.mrf.mxu1 }
 0x162   : > { %v1827_v55 = vadd.f32 %v3045_v42, %v1680_v13  ;;  %v1703_v56 = vsel %vm1631_vm2, %v1292_v21, -inf  ;;  %v1714_v18 = vsel %vm1631_vm2, %v2327_v20, -inf  ;;  %v3158_v30 = vsel %vm1631_vm2, %v2930_v57, -inf }
 0x163   : > { %1880 = vst.msk [vmem:[%s3077_s20 + $0x38] sm:$0xff] %vm1631_vm2, %v1854_v48  ;;  %v1830_v19 = vadd.f32 %v3045_v42, %v1701_v27  ;;  %v1694_v6 = vmax.f32 %v1692_v52, %v1693_v49  ;;  %v1704_v32 = vmax.f32 %v3024_v36, %v1703_v56  ;;  %v1713_v33 = vmax.f32 %v1711_v28, %v3028_v37  ;;  %v2252_v43 = vpop.f32.mrf.mxu0  ;;  %v1552_v44 = vpop.f32.mrf.mxu1 }
 0x164   : > { %v3162_v11 = vsel %vm1631_vm2, %v2932_v58, -inf  ;;  %v1853_v31 = vmax.f32 %v1827_v55, 0.0  ;;  %v1724_v22 = vsel %vm1631_vm2, %v2252_v43, -inf  ;;  %v1707_v39 = vsel %vm1631_vm2, %v1552_v44, -inf }
 0x165   : > { %v1856_v23 = vmax.f32 %v1830_v19, 0.0  ;;  %v1829_v34 = vadd.f32 %v3045_v42, %v1694_v6  ;;  %v1715_v36 = vmax.f32 %v1713_v33, %v1714_v18  ;;  %v1725_v37 = vmax.f32 %v3032_v40, %v1724_v22  ;;  %v1302_v14 = vpop.f32.mrf.mxu0  ;;  %v2330_v53 = vpop.f32.mrf.mxu1 }
 0x166   : > { %1879 = vst.msk [vmem:[%s3077_s20 + $0x30] sm:$0xff] %vm1631_vm2, %v1853_v31  ;;  %v1706_v57 = vmax.f32 %v1704_v32, %v3036_v25  ;;  %v1717_v58 = vsel %vm1631_vm2, %v1302_v14, -inf  ;;  %v1728_v54 = vsel %vm1631_vm2, %v2330_v53, -inf  ;;  %v3180_v25 = vsel %vm1631_vm2, %v2934_v59, -inf }
 0x167   : > { %1882 = vst.msk [vmem:[%s3077_s20 + $0x48] sm:$0xff] %vm1631_vm2, %v1856_v23  ;;  %v1855_v46 = vmax.f32 %v1829_v34, 0.0  ;;  %v1832_v35 = vadd.f32 %v3045_v42, %v1715_v36  ;;  %v1718_v40 = vmax.f32 %v3040_v41, %v1717_v58  ;;  %v1727_v8 = vmax.f32 %v1725_v37, %v3050_v7  ;;  %v2255_v24 = vpop.f32.mrf.mxu0  ;;  %v1562_v16 = vpop.f32.mrf.mxu1 }
 0x168   : > { %v3184_v17 = vsel %vm1631_vm2, %v2936_v60, -inf  ;;  %v1708_v9 = vmax.f32 %v1706_v57, %v1707_v39  ;;  %v1738_v13 = vsel %vm1631_vm2, %v2255_v24, -inf  ;;  %v1721_v52 = vsel %vm1631_vm2, %v1562_v16, -inf }
 0x169   : > { %1881 = vst.msk [vmem:[%s3077_s20 + $0x40] sm:$0xff] %vm1631_vm2, %v1855_v46  ;;  %v1858_v51 = vmax.f32 %v1832_v35, 0.0  ;;  %v1729_v41 = vmax.f32 %v1727_v8, %v1728_v54  ;;  %v1739_v7 = vmax.f32 %v3055_v45, %v1738_v13  ;;  %v1720_v48 = vmax.f32 %v1718_v40, %v3064_v38  ;;  %v1312_v27 = vpop.f32.mrf.mxu0  ;;  %v2333_v28 = vpop.f32.mrf.mxu1 }
 0x16a   : > { %v1831_v59 = vadd.f32 %v3045_v42, %v1708_v9  ;;  %v1731_v60 = vsel %vm1631_vm2, %v1312_v27, -inf  ;;  %v1742_v21 = vsel %vm1631_vm2, %v2333_v28, -inf  ;;  %v3202_v18 = vsel %vm1631_vm2, %v2938_v61, -inf }
 0x16b   : > { %1884 = vst.msk [vmem:[%s3077_s20 + $0x58] sm:$0xff] %vm1631_vm2, %v1858_v51  ;;  %v1834_v20 = vadd.f32 %v3045_v42, %v1729_v41  ;;  %v1722_v55 = vmax.f32 %v1720_v48, %v1721_v52  ;;  %v1732_v45 = vmax.f32 %v3068_v47, %v1731_v60  ;;  %v1741_v38 = vmax.f32 %v1739_v7, %v3072_v5  ;;  %v2258_v49 = vpop.f32.mrf.mxu0  ;;  %v1572_v56 = vpop.f32.mrf.mxu1 }
 0x16c   : > { %v1782_v19 = vsel %vm1631_vm2, %v2940_v62, -inf  ;;  %v1857_v6 = vmax.f32 %v1831_v59, 0.0  ;;  %v1752_v32 = vsel %vm1631_vm2, %v2258_v49, -inf  ;;  %v1735_v22 = vsel %vm1631_vm2, %v1572_v56, -inf }
 0x16d   : > { %v1860_v33 = vmax.f32 %v1834_v20, 0.0  ;;  %v1833_v43 = vadd.f32 %v3045_v42, %v1722_v55  ;;  %v1743_v44 = vmax.f32 %v1741_v38, %v1742_v21  ;;  %v1753_v47 = vmax.f32 %v3092_v10, %v1752_v32  ;;  %v1322_v5 = vpop.f32.mrf.mxu0  ;;  %v2336_v31 = vpop.f32.mrf.mxu1 }
 0x16e   : > { %1883 = vst.msk [vmem:[%s3077_s20 + $0x50] sm:$0xff] %vm1631_vm2, %v1857_v6  ;;  %v1734_v61 = vmax.f32 %v1732_v45, %v3096_v15  ;;  %v1745_v62 = vsel %vm1631_vm2, %v1322_v5, -inf  ;;  %v1756_v23 = vsel %vm1631_vm2, %v2336_v31, -inf  ;;  %v3222_v15 = vsel %vm1631_vm2, %v2942_v63, -inf }
 0x16f   : > { %1886 = vst.msk [vmem:[%s3077_s20 + $0x68] sm:$0xff] %vm1631_vm2, %v1860_v33  ;;  %v1859_v34 = vmax.f32 %v1833_v43, 0.0  ;;  %v1836_v36 = vadd.f32 %v3045_v42, %v1743_v44  ;;  %v1746_v10 = vmax.f32 %v3114_v50, %v1745_v62  ;;  %v1755_v37 = vmax.f32 %v1753_v47, %v3118_v29  ;;  %v2261_v14 = vpop.f32.mrf.mxu0  ;;  %v1582_v53 = vpop.f32.mrf.mxu1 }
 0x170   : > { %v1775_v57 = vsel %vm1631_vm2, %v2944_v0, -inf  ;;  %v1736_v39 = vmax.f32 %v1734_v61, %v1735_v22  ;;  %v1766_v58 = vsel %vm1631_vm2, %v2261_v14, -inf  ;;  %v1749_v63 = vsel %vm1631_vm2, %v1582_v53, -inf  ;;  %v3320_v53 = vld [vmem:[#allocation4_spill] sm:$0xff] }
 0x171   : > { %1885 = vst.msk [vmem:[%s3077_s20 + $0x60] sm:$0xff] %vm1631_vm2, %v1859_v34  ;;  %v1862_v54 = vmax.f32 %v1836_v36, 0.0  ;;  %v1757_v46 = vmax.f32 %v1755_v37, %v1756_v23  ;;  %v1767_v50 = vmax.f32 %v3136_v26, %v1766_v58  ;;  %v1748_v29 = vmax.f32 %v1746_v10, %v3140_v12  ;;  %v1332_v35 = vpop.f32.mrf.mxu0  ;;  %v2339_v40 = vpop.f32.mrf.mxu1  ;;  %v3319_v37 = vld [vmem:[#allocation3_spill] sm:$0xff] }
 0x172   : > { %v1835_v8 = vadd.f32 %v3045_v42, %v1736_v39  ;;  %v1759_v24 = vsel %vm1631_vm2, %v1332_v35, -inf  ;;  %v1770_v0 = vsel %vm1631_vm2, %v2339_v40, -inf  ;;  %v1786_v41 = vsel %vm1631_vm2, %v2946_v1, -inf }
 0x173   : > { %1888 = vst.msk [vmem:[%s3077_s20 + $0x78] sm:$0xff] %vm1631_vm2, %v1862_v54  ;;  %v1838_v16 = vadd.f32 %v3045_v42, %v1757_v46  ;;  %v1750_v9 = vmax.f32 %v1748_v29, %v1749_v63  ;;  %v1760_v26 = vmax.f32 %v3158_v30, %v1759_v24  ;;  %v1769_v12 = vmax.f32 %v1767_v50, %v3162_v11  ;;  %v2264_v13 = vpop.f32.mrf.mxu0  ;;  %v1592_v51 = vpop.f32.mrf.mxu1 }
 0x174   : > { %v1796_v7 = vsel %vm1631_vm2, %v2948_v2, -inf  ;;  %v1861_v48 = vmax.f32 %v1835_v8, 0.0  ;;  %v1780_v27 = vsel %vm1631_vm2, %v2264_v13, -inf  ;;  %v1763_v1 = vsel %vm1631_vm2, %v1592_v51, -inf  ;;  %v3321_v13 = vld [vmem:[#allocation5_spill] sm:$0xff] }
 0x175   : > { %v1864_v28 = vmax.f32 %v1838_v16, 0.0  ;;  %v1837_v59 = vadd.f32 %v3045_v42, %v1750_v9  ;;  %v1771_v52 = vmax.f32 %v1769_v12, %v1770_v0  ;;  %v1781_v30 = vmax.f32 %v3180_v25, %v1780_v27  ;;  %v1342_v60 = vpop.f32.mrf.mxu0  ;;  %v2342_v11 = vpop.f32.mrf.mxu1 }
 0x176   : > { %1887 = vst.msk [vmem:[%s3077_s20 + $0x70] sm:$0xff] %vm1631_vm2, %v1861_v48  ;;  %v1762_v21 = vmax.f32 %v1760_v26, %v3184_v17  ;;  %v1773_v2 = vsel %vm1631_vm2, %v1342_v60, -inf  ;;  %v1784_v20 = vsel %vm1631_vm2, %v2342_v11, -inf  ;;  %v1807_v17 = vsel %vm1631_vm2, %v2954_v3, -inf }
 0x177   : > { %1890 = vst.msk [vmem:[%s3077_s20 + $0x88] sm:$0xff] %vm1631_vm2, %v1864_v28  ;;  %v1863_v55 = vmax.f32 %v1837_v59, 0.0  ;;  %v1840_v45 = vadd.f32 %v3045_v42, %v1771_v52  ;;  %v1774_v25 = vmax.f32 %v3202_v18, %v1773_v2  ;;  %v1783_v38 = vmax.f32 %v1781_v30, %v1782_v19  ;;  %v2267_v49 = vpop.f32.mrf.mxu0  ;;  %v1602_v56 = vpop.f32.mrf.mxu1 }
 0x178   : > { %v1789_v6 = vsel %vm1631_vm2, %v2956_v4, -inf  ;;  %v1764_v32 = vmax.f32 %v1762_v21, %v1763_v1  ;;  %v1794_v33 = vsel %vm1631_vm2, %v2267_v49, -inf  ;;  %v1777_v61 = vsel %vm1631_vm2, %v1602_v56, -inf }
 0x179   : > { %1889 = vst.msk [vmem:[%s3077_s20 + $0x80] sm:$0xff] %vm1631_vm2, %v1863_v55  ;;  %v1866_v43 = vmax.f32 %v1840_v45, 0.0  ;;  %v1785_v44 = vmax.f32 %v1783_v38, %v1784_v20  ;;  %v1795_v47 = vmax.f32 %v3222_v15, %v1794_v33  ;;  %v1776_v18 = vmax.f32 %v1774_v25, %v1775_v57  ;;  %v1352_v19 = vpop.f32.mrf.mxu0  ;;  %v2345_v5 = vpop.f32.mrf.mxu1 }
 0x17a   : > { %v1839_v31 = vadd.f32 %v3045_v42, %v1764_v32  ;;  %v1787_v3 = vsel %vm1631_vm2, %v1352_v19, -inf  ;;  %v1798_v4 = vsel %vm1631_vm2, %v2345_v5, -inf  ;;  %v1800_v14 = vsel %vm1631_vm2, %v3319_v37, -inf }
 0x17b   : > { %1892 = vst.msk [vmem:[%s3077_s20 + $0x98] sm:$0xff] %vm1631_vm2, %v1866_v43  ;;  %v1842_v22 = vadd.f32 %v3045_v42, %v1785_v44  ;;  %v1778_v62 = vmax.f32 %v1776_v18, %v1777_v61  ;;  %v1788_v23 = vmax.f32 %v1786_v41, %v1787_v3  ;;  %v1797_v34 = vmax.f32 %v1795_v47, %v1796_v7  ;;  %v2270_v36 = vpop.f32.mrf.mxu0  ;;  %v1612_v10 = vpop.f32.mrf.mxu1 }
 0x17c   : > { %v1810_v15 = vsel %vm1631_vm2, %v3320_v53, -inf  ;;  %v1865_v57 = vmax.f32 %v1839_v31, 0.0  ;;  %v1808_v39 = vsel %vm1631_vm2, %v2270_v36, -inf  ;;  %v1791_v8 = vsel %vm1631_vm2, %v1612_v10, -inf }
 0x17d   : > { %v1868_v58 = vmax.f32 %v1842_v22, 0.0  ;;  %v1841_v54 = vadd.f32 %v3045_v42, %v1778_v62  ;;  %v1799_v46 = vmax.f32 %v1797_v34, %v1798_v4  ;;  %v1809_v50 = vmax.f32 %v1807_v17, %v1808_v39  ;;  %v1362_v29 = vpop.f32.mrf.mxu0  ;;  %v2348_v35 = vpop.f32.mrf.mxu1 }
 0x17e   : > { %1891 = vst.msk [vmem:[%s3077_s20 + $0x90] sm:$0xff] %vm1631_vm2, %v1865_v57  ;;  %v1790_v40 = vmax.f32 %v1788_v23, %v1789_v6  ;;  %v1801_v63 = vsel %vm1631_vm2, %v1362_v29, -inf  ;;  %v1812_v24 = vsel %vm1631_vm2, %v2348_v35, -inf  ;;  %v1803_v51 = vsel %vm1631_vm2, %v3321_v13, -inf }
 0x17f   : > { %1894 = vst.msk [vmem:[%s3077_s20 + $0xa8] sm:$0xff] %vm1631_vm2, %v1868_v58  ;;  %v1867_v0 = vmax.f32 %v1841_v54, 0.0  ;;  %v1844_v16 = vadd.f32 %v3045_v42, %v1799_v46  ;;  %v1802_v9 = vmax.f32 %v1800_v14, %v1801_v63  ;;  %v1811_v26 = vmax.f32 %v1809_v50, %v1810_v15  ;;  %v1622_v12 = vpop.f32.mrf.mxu1 }
 0x180   : > { %v1792_v41 = vmax.f32 %v1790_v40, %v1791_v8  ;;  %v1805_v59 = vsel %vm1631_vm2, %v1622_v12, -inf }
 0x181   : > { %1893 = vst.msk [vmem:[%s3077_s20 + $0xa0] sm:$0xff] %vm1631_vm2, %v1867_v0  ;;  %v1870_v7 = vmax.f32 %v1844_v16, 0.0  ;;  %v1813_v48 = vmax.f32 %v1811_v26, %v1812_v24  ;;  %v1804_v27 = vmax.f32 %v1802_v9, %v1803_v51 }
 0x182   : > { %v1843_v28 = vadd.f32 %v3045_v42, %v1792_v41 }
 0x183   : > { %1896 = vst.msk [vmem:[%s3077_s20 + $0xb8] sm:$0xff] %vm1631_vm2, %v1870_v7  ;;  %v1846_v52 = vadd.f32 %v3045_v42, %v1813_v48  ;;  %v1806_v30 = vmax.f32 %v1804_v27, %v1805_v59 }
 0x184   : > { %v1869_v60 = vmax.f32 %v1843_v28, 0.0 }
 0x185   : > { %v1872_v11 = vmax.f32 %v1846_v52, 0.0  ;;  %v1845_v21 = vadd.f32 %v3045_v42, %v1806_v30 }
 0x186   : > { %1895 = vst.msk [vmem:[%s3077_s20 + $0xb0] sm:$0xff] %vm1631_vm2, %v1869_v60 }
 0x187   : > { %1898 = vst.msk [vmem:[%s3077_s20 + $0xc8] sm:$0xff] %vm1631_vm2, %v1872_v11  ;;  %v1871_v1 = vmax.f32 %v1845_v21, 0.0 }
 0x189   : > { %1897 = vst.msk [vmem:[%s3077_s20 + $0xc0] sm:$0xff] %vm1631_vm2, %v1871_v1 }
 0x18a PF: > { %p10_p9 = scmp.ge.s32.totalorder %s2444_s16, 4   ;;  %s3322_s12 = smov %s2401_s13 }
 0x18b   : > { %s3323_s13 = smov %s2453_s19  ;;  %s3324_s14 = smov %s2444_s16 }
 0x18c   :  { %12 = sbr.rel (!%p10_p9) target bundleno = 2 (0x2), region = 105 }

// kernel: lenet5_forward.3
= control target key start
LH: loop header
LB: loop body
LE: loop exit
PB: predicated region body
PF: predicated region fallthrough
CT: control target
= control target key end

     0   :  { %v5662_v0 = vmov 0.0   ;;  %vm451_vm0 = vcmask 179200   ;;  %vm1052_vm1 = vcmask 1045504   ;;  %vm2121_vm2 = vcmask 130048   ;;  %s8619_s1 = inlined_call_operand.vmem [shape: f32[150,16], index: 1, kind: input, shape index: {}]   ;;  %s8620_s0 = inlined_call_operand.vmem [shape: f32[100,16,150], index: 0, kind: input, shape index: {}]   ;;  %s8621_s3 = inlined_call_operand.vmem [shape: f32[25,16,128], index: 3, kind: input, shape index: {}]   ;;  %s8622_s2 = inlined_call_operand.vmem [shape: f32[1,16], index: 2, kind: input, shape index: {}]   ;;  %s8623_s5 = inlined_call_operand.vmem [shape: f32[128,128], index: 5, kind: input, shape index: {}]   ;;  %s8624_s7 = inlined_call_operand.vmem [shape: f32[128,128], index: 7, kind: input, shape index: {}]   ;;  %s8625_s4 = inlined_call_operand.vmem [shape: f32[1,128], index: 4, kind: input, shape index: {}]   ;;  %s8626_s6 = inlined_call_operand.vmem [shape: f32[1,128], index: 6, kind: input, shape index: {}]   ;;  %s8627_s8 = inlined_call_operand.vmem [shape: f32[1,128], index: 8, kind: input, shape index: {}]   ;;  %s8628_s9 = inlined_call_operand.vmem [shape: f32[16,128], index: 9, kind: output, shape index: {}]  }
   0x1   :  { %1056 = vmatprep.subr.mxu0 %v5662_v0  ;;  %v447_v1 = vld [vmem:[%s8619_s1 + $0x78] sm:$0xff]  ;;  %v446_v2 = vld [vmem:[%s8619_s1 + $0x70] sm:$0xff]  ;;  %5623 = vmatprep.subr.mxu1 %v5662_v0  ;;  %v445_v3 = vld [vmem:[%s8619_s1 + $0x68] sm:$0xff] }
   0x2   :  { %1057 = vmatpush1.msra.mxu0 %v447_v1  ;;  %5642 = vmatpush1.msra.mxu1 %v447_v1  ;;  %v444_v4 = vld [vmem:[%s8619_s1 + $0x60] sm:$0xff]  ;;  %v443_v5 = vld [vmem:[%s8619_s1 + $0x58] sm:$0xff]  ;;  %v33_v6 = vld [vmem:[%s8620_s0 + $0x8] sm:$0xff] }
   0x3   :  { %1058 = vmatprep.subr.mxu0 %v5662_v0  ;;  %5624 = vmatprep.subr.mxu1 %v5662_v0  ;;  %v442_v7 = vld [vmem:[%s8619_s1 + $0x50] sm:$0xff]  ;;  %v441_v8 = vld [vmem:[%s8619_s1 + $0x48] sm:$0xff]  ;;  %v440_v9 = vld [vmem:[%s8619_s1 + $0x40] sm:$0xff] }
   0x4   :  { %1059 = vmatpush1.msra.mxu0 %v446_v2  ;;  %5643 = vmatpush1.msra.mxu1 %v446_v2  ;;  %v439_v10 = vld [vmem:[%s8619_s1 + $0x38] sm:$0xff]  ;;  %v438_v11 = vld [vmem:[%s8619_s1 + $0x30] sm:$0xff]  ;;  %v437_v12 = vld [vmem:[%s8619_s1 + $0x28] sm:$0xff] }
   0x5   :  { %1060 = vmatprep.subr.mxu0 %v5662_v0  ;;  %5625 = vmatprep.subr.mxu1 %v5662_v0  ;;  %v436_v13 = vld [vmem:[%s8619_s1 + $0x20] sm:$0xff]  ;;  %v435_v14 = vld [vmem:[%s8619_s1 + $0x18] sm:$0xff]  ;;  %v434_v15 = vld [vmem:[%s8619_s1 + $0x10] sm:$0xff] }
   0x6   :  { %1061 = vmatpush1.msra.mxu0 %v445_v3  ;;  %5644 = vmatpush1.msra.mxu1 %v445_v3  ;;  %v433_v16 = vld [vmem:[%s8619_s1 + $0x8] sm:$0xff]  ;;  %v432_v17 = vld [vmem:[%s8619_s1] sm:$0xff]  ;;  %v450_v18 = vld [vmem:[%s8619_s1 + $0x90] sm:$0x3f] }
   0x7   :  { %1062 = vmatprep.subr.mxu0 %v5662_v0  ;;  %5626 = vmatprep.subr.mxu1 %v5662_v0  ;;  %v449_v19 = vld [vmem:[%s8619_s1 + $0x88] sm:$0xff]  ;;  %v448_v20 = vld [vmem:[%s8619_s1 + $0x80] sm:$0xff]  ;;  %v35_v22 = vld [vmem:[%s8620_s0 + $0x18] sm:$0xff] }
   0x8   :  { %1063 = vmatpush1.msra.mxu0 %v444_v4  ;;  %4940 = vmatprep.mubr.msk.f32.mxu0 %vm451_vm0, %v33_v6  ;;  %v32_v21 = vld [vmem:[%s8620_s0] sm:$0xff]  ;;  %v275_v23 = vld [vmem:[%s8620_s0 + $0x798] sm:$0xff]  ;;  %v274_v24 = vld [vmem:[%s8620_s0 + $0x790] sm:$0xff] }
   0x9   :  { %1064 = vmatprep.subr.mxu0 %v5662_v0  ;;  %5645 = vmatpush1.msra.mxu1 %v444_v4  ;;  %v277_v25 = vld [vmem:[%s8620_s0 + $0x7a8] sm:$0xff]  ;;  %v34_v26 = vld [vmem:[%s8620_s0 + $0x10] sm:$0xff]  ;;  %v276_v28 = vld [vmem:[%s8620_s0 + $0x7a0] sm:$0xff] }
   0xa   :  { %1065 = vmatpush1.msra.mxu0 %v443_v5  ;;  %5627 = vmatprep.subr.mxu1 %v5662_v0  ;;  %v37_v27 = vld [vmem:[%s8620_s0 + $0x28] sm:$0xff]  ;;  %v279_v29 = vld [vmem:[%s8620_s0 + $0x7b8] sm:$0xff]  ;;  %v36_v30 = vld [vmem:[%s8620_s0 + $0x20] sm:$0xff] }
   0xb   :  { %1066 = vmatprep.subr.mxu0 %v5662_v0  ;;  %5646 = vmatpush1.msra.mxu1 %v443_v5  ;;  %v39_v31 = vld [vmem:[%s8620_s0 + $0x38] sm:$0xff]  ;;  %v278_v32 = vld [vmem:[%s8620_s0 + $0x7b0] sm:$0xff]  ;;  %v281_v33 = vld [vmem:[%s8620_s0 + $0x7c8] sm:$0xff] }
   0xc   :  { %1067 = vmatpush1.msra.mxu0 %v442_v7  ;;  %5628 = vmatprep.subr.mxu1 %v5662_v0  ;;  %v38_v34 = vld [vmem:[%s8620_s0 + $0x30] sm:$0xff]  ;;  %v41_v35 = vld [vmem:[%s8620_s0 + $0x48] sm:$0xff]  ;;  %v280_v36 = vld [vmem:[%s8620_s0 + $0x7c0] sm:$0xff] }
   0xd   :  { %1068 = vmatprep.subr.mxu0 %v5662_v0  ;;  %5647 = vmatpush1.msra.mxu1 %v442_v7  ;;  %v283_v37 = vld [vmem:[%s8620_s0 + $0x7d8] sm:$0xff]  ;;  %v40_v38 = vld [vmem:[%s8620_s0 + $0x40] sm:$0xff]  ;;  %v282_v40 = vld [vmem:[%s8620_s0 + $0x7d0] sm:$0xff] }
   0xe   :  { %1069 = vmatpush1.msra.mxu0 %v441_v8  ;;  %5629 = vmatprep.subr.mxu1 %v5662_v0  ;;  %v43_v39 = vld [vmem:[%s8620_s0 + $0x58] sm:$0xff]  ;;  %v285_v41 = vld [vmem:[%s8620_s0 + $0x7e8] sm:$0xff]  ;;  %v42_v42 = vld [vmem:[%s8620_s0 + $0x50] sm:$0xff] }
   0xf   :  { %1070 = vmatprep.subr.mxu0 %v5662_v0  ;;  %5648 = vmatpush1.msra.mxu1 %v441_v8  ;;  %v45_v43 = vld [vmem:[%s8620_s0 + $0x68] sm:$0xff]  ;;  %v284_v44 = vld [vmem:[%s8620_s0 + $0x7e0] sm:$0xff]  ;;  %v287_v45 = vld [vmem:[%s8620_s0 + $0x7f8] sm:$0xff] }
  0x10   :  { %1071 = vmatpush1.msra.mxu0 %v440_v9  ;;  %5630 = vmatprep.subr.mxu1 %v5662_v0  ;;  %v44_v46 = vld [vmem:[%s8620_s0 + $0x60] sm:$0xff]  ;;  %v47_v47 = vld [vmem:[%s8620_s0 + $0x78] sm:$0xff]  ;;  %v286_v48 = vld [vmem:[%s8620_s0 + $0x7f0] sm:$0xff] }
  0x11   :  { %1072 = vmatprep.subr.mxu0 %v5662_v0  ;;  %5649 = vmatpush1.msra.mxu1 %v440_v9  ;;  %v289_v49 = vld [vmem:[%s8620_s0 + $0x808] sm:$0xff]  ;;  %v46_v50 = vld [vmem:[%s8620_s0 + $0x70] sm:$0xff]  ;;  %v288_v52 = vld [vmem:[%s8620_s0 + $0x800] sm:$0xff] }
  0x12   :  { %1073 = vmatpush1.msra.mxu0 %v439_v10  ;;  %5631 = vmatprep.subr.mxu1 %v5662_v0  ;;  %v49_v51 = vld [vmem:[%s8620_s0 + $0x88] sm:$0xff]  ;;  %v291_v53 = vld [vmem:[%s8620_s0 + $0x818] sm:$0xff]  ;;  %v48_v54 = vld [vmem:[%s8620_s0 + $0x80] sm:$0xff] }
  0x13   :  { %1074 = vmatprep.subr.mxu0 %v5662_v0  ;;  %5650 = vmatpush1.msra.mxu1 %v439_v10  ;;  %v51_v55 = vld [vmem:[%s8620_s0 + $0x98] sm:$0xff]  ;;  %v290_v56 = vld [vmem:[%s8620_s0 + $0x810] sm:$0xff]  ;;  %v293_v57 = vld [vmem:[%s8620_s0 + $0x828] sm:$0xff] }
  0x14   :  { %1075 = vmatpush1.msra.mxu0 %v438_v11  ;;  %5632 = vmatprep.subr.mxu1 %v5662_v0  ;;  %v50_v58 = vld [vmem:[%s8620_s0 + $0x90] sm:$0xff]  ;;  %v53_v59 = vld [vmem:[%s8620_s0 + $0xa8] sm:$0xff]  ;;  %v292_v60 = vld [vmem:[%s8620_s0 + $0x820] sm:$0xff] }
  0x15   :  { %1076 = vmatprep.subr.mxu0 %v5662_v0  ;;  %5651 = vmatpush1.msra.mxu1 %v438_v11  ;;  %v295_v61 = vld [vmem:[%s8620_s0 + $0x838] sm:$0xff]  ;;  %v52_v62 = vld [vmem:[%s8620_s0 + $0xa0] sm:$0xff]  ;;  %v297_v1 = vld [vmem:[%s8620_s0 + $0x848] sm:$0xff] }
  0x16   :  { %1077 = vmatpush1.msra.mxu0 %v437_v12  ;;  %5633 = vmatprep.subr.mxu1 %v5662_v0  ;;  %v55_v63 = vld [vmem:[%s8620_s0 + $0xb8] sm:$0xff]  ;;  %v54_v2 = vld [vmem:[%s8620_s0 + $0xb0] sm:$0xff]  ;;  %v57_v3 = vld [vmem:[%s8620_s0 + $0xc8] sm:$0xff] }
  0x17   :  { %1078 = vmatprep.subr.mxu0 %v5662_v0  ;;  %5652 = vmatpush1.msra.mxu1 %v437_v12  ;;  %v296_v4 = vld [vmem:[%s8620_s0 + $0x840] sm:$0xff]  ;;  %v299_v5 = vld [vmem:[%s8620_s0 + $0x858] sm:$0xff]  ;;  %v298_v8 = vld [vmem:[%s8620_s0 + $0x850] sm:$0xff] }
  0x18   :  { %1079 = vmatpush1.msra.mxu0 %v436_v13  ;;  %5634 = vmatprep.subr.mxu1 %v5662_v0  ;;  %v56_v6 = vld [vmem:[%s8620_s0 + $0xc0] sm:$0xff]  ;;  %v59_v7 = vld [vmem:[%s8620_s0 + $0xd8] sm:$0xff]  ;;  %v301_v9 = vld [vmem:[%s8620_s0 + $0x868] sm:$0xff] }
  0x19   :  { %1080 = vmatprep.subr.mxu0 %v5662_v0  ;;  %5653 = vmatpush1.msra.mxu1 %v436_v13  ;;  %v58_v10 = vld [vmem:[%s8620_s0 + $0xd0] sm:$0xff]  ;;  %v61_v11 = vld [vmem:[%s8620_s0 + $0xe8] sm:$0xff]  ;;  %v300_v12 = vld [vmem:[%s8620_s0 + $0x860] sm:$0xff] }
  0x1a   :  { %1081 = vmatpush1.msra.mxu0 %v435_v14  ;;  %5635 = vmatprep.subr.mxu1 %v5662_v0  ;;  %v303_v13 = vld [vmem:[%s8620_s0 + $0x878] sm:$0xff] }
  0x1b   :  { %1082 = vmatprep.subr.mxu0 %v5662_v0  ;;  %5654 = vmatpush1.msra.mxu1 %v435_v14  ;;  %v60_v14 = vld [vmem:[%s8620_s0 + $0xe0] sm:$0xff] }
  0x1c   :  { %1083 = vmatpush1.msra.mxu0 %v434_v15  ;;  %5636 = vmatprep.subr.mxu1 %v5662_v0 }
  0x1d   :  { %1084 = vmatprep.subr.mxu0 %v5662_v0  ;;  %5655 = vmatpush1.msra.mxu1 %v434_v15  ;;  %v63_v15 = vld [vmem:[%s8620_s0 + $0xf8] sm:$0xff] }
  0x1e   :  { %1085 = vmatpush1.msra.mxu0 %v433_v16  ;;  %5637 = vmatprep.subr.mxu1 %v5662_v0 }
  0x1f   :  { %1086 = vmatprep.subr.mxu0 %v5662_v0  ;;  %5656 = vmatpush1.msra.mxu1 %v433_v16  ;;  %v302_v16 = vld [vmem:[%s8620_s0 + $0x870] sm:$0xff] }
  0x20   :  { %1087 = vmatpush1.msra.mxu0 %v432_v17  ;;  %5638 = vmatprep.subr.mxu1 %v5662_v0 }
  0x21   :  { %1114 = vmatprep.subr.mxu0 %v5662_v0  ;;  %5657 = vmatpush1.msra.mxu1 %v432_v17  ;;  %v305_v17 = vld [vmem:[%s8620_s0 + $0x888] sm:$0xff] }
  0x22   :  { %4939 = vmatpush2.msk.msra.mxu0 %vm1052_vm1, %v450_v18  ;;  %5639 = vmatprep.subr.mxu1 %v5662_v0 }
  0x23   :  { %1116 = vmatprep.subr.mxu0 %v5662_v0  ;;  %5658 = vmatpush2.msk.msra.mxu1 %vm1052_vm1, %v450_v18  ;;  %v62_v18 = vld [vmem:[%s8620_s0 + $0xf0] sm:$0xff] }
  0x24   :  { %1117 = vmatpush2.msra.mxu0 %v449_v19  ;;  %5640 = vmatprep.subr.mxu1 %v5662_v0 }
  0x25   :  { %1118 = vmatprep.subr.mxu0 %v5662_v0  ;;  %5659 = vmatpush2.msra.mxu1 %v449_v19  ;;  %v65_v19 = vld [vmem:[%s8620_s0 + $0x108] sm:$0xff] }
  0x26   :  { %1119 = vmatpush2.msra.mxu0 %v448_v20  ;;  %5641 = vmatprep.subr.mxu1 %v5662_v0  ;;  %v294_v0 = vld [vmem:[%s8620_s0 + $0x830] sm:$0xff] }
  0x27   :  { %1121 = vmatmul.mubr.f32.vlgmr.msra.gmra.mxu0 %v32_v21  ;;  %5660 = vmatpush2.msra.mxu1 %v448_v20  ;;  %v304_v20 = vld [vmem:[%s8620_s0 + $0x880] sm:$0xff]  ;;  %v307_v21 = vld [vmem:[%s8620_s0 + $0x898] sm:$0xff] }
  0x28   :  { %4941 = vmatprep.mubr.msk.f32.mxu0 %vm451_vm0, %v35_v22  ;;  %5061 = vmatprep.mubr.msk.f32.mxu1 %vm451_vm0, %v275_v23  ;;  %v64_v22 = vld [vmem:[%s8620_s0 + $0x100] sm:$0xff]  ;;  %v67_v23 = vld [vmem:[%s8620_s0 + $0x118] sm:$0xff] }
  0x29   :  { %1726 = vmatmul.mubr.f32.vlgmr.msra.gmra.mxu1 %v274_v24  ;;  %v306_v24 = vld [vmem:[%s8620_s0 + $0x890] sm:$0xff] }
  0x2a   :  { %5062 = vmatprep.mubr.msk.f32.mxu1 %vm451_vm0, %v277_v25  ;;  %v309_v25 = vld [vmem:[%s8620_s0 + $0x8a8] sm:$0xff] }
  0x2b   :  { %1126 = vmatmul.mubr.f32.gmra.mxu0 %v34_v26  ;;  %v66_v26 = vld [vmem:[%s8620_s0 + $0x110] sm:$0xff] }
  0x2c   :  { %4942 = vmatprep.mubr.msk.f32.mxu0 %vm451_vm0, %v37_v27  ;;  %v69_v27 = vld [vmem:[%s8620_s0 + $0x128] sm:$0xff] }
  0x2d   :  { %1731 = vmatmul.mubr.f32.gmra.mxu1 %v276_v28  ;;  %v308_v28 = vld [vmem:[%s8620_s0 + $0x8a0] sm:$0xff] }
  0x2e   :  { %5063 = vmatprep.mubr.msk.f32.mxu1 %vm451_vm0, %v279_v29  ;;  %v311_v29 = vld [vmem:[%s8620_s0 + $0x8b8] sm:$0xff] }
  0x2f   :  { %1131 = vmatmul.mubr.f32.gmra.mxu0 %v36_v30  ;;  %v68_v30 = vld [vmem:[%s8620_s0 + $0x120] sm:$0xff] }
  0x30   :  { %4943 = vmatprep.mubr.msk.f32.mxu0 %vm451_vm0, %v39_v31  ;;  %v71_v31 = vld [vmem:[%s8620_s0 + $0x138] sm:$0xff] }
  0x31   :  { %1736 = vmatmul.mubr.f32.gmra.mxu1 %v278_v32  ;;  %v310_v32 = vld [vmem:[%s8620_s0 + $0x8b0] sm:$0xff] }
  0x32   :  { %5064 = vmatprep.mubr.msk.f32.mxu1 %vm451_vm0, %v281_v33  ;;  %v313_v33 = vld [vmem:[%s8620_s0 + $0x8c8] sm:$0xff] }
  0x33   :  { %1136 = vmatmul.mubr.f32.gmra.mxu0 %v38_v34  ;;  %v70_v34 = vld [vmem:[%s8620_s0 + $0x130] sm:$0xff] }
  0x34   :  { %4944 = vmatprep.mubr.msk.f32.mxu0 %vm451_vm0, %v41_v35  ;;  %v73_v35 = vld [vmem:[%s8620_s0 + $0x148] sm:$0xff] }
  0x35   :  { %1741 = vmatmul.mubr.f32.gmra.mxu1 %v280_v36  ;;  %v312_v36 = vld [vmem:[%s8620_s0 + $0x8c0] sm:$0xff] }
  0x36   :  { %5065 = vmatprep.mubr.msk.f32.mxu1 %vm451_vm0, %v283_v37  ;;  %v315_v37 = vld [vmem:[%s8620_s0 + $0x8d8] sm:$0xff] }
  0x37   :  { %1141 = vmatmul.mubr.f32.gmra.mxu0 %v40_v38  ;;  %v72_v38 = vld [vmem:[%s8620_s0 + $0x140] sm:$0xff] }
  0x38   :  { %4945 = vmatprep.mubr.msk.f32.mxu0 %vm451_vm0, %v43_v39  ;;  %v75_v39 = vld [vmem:[%s8620_s0 + $0x158] sm:$0xff] }
  0x39   :  { %1746 = vmatmul.mubr.f32.gmra.mxu1 %v282_v40  ;;  %v314_v40 = vld [vmem:[%s8620_s0 + $0x8d0] sm:$0xff] }
  0x3a   :  { %5066 = vmatprep.mubr.msk.f32.mxu1 %vm451_vm0, %v285_v41  ;;  %v317_v41 = vld [vmem:[%s8620_s0 + $0x8e8] sm:$0xff] }
  0x3b   :  { %1146 = vmatmul.mubr.f32.gmra.mxu0 %v42_v42  ;;  %v74_v42 = vld [vmem:[%s8620_s0 + $0x150] sm:$0xff] }
  0x3c   :  { %4946 = vmatprep.mubr.msk.f32.mxu0 %vm451_vm0, %v45_v43  ;;  %v77_v43 = vld [vmem:[%s8620_s0 + $0x168] sm:$0xff] }
  0x3d   :  { %1751 = vmatmul.mubr.f32.gmra.mxu1 %v284_v44  ;;  %v316_v44 = vld [vmem:[%s8620_s0 + $0x8e0] sm:$0xff] }
  0x3e   :  { %5067 = vmatprep.mubr.msk.f32.mxu1 %vm451_vm0, %v287_v45  ;;  %v319_v45 = vld [vmem:[%s8620_s0 + $0x8f8] sm:$0xff] }
  0x3f   :  { %1151 = vmatmul.mubr.f32.gmra.mxu0 %v44_v46  ;;  %v76_v46 = vld [vmem:[%s8620_s0 + $0x160] sm:$0xff] }
  0x40   :  { %4947 = vmatprep.mubr.msk.f32.mxu0 %vm451_vm0, %v47_v47  ;;  %v79_v47 = vld [vmem:[%s8620_s0 + $0x178] sm:$0xff] }
  0x41   :  { %1756 = vmatmul.mubr.f32.gmra.mxu1 %v286_v48  ;;  %v318_v48 = vld [vmem:[%s8620_s0 + $0x8f0] sm:$0xff] }
  0x42   :  { %5068 = vmatprep.mubr.msk.f32.mxu1 %vm451_vm0, %v289_v49  ;;  %v321_v49 = vld [vmem:[%s8620_s0 + $0x908] sm:$0xff] }
  0x43   :  { %1156 = vmatmul.mubr.f32.gmra.mxu0 %v46_v50  ;;  %v78_v50 = vld [vmem:[%s8620_s0 + $0x170] sm:$0xff] }
  0x44   :  { %4948 = vmatprep.mubr.msk.f32.mxu0 %vm451_vm0, %v49_v51  ;;  %v81_v51 = vld [vmem:[%s8620_s0 + $0x188] sm:$0xff] }
  0x45   :  { %1761 = vmatmul.mubr.f32.gmra.mxu1 %v288_v52  ;;  %v320_v52 = vld [vmem:[%s8620_s0 + $0x900] sm:$0xff] }
  0x46   :  { %5069 = vmatprep.mubr.msk.f32.mxu1 %vm451_vm0, %v291_v53  ;;  %v323_v53 = vld [vmem:[%s8620_s0 + $0x918] sm:$0xff] }
  0x47   :  { %1161 = vmatmul.mubr.f32.gmra.mxu0 %v48_v54  ;;  %v80_v54 = vld [vmem:[%s8620_s0 + $0x180] sm:$0xff] }
  0x48   :  { %4949 = vmatprep.mubr.msk.f32.mxu0 %vm451_vm0, %v51_v55  ;;  %v83_v55 = vld [vmem:[%s8620_s0 + $0x198] sm:$0xff] }
  0x49   :  { %1766 = vmatmul.mubr.f32.gmra.mxu1 %v290_v56  ;;  %v322_v56 = vld [vmem:[%s8620_s0 + $0x910] sm:$0xff] }
  0x4a   :  { %5070 = vmatprep.mubr.msk.f32.mxu1 %vm451_vm0, %v293_v57  ;;  %v325_v57 = vld [vmem:[%s8620_s0 + $0x928] sm:$0xff] }
  0x4b   :  { %1166 = vmatmul.mubr.f32.gmra.mxu0 %v50_v58  ;;  %v82_v58 = vld [vmem:[%s8620_s0 + $0x190] sm:$0xff] }
  0x4c   :  { %4950 = vmatprep.mubr.msk.f32.mxu0 %vm451_vm0, %v53_v59  ;;  %v85_v59 = vld [vmem:[%s8620_s0 + $0x1a8] sm:$0xff] }
  0x4d   :  { %1771 = vmatmul.mubr.f32.gmra.mxu1 %v292_v60  ;;  %v324_v60 = vld [vmem:[%s8620_s0 + $0x920] sm:$0xff] }
  0x4e   :  { %5071 = vmatprep.mubr.msk.f32.mxu1 %vm451_vm0, %v295_v61  ;;  %v327_v61 = vld [vmem:[%s8620_s0 + $0x938] sm:$0xff] }
  0x4f   :  { %1171 = vmatmul.mubr.f32.gmra.mxu0 %v52_v62  ;;  %v84_v62 = vld [vmem:[%s8620_s0 + $0x1a0] sm:$0xff] }
  0x50   :  { %4951 = vmatprep.mubr.msk.f32.mxu0 %vm451_vm0, %v55_v63  ;;  %v87_v63 = vld [vmem:[%s8620_s0 + $0x1b8] sm:$0xff] }
  0x51   :  { %1776 = vmatmul.mubr.f32.gmra.mxu1 %v294_v0  ;;  %v326_v0 = vld [vmem:[%s8620_s0 + $0x930] sm:$0xff] }
  0x52   :  { %5072 = vmatprep.mubr.msk.f32.mxu1 %vm451_vm0, %v297_v1  ;;  %v329_v1 = vld [vmem:[%s8620_s0 + $0x948] sm:$0xff] }
  0x53   :  { %1176 = vmatmul.mubr.f32.gmra.mxu0 %v54_v2  ;;  %v86_v2 = vld [vmem:[%s8620_s0 + $0x1b0] sm:$0xff] }
  0x54   :  { %4952 = vmatprep.mubr.msk.f32.mxu0 %vm451_vm0, %v57_v3  ;;  %v89_v3 = vld [vmem:[%s8620_s0 + $0x1c8] sm:$0xff] }
  0x55   :  { %1781 = vmatmul.mubr.f32.gmra.mxu1 %v296_v4  ;;  %v328_v4 = vld [vmem:[%s8620_s0 + $0x940] sm:$0xff] }
  0x56   :  { %5073 = vmatprep.mubr.msk.f32.mxu1 %vm451_vm0, %v299_v5  ;;  %v331_v5 = vld [vmem:[%s8620_s0 + $0x958] sm:$0xff] }
  0x57   :  { %1181 = vmatmul.mubr.f32.gmra.mxu0 %v56_v6  ;;  %v88_v6 = vld [vmem:[%s8620_s0 + $0x1c0] sm:$0xff] }
  0x58   :  { %4953 = vmatprep.mubr.msk.f32.mxu0 %vm451_vm0, %v59_v7  ;;  %v91_v7 = vld [vmem:[%s8620_s0 + $0x1d8] sm:$0xff] }
  0x59   :  { %1786 = vmatmul.mubr.f32.gmra.mxu1 %v298_v8  ;;  %v330_v8 = vld [vmem:[%s8620_s0 + $0x950] sm:$0xff] }
  0x5a   :  { %5074 = vmatprep.mubr.msk.f32.mxu1 %vm451_vm0, %v301_v9  ;;  %v333_v9 = vld [vmem:[%s8620_s0 + $0x968] sm:$0xff] }
  0x5b   :  { %1186 = vmatmul.mubr.f32.gmra.mxu0 %v58_v10  ;;  %v90_v10 = vld [vmem:[%s8620_s0 + $0x1d0] sm:$0xff] }
  0x5c   :  { %4954 = vmatprep.mubr.msk.f32.mxu0 %vm451_vm0, %v61_v11  ;;  %v93_v11 = vld [vmem:[%s8620_s0 + $0x1e8] sm:$0xff] }
  0x5d   :  { %1791 = vmatmul.mubr.f32.gmra.mxu1 %v300_v12  ;;  %v332_v12 = vld [vmem:[%s8620_s0 + $0x960] sm:$0xff] }
  0x5e   :  { %5075 = vmatprep.mubr.msk.f32.mxu1 %vm451_vm0, %v303_v13  ;;  %v335_v13 = vld [vmem:[%s8620_s0 + $0x978] sm:$0xff] }
  0x5f   :  { %1191 = vmatmul.mubr.f32.gmra.mxu0 %v60_v14  ;;  %v92_v14 = vld [vmem:[%s8620_s0 + $0x1e0] sm:$0xff] }
  0x60   :  { %4955 = vmatprep.mubr.msk.f32.mxu0 %vm451_vm0, %v63_v15  ;;  %v95_v15 = vld [vmem:[%s8620_s0 + $0x1f8] sm:$0xff] }
  0x61   :  { %1796 = vmatmul.mubr.f32.gmra.mxu1 %v302_v16  ;;  %v334_v16 = vld [vmem:[%s8620_s0 + $0x970] sm:$0xff] }
  0x62   :  { %5076 = vmatprep.mubr.msk.f32.mxu1 %vm451_vm0, %v305_v17  ;;  %v337_v17 = vld [vmem:[%s8620_s0 + $0x988] sm:$0xff] }
  0x63   :  { %1196 = vmatmul.mubr.f32.gmra.mxu0 %v62_v18  ;;  %v94_v18 = vld [vmem:[%s8620_s0 + $0x1f0] sm:$0xff] }
  0x64   :  { %4956 = vmatprep.mubr.msk.f32.mxu0 %vm451_vm0, %v65_v19  ;;  %v97_v19 = vld [vmem:[%s8620_s0 + $0x208] sm:$0xff] }
  0x65   :  { %1801 = vmatmul.mubr.f32.gmra.mxu1 %v304_v20  ;;  %v336_v20 = vld [vmem:[%s8620_s0 + $0x980] sm:$0xff] }
  0x66   :  { %5077 = vmatprep.mubr.msk.f32.mxu1 %vm451_vm0, %v307_v21  ;;  %v339_v21 = vld [vmem:[%s8620_s0 + $0x998] sm:$0xff] }
  0x67   :  { %1201 = vmatmul.mubr.f32.gmra.mxu0 %v64_v22  ;;  %v96_v22 = vld [vmem:[%s8620_s0 + $0x200] sm:$0xff] }
  0x68   :  { %4957 = vmatprep.mubr.msk.f32.mxu0 %vm451_vm0, %v67_v23  ;;  %v99_v23 = vld [vmem:[%s8620_s0 + $0x218] sm:$0xff] }
  0x69   :  { %1806 = vmatmul.mubr.f32.gmra.mxu1 %v306_v24  ;;  %v338_v24 = vld [vmem:[%s8620_s0 + $0x990] sm:$0xff] }
  0x6a   :  { %5078 = vmatprep.mubr.msk.f32.mxu1 %vm451_vm0, %v309_v25  ;;  %v341_v25 = vld [vmem:[%s8620_s0 + $0x9a8] sm:$0xff] }
  0x6b   :  { %1206 = vmatmul.mubr.f32.gmra.mxu0 %v66_v26  ;;  %v98_v26 = vld [vmem:[%s8620_s0 + $0x210] sm:$0xff] }
  0x6c   :  { %4958 = vmatprep.mubr.msk.f32.mxu0 %vm451_vm0, %v69_v27  ;;  %v101_v27 = vld [vmem:[%s8620_s0 + $0x228] sm:$0xff] }
  0x6d   :  { %1811 = vmatmul.mubr.f32.gmra.mxu1 %v308_v28  ;;  %v340_v28 = vld [vmem:[%s8620_s0 + $0x9a0] sm:$0xff] }
  0x6e   :  { %5079 = vmatprep.mubr.msk.f32.mxu1 %vm451_vm0, %v311_v29  ;;  %v343_v29 = vld [vmem:[%s8620_s0 + $0x9b8] sm:$0xff] }
  0x6f   :  { %1211 = vmatmul.mubr.f32.gmra.mxu0 %v68_v30  ;;  %v100_v30 = vld [vmem:[%s8620_s0 + $0x220] sm:$0xff] }
  0x70   :  { %4959 = vmatprep.mubr.msk.f32.mxu0 %vm451_vm0, %v71_v31  ;;  %v103_v31 = vld [vmem:[%s8620_s0 + $0x238] sm:$0xff] }
  0x71   :  { %1816 = vmatmul.mubr.f32.gmra.mxu1 %v310_v32  ;;  %v342_v32 = vld [vmem:[%s8620_s0 + $0x9b0] sm:$0xff] }
  0x72   :  { %5080 = vmatprep.mubr.msk.f32.mxu1 %vm451_vm0, %v313_v33  ;;  %v345_v33 = vld [vmem:[%s8620_s0 + $0x9c8] sm:$0xff] }
  0x73   :  { %1216 = vmatmul.mubr.f32.gmra.mxu0 %v70_v34  ;;  %v102_v34 = vld [vmem:[%s8620_s0 + $0x230] sm:$0xff] }
  0x74   :  { %4960 = vmatprep.mubr.msk.f32.mxu0 %vm451_vm0, %v73_v35  ;;  %v105_v35 = vld [vmem:[%s8620_s0 + $0x248] sm:$0xff] }
  0x75   :  { %1821 = vmatmul.mubr.f32.gmra.mxu1 %v312_v36  ;;  %v344_v36 = vld [vmem:[%s8620_s0 + $0x9c0] sm:$0xff] }
  0x76   :  { %5081 = vmatprep.mubr.msk.f32.mxu1 %vm451_vm0, %v315_v37  ;;  %v347_v37 = vld [vmem:[%s8620_s0 + $0x9d8] sm:$0xff] }
  0x77   :  { %1221 = vmatmul.mubr.f32.gmra.mxu0 %v72_v38  ;;  %v104_v38 = vld [vmem:[%s8620_s0 + $0x240] sm:$0xff] }
  0x78   :  { %4961 = vmatprep.mubr.msk.f32.mxu0 %vm451_vm0, %v75_v39  ;;  %v107_v39 = vld [vmem:[%s8620_s0 + $0x258] sm:$0xff] }
  0x79   :  { %1826 = vmatmul.mubr.f32.gmra.mxu1 %v314_v40  ;;  %v346_v40 = vld [vmem:[%s8620_s0 + $0x9d0] sm:$0xff] }
  0x7a   :  { %5082 = vmatprep.mubr.msk.f32.mxu1 %vm451_vm0, %v317_v41  ;;  %v349_v41 = vld [vmem:[%s8620_s0 + $0x9e8] sm:$0xff] }
  0x7b   :  { %1226 = vmatmul.mubr.f32.gmra.mxu0 %v74_v42  ;;  %v106_v42 = vld [vmem:[%s8620_s0 + $0x250] sm:$0xff] }
  0x7c   :  { %4962 = vmatprep.mubr.msk.f32.mxu0 %vm451_vm0, %v77_v43  ;;  %v109_v43 = vld [vmem:[%s8620_s0 + $0x268] sm:$0xff] }
  0x7d   :  { %1831 = vmatmul.mubr.f32.gmra.mxu1 %v316_v44  ;;  %v348_v44 = vld [vmem:[%s8620_s0 + $0x9e0] sm:$0xff] }
  0x7e   :  { %5083 = vmatprep.mubr.msk.f32.mxu1 %vm451_vm0, %v319_v45  ;;  %v351_v45 = vld [vmem:[%s8620_s0 + $0x9f8] sm:$0xff] }
  0x7f   :  { %1231 = vmatmul.mubr.f32.gmra.mxu0 %v76_v46  ;;  %v108_v46 = vld [vmem:[%s8620_s0 + $0x260] sm:$0xff] }
  0x80   :  { %4963 = vmatprep.mubr.msk.f32.mxu0 %vm451_vm0, %v79_v47  ;;  %v111_v47 = vld [vmem:[%s8620_s0 + $0x278] sm:$0xff] }
  0x81   :  { %1836 = vmatmul.mubr.f32.gmra.mxu1 %v318_v48  ;;  %v350_v48 = vld [vmem:[%s8620_s0 + $0x9f0] sm:$0xff] }
  0x82   :  { %5084 = vmatprep.mubr.msk.f32.mxu1 %vm451_vm0, %v321_v49  ;;  %v353_v49 = vld [vmem:[%s8620_s0 + $0xa08] sm:$0xff] }
  0x83   :  { %1236 = vmatmul.mubr.f32.gmra.mxu0 %v78_v50  ;;  %v110_v50 = vld [vmem:[%s8620_s0 + $0x270] sm:$0xff] }
  0x84   :  { %4964 = vmatprep.mubr.msk.f32.mxu0 %vm451_vm0, %v81_v51  ;;  %v113_v51 = vld [vmem:[%s8620_s0 + $0x288] sm:$0xff] }
  0x85   :  { %1841 = vmatmul.mubr.f32.gmra.mxu1 %v320_v52  ;;  %v352_v52 = vld [vmem:[%s8620_s0 + $0xa00] sm:$0xff] }
  0x86   :  { %5085 = vmatprep.mubr.msk.f32.mxu1 %vm451_vm0, %v323_v53  ;;  %v355_v53 = vld [vmem:[%s8620_s0 + $0xa18] sm:$0xff] }
  0x87   :  { %1241 = vmatmul.mubr.f32.gmra.mxu0 %v80_v54  ;;  %v112_v54 = vld [vmem:[%s8620_s0 + $0x280] sm:$0xff] }
  0x88   :  { %4965 = vmatprep.mubr.msk.f32.mxu0 %vm451_vm0, %v83_v55  ;;  %v115_v55 = vld [vmem:[%s8620_s0 + $0x298] sm:$0xff] }
  0x89   :  { %1846 = vmatmul.mubr.f32.gmra.mxu1 %v322_v56  ;;  %v354_v56 = vld [vmem:[%s8620_s0 + $0xa10] sm:$0xff] }
  0x8a   :  { %5086 = vmatprep.mubr.msk.f32.mxu1 %vm451_vm0, %v325_v57  ;;  %v357_v57 = vld [vmem:[%s8620_s0 + $0xa28] sm:$0xff] }
  0x8b   :  { %1246 = vmatmul.mubr.f32.gmra.mxu0 %v82_v58  ;;  %v114_v58 = vld [vmem:[%s8620_s0 + $0x290] sm:$0xff] }
  0x8c   :  { %4966 = vmatprep.mubr.msk.f32.mxu0 %vm451_vm0, %v85_v59  ;;  %v117_v59 = vld [vmem:[%s8620_s0 + $0x2a8] sm:$0xff] }
  0x8d   :  { %1851 = vmatmul.mubr.f32.gmra.mxu1 %v324_v60  ;;  %v356_v60 = vld [vmem:[%s8620_s0 + $0xa20] sm:$0xff] }
  0x8e   :  { %5087 = vmatprep.mubr.msk.f32.mxu1 %vm451_vm0, %v327_v61  ;;  %v359_v61 = vld [vmem:[%s8620_s0 + $0xa38] sm:$0xff] }
  0x8f   :  { %1251 = vmatmul.mubr.f32.gmra.mxu0 %v84_v62  ;;  %v116_v62 = vld [vmem:[%s8620_s0 + $0x2a0] sm:$0xff] }
  0x90   :  { %4967 = vmatprep.mubr.msk.f32.mxu0 %vm451_vm0, %v87_v63  ;;  %v119_v63 = vld [vmem:[%s8620_s0 + $0x2b8] sm:$0xff] }
  0x91   :  { %1856 = vmatmul.mubr.f32.gmra.mxu1 %v326_v0  ;;  %v358_v0 = vld [vmem:[%s8620_s0 + $0xa30] sm:$0xff] }
  0x92   :  { %5088 = vmatprep.mubr.msk.f32.mxu1 %vm451_vm0, %v329_v1  ;;  %v361_v1 = vld [vmem:[%s8620_s0 + $0xa48] sm:$0xff] }
  0x93   :  { %1256 = vmatmul.mubr.f32.gmra.mxu0 %v86_v2  ;;  %v118_v2 = vld [vmem:[%s8620_s0 + $0x2b0] sm:$0xff] }
  0x94   :  { %4968 = vmatprep.mubr.msk.f32.mxu0 %vm451_vm0, %v89_v3  ;;  %v121_v3 = vld [vmem:[%s8620_s0 + $0x2c8] sm:$0xff] }
  0x95   :  { %1861 = vmatmul.mubr.f32.gmra.mxu1 %v328_v4  ;;  %v360_v4 = vld [vmem:[%s8620_s0 + $0xa40] sm:$0xff] }
  0x96   :  { %5089 = vmatprep.mubr.msk.f32.mxu1 %vm451_vm0, %v331_v5  ;;  %v363_v5 = vld [vmem:[%s8620_s0 + $0xa58] sm:$0xff] }
  0x97   :  { %1261 = vmatmul.mubr.f32.gmra.mxu0 %v88_v6  ;;  %v120_v6 = vld [vmem:[%s8620_s0 + $0x2c0] sm:$0xff] }
  0x98   :  { %4969 = vmatprep.mubr.msk.f32.mxu0 %vm451_vm0, %v91_v7  ;;  %v123_v7 = vld [vmem:[%s8620_s0 + $0x2d8] sm:$0xff] }
  0x99   :  { %1866 = vmatmul.mubr.f32.gmra.mxu1 %v330_v8  ;;  %v362_v8 = vld [vmem:[%s8620_s0 + $0xa50] sm:$0xff] }
  0x9a   :  { %5090 = vmatprep.mubr.msk.f32.mxu1 %vm451_vm0, %v333_v9  ;;  %v365_v9 = vld [vmem:[%s8620_s0 + $0xa68] sm:$0xff] }
  0x9b   :  { %1266 = vmatmul.mubr.f32.gmra.mxu0 %v90_v10  ;;  %v122_v10 = vld [vmem:[%s8620_s0 + $0x2d0] sm:$0xff] }
  0x9c   :  { %4970 = vmatprep.mubr.msk.f32.mxu0 %vm451_vm0, %v93_v11  ;;  %v125_v11 = vld [vmem:[%s8620_s0 + $0x2e8] sm:$0xff] }
  0x9d   :  { %1871 = vmatmul.mubr.f32.gmra.mxu1 %v332_v12  ;;  %v364_v12 = vld [vmem:[%s8620_s0 + $0xa60] sm:$0xff] }
  0x9e   :  { %5091 = vmatprep.mubr.msk.f32.mxu1 %vm451_vm0, %v335_v13  ;;  %v367_v13 = vld [vmem:[%s8620_s0 + $0xa78] sm:$0xff] }
  0x9f   :  { %1271 = vmatmul.mubr.f32.gmra.mxu0 %v92_v14  ;;  %v124_v14 = vld [vmem:[%s8620_s0 + $0x2e0] sm:$0xff] }
  0xa0   :  { %4971 = vmatprep.mubr.msk.f32.mxu0 %vm451_vm0, %v95_v15  ;;  %v127_v15 = vld [vmem:[%s8620_s0 + $0x2f8] sm:$0xff] }
  0xa1   :  { %1876 = vmatmul.mubr.f32.gmra.mxu1 %v334_v16  ;;  %v366_v16 = vld [vmem:[%s8620_s0 + $0xa70] sm:$0xff] }
  0xa2   :  { %5092 = vmatprep.mubr.msk.f32.mxu1 %vm451_vm0, %v337_v17  ;;  %v369_v17 = vld [vmem:[%s8620_s0 + $0xa88] sm:$0xff] }
  0xa3   :  { %1276 = vmatmul.mubr.f32.gmra.mxu0 %v94_v18  ;;  %v126_v18 = vld [vmem:[%s8620_s0 + $0x2f0] sm:$0xff] }
  0xa4   :  { %4972 = vmatprep.mubr.msk.f32.mxu0 %vm451_vm0, %v97_v19  ;;  %v129_v19 = vld [vmem:[%s8620_s0 + $0x308] sm:$0xff] }
  0xa5   :  { %1881 = vmatmul.mubr.f32.gmra.mxu1 %v336_v20  ;;  %v368_v20 = vld [vmem:[%s8620_s0 + $0xa80] sm:$0xff] }
  0xa6   :  { %5093 = vmatprep.mubr.msk.f32.mxu1 %vm451_vm0, %v339_v21  ;;  %v371_v21 = vld [vmem:[%s8620_s0 + $0xa98] sm:$0xff] }
  0xa7   :  { %1281 = vmatmul.mubr.f32.gmra.mxu0 %v96_v22  ;;  %v128_v22 = vld [vmem:[%s8620_s0 + $0x300] sm:$0xff] }
  0xa8   :  { %4973 = vmatprep.mubr.msk.f32.mxu0 %vm451_vm0, %v99_v23  ;;  %v131_v23 = vld [vmem:[%s8620_s0 + $0x318] sm:$0xff] }
  0xa9   :  { %1886 = vmatmul.mubr.f32.gmra.mxu1 %v338_v24  ;;  %v370_v24 = vld [vmem:[%s8620_s0 + $0xa90] sm:$0xff] }
  0xaa   :  { %5094 = vmatprep.mubr.msk.f32.mxu1 %vm451_vm0, %v341_v25 }
  0xab   :  { %1286 = vmatmul.mubr.f32.gmra.mxu0 %v98_v26  ;;  %v373_v26 = vld [vmem:[%s8620_s0 + $0xaa8] sm:$0xff] }
  0xac   :  { %4974 = vmatprep.mubr.msk.f32.mxu0 %vm451_vm0, %v101_v27  ;;  %v130_v27 = vld [vmem:[%s8620_s0 + $0x310] sm:$0xff] }
  0xad   :  { %1891 = vmatmul.mubr.f32.gmra.mxu1 %v340_v28 }
  0xae   :  { %5095 = vmatprep.mubr.msk.f32.mxu1 %vm451_vm0, %v343_v29  ;;  %v133_v29 = vld [vmem:[%s8620_s0 + $0x328] sm:$0xff] }
  0xaf   :  { %1291 = vmatmul.mubr.f32.gmra.mxu0 %v100_v30 }
  0xb0   :  { %4975 = vmatprep.mubr.msk.f32.mxu0 %vm451_vm0, %v103_v31  ;;  %v372_v31 = vld [vmem:[%s8620_s0 + $0xaa0] sm:$0xff] }
  0xb1   :  { %1896 = vmatmul.mubr.f32.gmra.mxu1 %v342_v32 }
  0xb2   :  { %5096 = vmatprep.mubr.msk.f32.mxu1 %vm451_vm0, %v345_v33 }
  0xb3   :  { %1296 = vmatmul.mubr.f32.gmra.mxu0 %v102_v34  ;;  %v375_v34 = vld [vmem:[%s8620_s0 + $0xab8] sm:$0xff] }
  0xb4   :  { %4976 = vmatprep.mubr.msk.f32.mxu0 %vm451_vm0, %v105_v35  ;;  %v132_v35 = vld [vmem:[%s8620_s0 + $0x320] sm:$0xff] }
  0xb5   :  { %1901 = vmatmul.mubr.f32.gmra.mxu1 %v344_v36 }
  0xb6   :  { %5097 = vmatprep.mubr.msk.f32.mxu1 %vm451_vm0, %v347_v37  ;;  %v135_v37 = vld [vmem:[%s8620_s0 + $0x338] sm:$0xff] }
  0xb7   :  { %1301 = vmatmul.mubr.f32.gmra.mxu0 %v104_v38 }
  0xb8   :  { %4977 = vmatprep.mubr.msk.f32.mxu0 %vm451_vm0, %v107_v39  ;;  %v374_v39 = vld [vmem:[%s8620_s0 + $0xab0] sm:$0xff] }
  0xb9   :  { %1906 = vmatmul.mubr.f32.gmra.mxu1 %v346_v40  ;;  %v5142_v40 = vld [vmem:[%s8621_s3 + $0x18] sm:$0xff] }
  0xba   :  { %5098 = vmatprep.mubr.msk.f32.mxu1 %vm451_vm0, %v349_v41  ;;  %5378 = vmatprep.subr.mxu1 %v5142_v40 }
  0xbb   :  { %1306 = vmatmul.mubr.f32.gmra.mxu0 %v106_v42  ;;  %5379 = vmatpush3.msra.mxu1 %v5142_v40  ;;  %v148_v40 = vld [vmem:[%s8620_s0 + $0x3a0] sm:$0xff] }
  0xbc   :  { %4978 = vmatprep.mubr.msk.f32.mxu0 %vm451_vm0, %v109_v43  ;;  %v377_v43 = vld [vmem:[%s8620_s0 + $0xac8] sm:$0xff] }
  0xbd   :  { %1911 = vmatmul.mubr.f32.gmra.mxu1 %v348_v44  ;;  %v134_v44 = vld [vmem:[%s8620_s0 + $0x330] sm:$0xff] }
  0xbe   :  { %5099 = vmatprep.mubr.msk.f32.mxu1 %vm451_vm0, %v351_v45 }
  0xbf   :  { %1311 = vmatmul.mubr.f32.gmra.mxu0 %v108_v46  ;;  %v137_v46 = vld [vmem:[%s8620_s0 + $0x348] sm:$0xff] }
  0xc0   :  { %4979 = vmatprep.mubr.msk.f32.mxu0 %vm451_vm0, %v111_v47 }
  0xc1   :  { %1916 = vmatmul.mubr.f32.gmra.mxu1 %v350_v48  ;;  %v376_v48 = vld [vmem:[%s8620_s0 + $0xac0] sm:$0xff] }
  0xc2   :  { %5100 = vmatprep.mubr.msk.f32.mxu1 %vm451_vm0, %v353_v49 }
  0xc3   :  { %1316 = vmatmul.mubr.f32.gmra.mxu0 %v110_v50 }
  0xc4   :  { %4980 = vmatprep.mubr.msk.f32.mxu0 %vm451_vm0, %v113_v51  ;;  %v379_v51 = vld [vmem:[%s8620_s0 + $0xad8] sm:$0xff] }
  0xc5   :  { %1921 = vmatmul.mubr.f32.gmra.mxu1 %v352_v52  ;;  %v136_v52 = vld [vmem:[%s8620_s0 + $0x340] sm:$0xff] }
  0xc6   :  { %5101 = vmatprep.mubr.msk.f32.mxu1 %vm451_vm0, %v355_v53 }
  0xc7   :  { %1321 = vmatmul.mubr.f32.gmra.mxu0 %v112_v54  ;;  %v139_v54 = vld [vmem:[%s8620_s0 + $0x358] sm:$0xff] }
  0xc8   :  { %4981 = vmatprep.mubr.msk.f32.mxu0 %vm451_vm0, %v115_v55 }
  0xc9   :  { %1926 = vmatmul.mubr.f32.gmra.mxu1 %v354_v56  ;;  %v378_v56 = vld [vmem:[%s8620_s0 + $0xad0] sm:$0xff] }
  0xca   :  { %5102 = vmatprep.mubr.msk.f32.mxu1 %vm451_vm0, %v357_v57 }
  0xcb   :  { %1326 = vmatmul.mubr.f32.gmra.mxu0 %v114_v58 }
  0xcc   :  { %4982 = vmatprep.mubr.msk.f32.mxu0 %vm451_vm0, %v117_v59  ;;  %v381_v59 = vld [vmem:[%s8620_s0 + $0xae8] sm:$0xff] }
  0xcd   :  { %1931 = vmatmul.mubr.f32.gmra.mxu1 %v356_v60  ;;  %v138_v60 = vld [vmem:[%s8620_s0 + $0x350] sm:$0xff] }
  0xce   :  { %5103 = vmatprep.mubr.msk.f32.mxu1 %vm451_vm0, %v359_v61 }
  0xcf   :  { %1331 = vmatmul.mubr.f32.gmra.mxu0 %v116_v62  ;;  %v141_v62 = vld [vmem:[%s8620_s0 + $0x368] sm:$0xff] }
  0xd0   :  { %4983 = vmatprep.mubr.msk.f32.mxu0 %vm451_vm0, %v119_v63 }
  0xd1   :  { %1936 = vmatmul.mubr.f32.gmra.mxu1 %v358_v0  ;;  %v380_v0 = vld [vmem:[%s8620_s0 + $0xae0] sm:$0xff] }
  0xd2   :  { %5104 = vmatprep.mubr.msk.f32.mxu1 %vm451_vm0, %v361_v1 }
  0xd3   :  { %1336 = vmatmul.mubr.f32.gmra.mxu0 %v118_v2 }
  0xd4   :  { %4984 = vmatprep.mubr.msk.f32.mxu0 %vm451_vm0, %v121_v3  ;;  %v383_v3 = vld [vmem:[%s8620_s0 + $0xaf8] sm:$0xff] }
  0xd5   :  { %1941 = vmatmul.mubr.f32.gmra.mxu1 %v360_v4  ;;  %v140_v4 = vld [vmem:[%s8620_s0 + $0x360] sm:$0xff] }
  0xd6   :  { %5105 = vmatprep.mubr.msk.f32.mxu1 %vm451_vm0, %v363_v5 }
  0xd7   :  { %1341 = vmatmul.mubr.f32.gmra.mxu0 %v120_v6  ;;  %v143_v6 = vld [vmem:[%s8620_s0 + $0x378] sm:$0xff] }
  0xd8   :  { %4985 = vmatprep.mubr.msk.f32.mxu0 %vm451_vm0, %v123_v7 }
  0xd9   :  { %1946 = vmatmul.mubr.f32.gmra.mxu1 %v362_v8  ;;  %v382_v8 = vld [vmem:[%s8620_s0 + $0xaf0] sm:$0xff] }
  0xda   :  { %5106 = vmatprep.mubr.msk.f32.mxu1 %vm451_vm0, %v365_v9 }
  0xdb   :  { %1346 = vmatmul.mubr.f32.gmra.mxu0 %v122_v10 }
  0xdc   :  { %4986 = vmatprep.mubr.msk.f32.mxu0 %vm451_vm0, %v125_v11  ;;  %v385_v11 = vld [vmem:[%s8620_s0 + $0xb08] sm:$0xff] }
  0xdd   :  { %1951 = vmatmul.mubr.f32.gmra.mxu1 %v364_v12  ;;  %v142_v12 = vld [vmem:[%s8620_s0 + $0x370] sm:$0xff] }
  0xde   :  { %5107 = vmatprep.mubr.msk.f32.mxu1 %vm451_vm0, %v367_v13 }
  0xdf   :  { %1351 = vmatmul.mubr.f32.gmra.mxu0 %v124_v14  ;;  %v145_v14 = vld [vmem:[%s8620_s0 + $0x388] sm:$0xff] }
  0xe0   :  { %4987 = vmatprep.mubr.msk.f32.mxu0 %vm451_vm0, %v127_v15 }
  0xe1   :  { %1956 = vmatmul.mubr.f32.gmra.mxu1 %v366_v16  ;;  %v384_v16 = vld [vmem:[%s8620_s0 + $0xb00] sm:$0xff] }
  0xe2   :  { %5108 = vmatprep.mubr.msk.f32.mxu1 %vm451_vm0, %v369_v17 }
  0xe3   :  { %1356 = vmatmul.mubr.f32.gmra.mxu0 %v126_v18 }
  0xe4   :  { %4988 = vmatprep.mubr.msk.f32.mxu0 %vm451_vm0, %v129_v19  ;;  %v387_v19 = vld [vmem:[%s8620_s0 + $0xb18] sm:$0xff] }
  0xe5   :  { %1961 = vmatmul.mubr.f32.gmra.mxu1 %v368_v20  ;;  %v144_v20 = vld [vmem:[%s8620_s0 + $0x380] sm:$0xff] }
  0xe6   :  { %5109 = vmatprep.mubr.msk.f32.mxu1 %vm451_vm0, %v371_v21 }
  0xe7   :  { %v6497_v25 = vpop.f32.mrf.mxu0  ;;  %1361 = vmatmul.mubr.f32.gmra.mxu0 %v128_v22  ;;  %v147_v22 = vld [vmem:[%s8620_s0 + $0x398] sm:$0xff] }
  0xe8   :  { %4989 = vmatprep.mubr.msk.f32.mxu0 %vm451_vm0, %v131_v23 }
  0xe9   :  { %v1124_v28 = vpop.f32.mrf.mxu0  ;;  %v6509_v30 = vpop.f32.mrf.mxu1  ;;  %1966 = vmatmul.mubr.f32.gmra.mxu1 %v370_v24  ;;  %v386_v24 = vld [vmem:[%s8620_s0 + $0xb10] sm:$0xff] }
  0xea   :  { %5110 = vmatprep.mubr.msk.f32.mxu1 %vm451_vm0, %v373_v26  ;;  %v389_v28 = vld [vmem:[%s8620_s0 + $0xb28] sm:$0xff] }
  0xeb   :  { %v6515_v32 = vpop.f32.mrf.mxu0  ;;  %1366 = vmatmul.mubr.f32.gmra.mxu0 %v130_v27  ;;  %v1729_v33 = vpop.f32.mrf.mxu1 }
  0xec   :  { %4990 = vmatprep.mubr.msk.f32.mxu0 %vm451_vm0, %v133_v29  ;;  %v146_v29 = vld [vmem:[%s8620_s0 + $0x390] sm:$0xff]  ;;  %v149_v33 = vld [vmem:[%s8620_s0 + $0x3a8] sm:$0xff] }
  0xed   :  { %v1129_v36 = vpop.f32.mrf.mxu0  ;;  %v6527_v38 = vpop.f32.mrf.mxu1  ;;  %1971 = vmatmul.mubr.f32.gmra.mxu1 %v372_v31 }
  0xee   :  { %5111 = vmatprep.mubr.msk.f32.mxu1 %vm451_vm0, %v375_v34 }
  0xef   :  { %v6536_v41 = vpop.f32.mrf.mxu0  ;;  %1371 = vmatmul.mubr.f32.gmra.mxu0 %v132_v35  ;;  %v1734_v42 = vpop.f32.mrf.mxu1  ;;  %v388_v35 = vld [vmem:[%s8620_s0 + $0xb20] sm:$0xff] }
  0xf0   :  { %4991 = vmatprep.mubr.msk.f32.mxu0 %vm451_vm0, %v135_v37 }
  0xf1   :  { %v1134_v45 = vpop.f32.mrf.mxu0  ;;  %v6548_v47 = vpop.f32.mrf.mxu1  ;;  %1976 = vmatmul.mubr.f32.gmra.mxu1 %v374_v39  ;;  %v391_v39 = vld [vmem:[%s8620_s0 + $0xb38] sm:$0xff] }
  0xf2   :  { %5112 = vmatprep.mubr.msk.f32.mxu1 %vm451_vm0, %v377_v43  ;;  %v151_v43 = vld [vmem:[%s8620_s0 + $0x3b8] sm:$0xff]  ;;  %v390_v45 = vld [vmem:[%s8620_s0 + $0xb30] sm:$0xff] }
  0xf3   :  { %v6554_v49 = vpop.f32.mrf.mxu0  ;;  %1376 = vmatmul.mubr.f32.gmra.mxu0 %v134_v44  ;;  %v1739_v50 = vpop.f32.mrf.mxu1 }
  0xf4   :  { %4992 = vmatprep.mubr.msk.f32.mxu0 %vm451_vm0, %v137_v46  ;;  %v393_v50 = vld [vmem:[%s8620_s0 + $0xb48] sm:$0xff] }
  0xf5   :  { %v1139_v53 = vpop.f32.mrf.mxu0  ;;  %v6566_v55 = vpop.f32.mrf.mxu1  ;;  %1981 = vmatmul.mubr.f32.gmra.mxu1 %v376_v48 }
  0xf6   :  { %5113 = vmatprep.mubr.msk.f32.mxu1 %vm451_vm0, %v379_v51  ;;  %v150_v51 = vld [vmem:[%s8620_s0 + $0x3b0] sm:$0xff]  ;;  %v153_v53 = vld [vmem:[%s8620_s0 + $0x3c8] sm:$0xff] }
  0xf7   :  { %v6572_v57 = vpop.f32.mrf.mxu0  ;;  %1381 = vmatmul.mubr.f32.gmra.mxu0 %v136_v52  ;;  %v1744_v58 = vpop.f32.mrf.mxu1 }
  0xf8   :  { %4993 = vmatprep.mubr.msk.f32.mxu0 %vm451_vm0, %v139_v54 }
  0xf9   :  { %v1144_v61 = vpop.f32.mrf.mxu0  ;;  %v6584_v63 = vpop.f32.mrf.mxu1  ;;  %1986 = vmatmul.mubr.f32.gmra.mxu1 %v378_v56  ;;  %v392_v56 = vld [vmem:[%s8620_s0 + $0xb40] sm:$0xff] }
  0xfa   :  { %5114 = vmatprep.mubr.msk.f32.mxu1 %vm451_vm0, %v381_v59  ;;  %v152_v61 = vld [vmem:[%s8620_s0 + $0x3c0] sm:$0xff] }
  0xfb   :  { %v6590_v1 = vpop.f32.mrf.mxu0  ;;  %1386 = vmatmul.mubr.f32.gmra.mxu0 %v138_v60  ;;  %v1749_v2 = vpop.f32.mrf.mxu1  ;;  %v395_v60 = vld [vmem:[%s8620_s0 + $0xb58] sm:$0xff] }
  0xfc   :  { %4994 = vmatprep.mubr.msk.f32.mxu0 %vm451_vm0, %v141_v62 }
  0xfd   :  { %v1149_v5 = vpop.f32.mrf.mxu0  ;;  %v6602_v7 = vpop.f32.mrf.mxu1  ;;  %1991 = vmatmul.mubr.f32.gmra.mxu1 %v380_v0  ;;  %v155_v0 = vld [vmem:[%s8620_s0 + $0x3d8] sm:$0xff] }
  0xfe   :  { %5115 = vmatprep.mubr.msk.f32.mxu1 %vm451_vm0, %v383_v3  ;;  %v394_v3 = vld [vmem:[%s8620_s0 + $0xb50] sm:$0xff] }
  0xff   :  { %v6608_v9 = vpop.f32.mrf.mxu0  ;;  %1391 = vmatmul.mubr.f32.gmra.mxu0 %v140_v4  ;;  %v1754_v10 = vpop.f32.mrf.mxu1 }
 0x100   :  { %4995 = vmatprep.mubr.msk.f32.mxu0 %vm451_vm0, %v143_v6  ;;  %v397_v6 = vld [vmem:[%s8620_s0 + $0xb68] sm:$0xff] }
 0x101   :  { %v1154_v13 = vpop.f32.mrf.mxu0  ;;  %v6620_v15 = vpop.f32.mrf.mxu1  ;;  %1996 = vmatmul.mubr.f32.gmra.mxu1 %v382_v8  ;;  %v154_v8 = vld [vmem:[%s8620_s0 + $0x3d0] sm:$0xff] }
 0x102   :  { %5116 = vmatprep.mubr.msk.f32.mxu1 %vm451_vm0, %v385_v11  ;;  %v157_v11 = vld [vmem:[%s8620_s0 + $0x3e8] sm:$0xff]  ;;  %v396_v13 = vld [vmem:[%s8620_s0 + $0xb60] sm:$0xff] }
 0x103   :  { %v6626_v17 = vpop.f32.mrf.mxu0  ;;  %1396 = vmatmul.mubr.f32.gmra.mxu0 %v142_v12  ;;  %v1759_v18 = vpop.f32.mrf.mxu1 }
 0x104   :  { %4996 = vmatprep.mubr.msk.f32.mxu0 %vm451_vm0, %v145_v14  ;;  %v399_v18 = vld [vmem:[%s8620_s0 + $0xb78] sm:$0xff] }
 0x105   :  { %v1159_v21 = vpop.f32.mrf.mxu0  ;;  %v6638_v23 = vpop.f32.mrf.mxu1  ;;  %2001 = vmatmul.mubr.f32.gmra.mxu1 %v384_v16 }
 0x106   :  { %5117 = vmatprep.mubr.msk.f32.mxu1 %vm451_vm0, %v387_v19  ;;  %v156_v19 = vld [vmem:[%s8620_s0 + $0x3e0] sm:$0xff]  ;;  %v159_v21 = vld [vmem:[%s8620_s0 + $0x3f8] sm:$0xff] }
 0x107   :  { %v6644_v26 = vpop.f32.mrf.mxu0  ;;  %1401 = vmatmul.mubr.f32.gmra.mxu0 %v144_v20  ;;  %v1764_v27 = vpop.f32.mrf.mxu1 }
 0x108   :  { %4997 = vmatprep.mubr.msk.f32.mxu0 %vm451_vm0, %v147_v22 }
 0x109   :  { %v1164_v31 = vpop.f32.mrf.mxu0  ;;  %v6656_v34 = vpop.f32.mrf.mxu1  ;;  %2006 = vmatmul.mubr.f32.gmra.mxu1 %v386_v24  ;;  %v398_v24 = vld [vmem:[%s8620_s0 + $0xb70] sm:$0xff] }
 0x10a   :  { %5118 = vmatprep.mubr.msk.f32.mxu1 %vm451_vm0, %v389_v28  ;;  %v158_v31 = vld [vmem:[%s8620_s0 + $0x3f0] sm:$0xff] }
 0x10b   :  { %v6662_v36 = vpop.f32.mrf.mxu0  ;;  %1406 = vmatmul.mubr.f32.gmra.mxu0 %v146_v29  ;;  %v1769_v37 = vpop.f32.mrf.mxu1  ;;  %v401_v29 = vld [vmem:[%s8620_s0 + $0xb88] sm:$0xff] }
 0x10c   :  { %4998 = vmatprep.mubr.msk.f32.mxu0 %vm451_vm0, %v149_v33 }
 0x10d   :  { %v1169_v42 = vpop.f32.mrf.mxu0  ;;  %v6674_v44 = vpop.f32.mrf.mxu1  ;;  %2011 = vmatmul.mubr.f32.gmra.mxu1 %v388_v35  ;;  %v161_v35 = vld [vmem:[%s8620_s0 + $0x408] sm:$0xff] }
 0x10e   :  { %5119 = vmatprep.mubr.msk.f32.mxu1 %vm451_vm0, %v391_v39  ;;  %v400_v39 = vld [vmem:[%s8620_s0 + $0xb80] sm:$0xff] }
 0x10f   :  { %v6680_v46 = vpop.f32.mrf.mxu0  ;;  %1411 = vmatmul.mubr.f32.gmra.mxu0 %v148_v40  ;;  %v1774_v48 = vpop.f32.mrf.mxu1 }
 0x110   :  { %4999 = vmatprep.mubr.msk.f32.mxu0 %vm451_vm0, %v151_v43  ;;  %v403_v43 = vld [vmem:[%s8620_s0 + $0xb98] sm:$0xff] }
 0x111   :  { %v1174_v52 = vpop.f32.mrf.mxu0  ;;  %v6692_v54 = vpop.f32.mrf.mxu1  ;;  %2016 = vmatmul.mubr.f32.gmra.mxu1 %v390_v45  ;;  %v160_v45 = vld [vmem:[%s8620_s0 + $0x400] sm:$0xff] }
 0x112   :  { %5120 = vmatprep.mubr.msk.f32.mxu1 %vm451_vm0, %v393_v50  ;;  %v163_v50 = vld [vmem:[%s8620_s0 + $0x418] sm:$0xff]  ;;  %v402_v52 = vld [vmem:[%s8620_s0 + $0xb90] sm:$0xff] }
 0x113   :  { %v6698_v58 = vpop.f32.mrf.mxu0  ;;  %1416 = vmatmul.mubr.f32.gmra.mxu0 %v150_v51  ;;  %v1779_v59 = vpop.f32.mrf.mxu1 }
 0x114   :  { %5000 = vmatprep.mubr.msk.f32.mxu0 %vm451_vm0, %v153_v53  ;;  %v405_v59 = vld [vmem:[%s8620_s0 + $0xba8] sm:$0xff] }
 0x115   :  { %v1179_v62 = vpop.f32.mrf.mxu0  ;;  %v6710_v2 = vpop.f32.mrf.mxu1  ;;  %2021 = vmatmul.mubr.f32.gmra.mxu1 %v392_v56 }
 0x116   :  { %5121 = vmatprep.mubr.msk.f32.mxu1 %vm451_vm0, %v395_v60  ;;  %v162_v60 = vld [vmem:[%s8620_s0 + $0x410] sm:$0xff]  ;;  %v165_v62 = vld [vmem:[%s8620_s0 + $0x428] sm:$0xff] }
 0x117   :  { %v6716_v4 = vpop.f32.mrf.mxu0  ;;  %1421 = vmatmul.mubr.f32.gmra.mxu0 %v152_v61  ;;  %v1784_v5 = vpop.f32.mrf.mxu1 }
 0x118   :  { %5001 = vmatprep.mubr.msk.f32.mxu0 %vm451_vm0, %v155_v0 }
 0x119   :  { %v1184_v10 = vpop.f32.mrf.mxu0  ;;  %v6728_v12 = vpop.f32.mrf.mxu1  ;;  %2026 = vmatmul.mubr.f32.gmra.mxu1 %v394_v3  ;;  %v404_v3 = vld [vmem:[%s8620_s0 + $0xba0] sm:$0xff] }
 0x11a   :  { %5122 = vmatprep.mubr.msk.f32.mxu1 %vm451_vm0, %v397_v6  ;;  %v164_v10 = vld [vmem:[%s8620_s0 + $0x420] sm:$0xff] }
 0x11b   :  { %v6734_v14 = vpop.f32.mrf.mxu0  ;;  %1426 = vmatmul.mubr.f32.gmra.mxu0 %v154_v8  ;;  %v1789_v16 = vpop.f32.mrf.mxu1  ;;  %v407_v8 = vld [vmem:[%s8620_s0 + $0xbb8] sm:$0xff] }
 0x11c   :  { %5002 = vmatprep.mubr.msk.f32.mxu0 %vm451_vm0, %v157_v11 }
 0x11d   :  { %v1189_v20 = vpop.f32.mrf.mxu0  ;;  %v6746_v22 = vpop.f32.mrf.mxu1  ;;  %2031 = vmatmul.mubr.f32.gmra.mxu1 %v396_v13  ;;  %v167_v13 = vld [vmem:[%s8620_s0 + $0x438] sm:$0xff] }
 0x11e   :  { %5123 = vmatprep.mubr.msk.f32.mxu1 %vm451_vm0, %v399_v18  ;;  %v406_v18 = vld [vmem:[%s8620_s0 + $0xbb0] sm:$0xff] }
 0x11f   :  { %v6752_v27 = vpop.f32.mrf.mxu0  ;;  %1431 = vmatmul.mubr.f32.gmra.mxu0 %v156_v19  ;;  %v1794_v28 = vpop.f32.mrf.mxu1 }
 0x120   :  { %5003 = vmatprep.mubr.msk.f32.mxu0 %vm451_vm0, %v159_v21  ;;  %v409_v21 = vld [vmem:[%s8620_s0 + $0xbc8] sm:$0xff] }
 0x121   :  { %v1194_v33 = vpop.f32.mrf.mxu0  ;;  %v6764_v37 = vpop.f32.mrf.mxu1  ;;  %2036 = vmatmul.mubr.f32.gmra.mxu1 %v398_v24  ;;  %v166_v24 = vld [vmem:[%s8620_s0 + $0x430] sm:$0xff] }
 0x122   :  { %5124 = vmatprep.mubr.msk.f32.mxu1 %vm451_vm0, %v401_v29  ;;  %v169_v29 = vld [vmem:[%s8620_s0 + $0x448] sm:$0xff]  ;;  %v408_v33 = vld [vmem:[%s8620_s0 + $0xbc0] sm:$0xff] }
 0x123   :  { %v6770_v40 = vpop.f32.mrf.mxu0  ;;  %1436 = vmatmul.mubr.f32.gmra.mxu0 %v158_v31  ;;  %v1799_v42 = vpop.f32.mrf.mxu1 }
 0x124   :  { %5004 = vmatprep.mubr.msk.f32.mxu0 %vm451_vm0, %v161_v35  ;;  %v411_v42 = vld [vmem:[%s8620_s0 + $0xbd8] sm:$0xff] }
 0x125   :  { %v1199_v48 = vpop.f32.mrf.mxu0  ;;  %v6782_v51 = vpop.f32.mrf.mxu1  ;;  %2041 = vmatmul.mubr.f32.gmra.mxu1 %v400_v39 }
 0x126   :  { %5125 = vmatprep.mubr.msk.f32.mxu1 %vm451_vm0, %v403_v43  ;;  %v168_v43 = vld [vmem:[%s8620_s0 + $0x440] sm:$0xff]  ;;  %v171_v48 = vld [vmem:[%s8620_s0 + $0x458] sm:$0xff] }
 0x127   :  { %v6788_v53 = vpop.f32.mrf.mxu0  ;;  %1441 = vmatmul.mubr.f32.gmra.mxu0 %v160_v45  ;;  %v1804_v56 = vpop.f32.mrf.mxu1 }
 0x128   :  { %5005 = vmatprep.mubr.msk.f32.mxu0 %vm451_vm0, %v163_v50 }
 0x129   :  { %v1204_v61 = vpop.f32.mrf.mxu0  ;;  %v6800_v0 = vpop.f32.mrf.mxu1  ;;  %2046 = vmatmul.mubr.f32.gmra.mxu1 %v402_v52  ;;  %v410_v52 = vld [vmem:[%s8620_s0 + $0xbd0] sm:$0xff] }
 0x12a   :  { %8689 = vst [vmem:[#allocation2_spill] sm:$0xff] %v6800_v0  ;;  %5126 = vmatprep.mubr.msk.f32.mxu1 %vm451_vm0, %v405_v59  ;;  %v170_v61 = vld [vmem:[%s8620_s0 + $0x450] sm:$0xff] }
 0x12b   :  { %v6806_v5 = vpop.f32.mrf.mxu0  ;;  %1446 = vmatmul.mubr.f32.gmra.mxu0 %v162_v60  ;;  %v1809_v6 = vpop.f32.mrf.mxu1  ;;  %v413_v60 = vld [vmem:[%s8620_s0 + $0xbe8] sm:$0xff] }
 0x12c   :  { %5006 = vmatprep.mubr.msk.f32.mxu0 %vm451_vm0, %v165_v62 }
 0x12d   :  { %v1209_v11 = vpop.f32.mrf.mxu0  ;;  %v6818_v16 = vpop.f32.mrf.mxu1  ;;  %2051 = vmatmul.mubr.f32.gmra.mxu1 %v404_v3  ;;  %v173_v3 = vld [vmem:[%s8620_s0 + $0x468] sm:$0xff] }
 0x12e   :  { %8690 = vst [vmem:[#allocation3_spill] sm:$0xff] %v6818_v16  ;;  %5127 = vmatprep.mubr.msk.f32.mxu1 %vm451_vm0, %v407_v8  ;;  %v412_v8 = vld [vmem:[%s8620_s0 + $0xbe0] sm:$0xff] }
 0x12f   :  { %v6824_v19 = vpop.f32.mrf.mxu0  ;;  %1451 = vmatmul.mubr.f32.gmra.mxu0 %v164_v10  ;;  %v1814_v20 = vpop.f32.mrf.mxu1 }
 0x130   :  { %5007 = vmatprep.mubr.msk.f32.mxu0 %vm451_vm0, %v167_v13  ;;  %v415_v13 = vld [vmem:[%s8620_s0 + $0xbf8] sm:$0xff] }
 0x131   :  { %v1214_v28 = vpop.f32.mrf.mxu0  ;;  %v6836_v31 = vpop.f32.mrf.mxu1  ;;  %2056 = vmatmul.mubr.f32.gmra.mxu1 %v406_v18  ;;  %v172_v18 = vld [vmem:[%s8620_s0 + $0x460] sm:$0xff] }
 0x132   :  { %8691 = vst [vmem:[#allocation4_spill] sm:$0xff] %v6836_v31  ;;  %5128 = vmatprep.mubr.msk.f32.mxu1 %vm451_vm0, %v409_v21  ;;  %v175_v21 = vld [vmem:[%s8620_s0 + $0x478] sm:$0xff]  ;;  %v414_v28 = vld [vmem:[%s8620_s0 + $0xbf0] sm:$0xff] }
 0x133   :  { %v6842_v35 = vpop.f32.mrf.mxu0  ;;  %1456 = vmatmul.mubr.f32.gmra.mxu0 %v166_v24  ;;  %v1819_v39 = vpop.f32.mrf.mxu1 }
 0x134   :  { %5008 = vmatprep.mubr.msk.f32.mxu0 %vm451_vm0, %v169_v29  ;;  %v417_v39 = vld [vmem:[%s8620_s0 + $0xc08] sm:$0xff] }
 0x135   :  { %v1219_v45 = vpop.f32.mrf.mxu0  ;;  %v6854_v50 = vpop.f32.mrf.mxu1  ;;  %2061 = vmatmul.mubr.f32.gmra.mxu1 %v408_v33 }
 0x136   :  { %8692 = vst [vmem:[#allocation5_spill] sm:$0xff] %v6854_v50  ;;  %5129 = vmatprep.mubr.msk.f32.mxu1 %vm451_vm0, %v411_v42  ;;  %v174_v42 = vld [vmem:[%s8620_s0 + $0x470] sm:$0xff]  ;;  %v177_v45 = vld [vmem:[%s8620_s0 + $0x488] sm:$0xff] }
 0x137   :  { %v6860_v56 = vpop.f32.mrf.mxu0  ;;  %1461 = vmatmul.mubr.f32.gmra.mxu0 %v168_v43  ;;  %v1824_v59 = vpop.f32.mrf.mxu1 }
 0x138   :  { %5009 = vmatprep.mubr.msk.f32.mxu0 %vm451_vm0, %v171_v48 }
 0x139   :  { %v1224_v62 = vpop.f32.mrf.mxu0  ;;  %v6872_v6 = vpop.f32.mrf.mxu1  ;;  %2066 = vmatmul.mubr.f32.gmra.mxu1 %v410_v52  ;;  %v416_v52 = vld [vmem:[%s8620_s0 + $0xc00] sm:$0xff] }
 0x13a   :  { %8693 = vst [vmem:[#allocation6_spill] sm:$0xff] %v6872_v6  ;;  %5130 = vmatprep.mubr.msk.f32.mxu1 %vm451_vm0, %v413_v60  ;;  %v176_v62 = vld [vmem:[%s8620_s0 + $0x480] sm:$0xff] }
 0x13b   :  { %v6878_v10 = vpop.f32.mrf.mxu0  ;;  %1466 = vmatmul.mubr.f32.gmra.mxu0 %v170_v61  ;;  %v1829_v11 = vpop.f32.mrf.mxu1  ;;  %v419_v61 = vld [vmem:[%s8620_s0 + $0xc18] sm:$0xff] }
 0x13c   :  { %5010 = vmatprep.mubr.msk.f32.mxu0 %vm451_vm0, %v173_v3 }
 0x13d   :  { %v1229_v20 = vpop.f32.mrf.mxu0  ;;  %v6890_v24 = vpop.f32.mrf.mxu1  ;;  %2071 = vmatmul.mubr.f32.gmra.mxu1 %v412_v8  ;;  %v179_v8 = vld [vmem:[%s8620_s0 + $0x498] sm:$0xff] }
 0x13e   :  { %8694 = vst [vmem:[#allocation7_spill] sm:$0xff] %v6890_v24  ;;  %5131 = vmatprep.mubr.msk.f32.mxu1 %vm451_vm0, %v415_v13  ;;  %v418_v13 = vld [vmem:[%s8620_s0 + $0xc10] sm:$0xff] }
 0x13f   :  { %v6896_v29 = vpop.f32.mrf.mxu0  ;;  %1471 = vmatmul.mubr.f32.gmra.mxu0 %v172_v18  ;;  %v1834_v33 = vpop.f32.mrf.mxu1 }
 0x140   :  { %5011 = vmatprep.mubr.msk.f32.mxu0 %vm451_vm0, %v175_v21  ;;  %v421_v21 = vld [vmem:[%s8620_s0 + $0xc28] sm:$0xff] }
 0x141   :  { %v1234_v43 = vpop.f32.mrf.mxu0  ;;  %v6908_v48 = vpop.f32.mrf.mxu1  ;;  %2076 = vmatmul.mubr.f32.gmra.mxu1 %v414_v28  ;;  %v178_v28 = vld [vmem:[%s8620_s0 + $0x490] sm:$0xff] }
 0x142   :  { %8695 = vst [vmem:[#allocation8_spill] sm:$0xff] %v6908_v48  ;;  %5132 = vmatprep.mubr.msk.f32.mxu1 %vm451_vm0, %v417_v39  ;;  %v181_v39 = vld [vmem:[%s8620_s0 + $0x4a8] sm:$0xff]  ;;  %v420_v43 = vld [vmem:[%s8620_s0 + $0xc20] sm:$0xff] }
 0x143   :  { %v6914_v59 = vpop.f32.mrf.mxu0  ;;  %1476 = vmatmul.mubr.f32.gmra.mxu0 %v174_v42  ;;  %v1839_v60 = vpop.f32.mrf.mxu1 }
 0x144   :  { %5012 = vmatprep.mubr.msk.f32.mxu0 %vm451_vm0, %v177_v45  ;;  %v423_v60 = vld [vmem:[%s8620_s0 + $0xc38] sm:$0xff] }
 0x145   :  { %v1239_v3 = vpop.f32.mrf.mxu0  ;;  %v6926_v11 = vpop.f32.mrf.mxu1  ;;  %2081 = vmatmul.mubr.f32.gmra.mxu1 %v416_v52 }
 0x146   :  { %8696 = vst [vmem:[#allocation9_spill] sm:$0xff] %v6926_v11  ;;  %5133 = vmatprep.mubr.msk.f32.mxu1 %vm451_vm0, %v419_v61  ;;  %v180_v61 = vld [vmem:[%s8620_s0 + $0x4a0] sm:$0xff]  ;;  %v183_v3 = vld [vmem:[%s8620_s0 + $0x4b8] sm:$0xff] }
 0x147   :  { %v6932_v18 = vpop.f32.mrf.mxu0  ;;  %1481 = vmatmul.mubr.f32.gmra.mxu0 %v176_v62  ;;  %v1844_v20 = vpop.f32.mrf.mxu1 }
 0x148   :  { %5013 = vmatprep.mubr.msk.f32.mxu0 %vm451_vm0, %v179_v8 }
 0x149   :  { %v1244_v33 = vpop.f32.mrf.mxu0  ;;  %v6944_v42 = vpop.f32.mrf.mxu1  ;;  %2086 = vmatmul.mubr.f32.gmra.mxu1 %v418_v13  ;;  %v422_v13 = vld [vmem:[%s8620_s0 + $0xc30] sm:$0xff] }
 0x14a   :  { %8697 = vst [vmem:[#allocation10_spill] sm:$0xff] %v6944_v42  ;;  %5134 = vmatprep.mubr.msk.f32.mxu1 %vm451_vm0, %v421_v21  ;;  %v182_v33 = vld [vmem:[%s8620_s0 + $0x4b0] sm:$0xff] }
 0x14b   :  { %v6950_v45 = vpop.f32.mrf.mxu0  ;;  %1486 = vmatmul.mubr.f32.gmra.mxu0 %v178_v28  ;;  %v1849_v52 = vpop.f32.mrf.mxu1  ;;  %v425_v28 = vld [vmem:[%s8620_s0 + $0xc48] sm:$0xff] }
 0x14c   :  { %5014 = vmatprep.mubr.msk.f32.mxu0 %vm451_vm0, %v181_v39 }
 0x14d   :  { %v1249_v62 = vpop.f32.mrf.mxu0  ;;  %v6962_v8 = vpop.f32.mrf.mxu1  ;;  %2091 = vmatmul.mubr.f32.gmra.mxu1 %v420_v43  ;;  %v185_v43 = vld [vmem:[%s8620_s0 + $0x4c8] sm:$0xff] }
 0x14e   :  { %8698 = vst [vmem:[#allocation11_spill] sm:$0xff] %v6962_v8  ;;  %5135 = vmatprep.mubr.msk.f32.mxu1 %vm451_vm0, %v423_v60  ;;  %v424_v60 = vld [vmem:[%s8620_s0 + $0xc40] sm:$0xff] }
 0x14f   :  { %v6968_v20 = vpop.f32.mrf.mxu0  ;;  %1491 = vmatmul.mubr.f32.gmra.mxu0 %v180_v61  ;;  %v1854_v21 = vpop.f32.mrf.mxu1 }
 0x150   :  { %5015 = vmatprep.mubr.msk.f32.mxu0 %vm451_vm0, %v183_v3  ;;  %v427_v3 = vld [vmem:[%s8620_s0 + $0xc58] sm:$0xff] }
 0x151   :  { %v1254_v39 = vpop.f32.mrf.mxu0  ;;  %v6980_v52 = vpop.f32.mrf.mxu1  ;;  %2096 = vmatmul.mubr.f32.gmra.mxu1 %v422_v13  ;;  %v184_v13 = vld [vmem:[%s8620_s0 + $0x4c0] sm:$0xff] }
 0x152   :  { %8699 = vst [vmem:[#allocation12_spill] sm:$0xff] %v6980_v52  ;;  %5136 = vmatprep.mubr.msk.f32.mxu1 %vm451_vm0, %v425_v28  ;;  %v187_v28 = vld [vmem:[%s8620_s0 + $0x4d8] sm:$0xff] }
 0x153   :  { %v6986_v61 = vpop.f32.mrf.mxu0  ;;  %1496 = vmatmul.mubr.f32.gmra.mxu0 %v182_v33  ;;  %v1859_v62 = vpop.f32.mrf.mxu1  ;;  %v426_v33 = vld [vmem:[%s8620_s0 + $0xc50] sm:$0xff] }
 0x154   :  { %5016 = vmatprep.mubr.msk.f32.mxu0 %vm451_vm0, %v185_v43 }
 0x155   :  { %v1259_v21 = vpop.f32.mrf.mxu0  ;;  %v6998_v39 = vpop.f32.mrf.mxu1  ;;  %2101 = vmatmul.mubr.f32.gmra.mxu1 %v424_v60  ;;  %v186_v60 = vld [vmem:[%s8620_s0 + $0x4d0] sm:$0xff] }
 0x156   :  { %8700 = vst [vmem:[#allocation13_spill] sm:$0xff] %v6998_v39  ;;  %5137 = vmatprep.mubr.msk.f32.mxu1 %vm451_vm0, %v427_v3  ;;  %v429_v21 = vld [vmem:[%s8620_s0 + $0xc68] sm:$0xff] }
 0x157   :  { %v7004_v62 = vpop.f32.mrf.mxu0  ;;  %1501 = vmatmul.mubr.f32.gmra.mxu0 %v184_v13  ;;  %v1864_v43 = vpop.f32.mrf.mxu1  ;;  %v189_v3 = vld [vmem:[%s8620_s0 + $0x4e8] sm:$0xff]  ;;  %v428_v13 = vld [vmem:[%s8620_s0 + $0xc60] sm:$0xff] }
 0x158   :  { %5017 = vmatprep.mubr.msk.f32.mxu0 %vm451_vm0, %v187_v28 }
 0x159   :  { %v1264_v39 = vpop.f32.mrf.mxu0  ;;  %v7016_v52 = vpop.f32.mrf.mxu1  ;;  %2106 = vmatmul.mubr.f32.gmra.mxu1 %v426_v33  ;;  %v188_v33 = vld [vmem:[%s8620_s0 + $0x4e0] sm:$0xff] }
 0x15a   :  { %8701 = vst [vmem:[#allocation14_spill] sm:$0xff] %v7016_v52  ;;  %5138 = vmatprep.mubr.msk.f32.mxu1 %vm451_vm0, %v429_v21  ;;  %v431_v39 = vld [vmem:[%s8620_s0 + $0xc78] sm:$0xff] }
 0x15b   :  { %v7022_v43 = vpop.f32.mrf.mxu0  ;;  %1506 = vmatmul.mubr.f32.gmra.mxu0 %v186_v60  ;;  %v1869_v28 = vpop.f32.mrf.mxu1  ;;  %v191_v21 = vld [vmem:[%s8620_s0 + $0x4f8] sm:$0xff]  ;;  %v430_v60 = vld [vmem:[%s8620_s0 + $0xc70] sm:$0xff] }
 0x15c   :  { %5018 = vmatprep.mubr.msk.f32.mxu0 %vm451_vm0, %v189_v3 }
 0x15d   :  { %v1269_v52 = vpop.f32.mrf.mxu0  ;;  %v7034_v8 = vpop.f32.mrf.mxu1  ;;  %2111 = vmatmul.mubr.f32.gmra.mxu1 %v428_v13  ;;  %v193_v13 = vld [vmem:[%s8620_s0 + $0x508] sm:$0xff] }
 0x15e   :  { %8702 = vst [vmem:[#allocation15_spill] sm:$0xff] %v7034_v8  ;;  %5139 = vmatprep.mubr.msk.f32.mxu1 %vm451_vm0, %v431_v39  ;;  %v190_v52 = vld [vmem:[%s8620_s0 + $0x4f0] sm:$0xff] }
 0x15f   :  { %v7040_v28 = vpop.f32.mrf.mxu0  ;;  %1511 = vmatmul.mubr.f32.gmra.mxu0 %v188_v33  ;;  %v1874_v3 = vpop.f32.mrf.mxu1  ;;  %v192_v33 = vld [vmem:[%s8620_s0 + $0x500] sm:$0xff] }
 0x160   :  { %5019 = vmatprep.mubr.msk.f32.mxu0 %vm451_vm0, %v191_v21 }
 0x161   :  { %v1274_v42 = vpop.f32.mrf.mxu0  ;;  %v7049_v39 = vpop.f32.mrf.mxu1  ;;  %2116 = vmatmul.mubr.f32.gmra.mxu1 %v430_v60 }
 0x162   :  { %8703 = vst [vmem:[#allocation16_spill] sm:$0xff] %v7049_v39  ;;  %v195_v42 = vld [vmem:[%s8620_s0 + $0x518] sm:$0xff] }
 0x163   :  { %v7051_v8 = vpop.f32.mrf.mxu0  ;;  %1516 = vmatmul.mubr.f32.gmra.mxu0 %v190_v52  ;;  %v1879_v11 = vpop.f32.mrf.mxu1 }
 0x164   :  { %5020 = vmatprep.mubr.msk.f32.mxu0 %vm451_vm0, %v193_v13  ;;  %v194_v11 = vld [vmem:[%s8620_s0 + $0x510] sm:$0xff]  ;;  %v197_v13 = vld [vmem:[%s8620_s0 + $0x528] sm:$0xff] }
 0x165   :  { %v1279_v21 = vpop.f32.mrf.mxu0  ;;  %v7060_v3 = vpop.f32.mrf.mxu1 }
 0x166   :  { %8704 = vst [vmem:[#allocation17_spill] sm:$0xff] %v7060_v3 }
 0x167   :  { %v7062_v48 = vpop.f32.mrf.mxu0  ;;  %1521 = vmatmul.mubr.f32.gmra.mxu0 %v192_v33  ;;  %v1884_v60 = vpop.f32.mrf.mxu1  ;;  %v196_v33 = vld [vmem:[%s8620_s0 + $0x520] sm:$0xff] }
 0x168   :  { %5021 = vmatprep.mubr.msk.f32.mxu0 %vm451_vm0, %v195_v42  ;;  %v199_v60 = vld [vmem:[%s8620_s0 + $0x538] sm:$0xff] }
 0x169   :  { %v1284_v52 = vpop.f32.mrf.mxu0  ;;  %v7071_v21 = vpop.f32.mrf.mxu1 }
 0x16a   :  { %8705 = vst [vmem:[#allocation18_spill] sm:$0xff] %v7071_v21 }
 0x16b   :  { %v7073_v39 = vpop.f32.mrf.mxu0  ;;  %1526 = vmatmul.mubr.f32.gmra.mxu0 %v194_v11  ;;  %v1889_v3 = vpop.f32.mrf.mxu1 }
 0x16c   :  { %5022 = vmatprep.mubr.msk.f32.mxu0 %vm451_vm0, %v197_v13  ;;  %v198_v3 = vld [vmem:[%s8620_s0 + $0x530] sm:$0xff]  ;;  %v201_v13 = vld [vmem:[%s8620_s0 + $0x548] sm:$0xff] }
 0x16d   :  { %v1289_v42 = vpop.f32.mrf.mxu0  ;;  %v7082_v52 = vpop.f32.mrf.mxu1 }
 0x16e   :  { %8706 = vst [vmem:[#allocation19_spill] sm:$0xff] %v7082_v52 }
 0x16f   :  { %v7084_v24 = vpop.f32.mrf.mxu0  ;;  %1531 = vmatmul.mubr.f32.gmra.mxu0 %v196_v33  ;;  %v1894_v21 = vpop.f32.mrf.mxu1 }
 0x170   :  { %5023 = vmatprep.mubr.msk.f32.mxu0 %vm451_vm0, %v199_v60  ;;  %v200_v21 = vld [vmem:[%s8620_s0 + $0x540] sm:$0xff]  ;;  %v203_v60 = vld [vmem:[%s8620_s0 + $0x558] sm:$0xff] }
 0x171   :  { %v1294_v11 = vpop.f32.mrf.mxu0  ;;  %v7093_v42 = vpop.f32.mrf.mxu1 }
 0x172   :  { %8707 = vst [vmem:[#allocation20_spill] sm:$0xff] %v7093_v42 }
 0x173   :  { %v7095_v6 = vpop.f32.mrf.mxu0  ;;  %1536 = vmatmul.mubr.f32.gmra.mxu0 %v198_v3  ;;  %v1899_v52 = vpop.f32.mrf.mxu1 }
 0x174   :  { %5024 = vmatprep.mubr.msk.f32.mxu0 %vm451_vm0, %v201_v13  ;;  %v202_v52 = vld [vmem:[%s8620_s0 + $0x550] sm:$0xff]  ;;  %v205_v13 = vld [vmem:[%s8620_s0 + $0x568] sm:$0xff] }
 0x175   :  { %v1299_v33 = vpop.f32.mrf.mxu0  ;;  %v7104_v11 = vpop.f32.mrf.mxu1 }
 0x176   :  { %8708 = vst [vmem:[#allocation21_spill] sm:$0xff] %v7104_v11 }
 0x177   :  { %v7106_v50 = vpop.f32.mrf.mxu0  ;;  %1541 = vmatmul.mubr.f32.gmra.mxu0 %v200_v21  ;;  %v1904_v42 = vpop.f32.mrf.mxu1 }
 0x178   :  { %5025 = vmatprep.mubr.msk.f32.mxu0 %vm451_vm0, %v203_v60  ;;  %v204_v42 = vld [vmem:[%s8620_s0 + $0x560] sm:$0xff]  ;;  %v207_v60 = vld [vmem:[%s8620_s0 + $0x578] sm:$0xff] }
 0x179   :  { %v1304_v3 = vpop.f32.mrf.mxu0  ;;  %v7115_v33 = vpop.f32.mrf.mxu1 }
 0x17a   :  { %8709 = vst [vmem:[#allocation22_spill] sm:$0xff] %v7115_v33 }
 0x17b   :  { %v7117_v31 = vpop.f32.mrf.mxu0  ;;  %1546 = vmatmul.mubr.f32.gmra.mxu0 %v202_v52  ;;  %v1909_v11 = vpop.f32.mrf.mxu1 }
 0x17c   :  { %5026 = vmatprep.mubr.msk.f32.mxu0 %vm451_vm0, %v205_v13  ;;  %v206_v11 = vld [vmem:[%s8620_s0 + $0x570] sm:$0xff]  ;;  %v209_v13 = vld [vmem:[%s8620_s0 + $0x588] sm:$0xff] }
 0x17d   :  { %v1309_v21 = vpop.f32.mrf.mxu0  ;;  %v7126_v3 = vpop.f32.mrf.mxu1 }
 0x17e   :  { %8710 = vst [vmem:[#allocation23_spill] sm:$0xff] %v7126_v3 }
 0x17f   :  { %v7128_v16 = vpop.f32.mrf.mxu0  ;;  %1551 = vmatmul.mubr.f32.gmra.mxu0 %v204_v42  ;;  %v1914_v33 = vpop.f32.mrf.mxu1 }
 0x180   :  { %8711 = vst [vmem:[#allocation24_spill] sm:$0xff] %v7128_v16  ;;  %5027 = vmatprep.mubr.msk.f32.mxu0 %vm451_vm0, %v207_v60  ;;  %v208_v33 = vld [vmem:[%s8620_s0 + $0x580] sm:$0xff]  ;;  %v211_v60 = vld [vmem:[%s8620_s0 + $0x598] sm:$0xff] }
 0x181   :  { %v1314_v52 = vpop.f32.mrf.mxu0  ;;  %v7137_v21 = vpop.f32.mrf.mxu1 }
 0x182   :  { %8712 = vst [vmem:[#allocation25_spill] sm:$0xff] %v7137_v21 }
 0x183   :  { %v7139_v0 = vpop.f32.mrf.mxu0  ;;  %1556 = vmatmul.mubr.f32.gmra.mxu0 %v206_v11  ;;  %v1919_v3 = vpop.f32.mrf.mxu1 }
 0x184   :  { %8713 = vst [vmem:[#allocation26_spill] sm:$0xff] %v7139_v0  ;;  %5028 = vmatprep.mubr.msk.f32.mxu0 %vm451_vm0, %v209_v13  ;;  %v210_v3 = vld [vmem:[%s8620_s0 + $0x590] sm:$0xff]  ;;  %v213_v13 = vld [vmem:[%s8620_s0 + $0x5a8] sm:$0xff] }
 0x185   :  { %v1319_v42 = vpop.f32.mrf.mxu0  ;;  %v7148_v52 = vpop.f32.mrf.mxu1 }
 0x186   :  { %8714 = vst [vmem:[#allocation27_spill] sm:$0xff] %v7148_v52 }
 0x187   :  { %v7150_v16 = vpop.f32.mrf.mxu0  ;;  %1561 = vmatmul.mubr.f32.gmra.mxu0 %v208_v33  ;;  %v1924_v21 = vpop.f32.mrf.mxu1 }
 0x188   :  { %8715 = vst [vmem:[#allocation28_spill] sm:$0xff] %v7150_v16  ;;  %5029 = vmatprep.mubr.msk.f32.mxu0 %vm451_vm0, %v211_v60  ;;  %v212_v21 = vld [vmem:[%s8620_s0 + $0x5a0] sm:$0xff]  ;;  %v215_v60 = vld [vmem:[%s8620_s0 + $0x5b8] sm:$0xff] }
 0x189   :  { %v1324_v11 = vpop.f32.mrf.mxu0  ;;  %v7159_v42 = vpop.f32.mrf.mxu1 }
 0x18a   :  { %8716 = vst [vmem:[#allocation29_spill] sm:$0xff] %v7159_v42 }
 0x18b   :  { %v7161_v0 = vpop.f32.mrf.mxu0  ;;  %1566 = vmatmul.mubr.f32.gmra.mxu0 %v210_v3  ;;  %v1929_v52 = vpop.f32.mrf.mxu1 }
 0x18c   :  { %8717 = vst [vmem:[#allocation30_spill] sm:$0xff] %v7161_v0  ;;  %5030 = vmatprep.mubr.msk.f32.mxu0 %vm451_vm0, %v213_v13  ;;  %v214_v52 = vld [vmem:[%s8620_s0 + $0x5b0] sm:$0xff]  ;;  %v217_v13 = vld [vmem:[%s8620_s0 + $0x5c8] sm:$0xff] }
 0x18d   :  { %v1329_v33 = vpop.f32.mrf.mxu0  ;;  %v7170_v11 = vpop.f32.mrf.mxu1 }
 0x18e   :  { %8718 = vst [vmem:[#allocation31_spill] sm:$0xff] %v7170_v11  ;;  %v5141_v11 = vld [vmem:[%s8621_s3 + $0x10] sm:$0xff] }
 0x18f   :  { %v7172_v16 = vpop.f32.mrf.mxu0  ;;  %1571 = vmatmul.mubr.f32.gmra.mxu0 %v212_v21  ;;  %v1934_v42 = vpop.f32.mrf.mxu1  ;;  %5380 = vmatprep.subr.mxu1 %v5141_v11 }
 0x190   :  { %8719 = vst [vmem:[#allocation32_spill] sm:$0xff] %v7172_v16  ;;  %5031 = vmatprep.mubr.msk.f32.mxu0 %vm451_vm0, %v215_v60  ;;  %5381 = vmatpush3.msra.mxu1 %v5141_v11  ;;  %v216_v60 = vld [vmem:[%s8620_s0 + $0x5c0] sm:$0xff]  ;;  %v218_v11 = vld [vmem:[%s8620_s0 + $0x5d0] sm:$0xff] }
 0x191   :  { %v1334_v3 = vpop.f32.mrf.mxu0  ;;  %v7181_v33 = vpop.f32.mrf.mxu1 }
 0x192   :  { %8720 = vst [vmem:[#allocation33_spill] sm:$0xff] %v7181_v33  ;;  %v219_v33 = vld [vmem:[%s8620_s0 + $0x5d8] sm:$0xff] }
 0x193   :  { %v7186_v21 = vpop.f32.mrf.mxu0  ;;  %1576 = vmatmul.mubr.f32.gmra.mxu0 %v214_v52  ;;  %v1939_v42 = vpop.f32.mrf.mxu1 }
 0x194   :  { %8721 = vst [vmem:[#allocation34_spill] sm:$0xff] %v7186_v21  ;;  %5032 = vmatprep.mubr.msk.f32.mxu0 %vm451_vm0, %v217_v13  ;;  %v221_v13 = vld [vmem:[%s8620_s0 + $0x5e8] sm:$0xff] }
 0x195   :  { %v1339_v3 = vpop.f32.mrf.mxu0  ;;  %v7195_v16 = vpop.f32.mrf.mxu1 }
 0x196   :  { %8722 = vst [vmem:[#allocation35_spill] sm:$0xff] %v7195_v16 }
 0x197   :  { %v7197_v0 = vpop.f32.mrf.mxu0  ;;  %1581 = vmatmul.mubr.f32.gmra.mxu0 %v216_v60  ;;  %v1944_v21 = vpop.f32.mrf.mxu1  ;;  %v223_v60 = vld [vmem:[%s8620_s0 + $0x5f8] sm:$0xff] }
 0x198   :  { %8723 = vst [vmem:[#allocation36_spill] sm:$0xff] %v7197_v0  ;;  %5033 = vmatprep.mubr.msk.f32.mxu0 %vm451_vm0, %v219_v33  ;;  %v220_v33 = vld [vmem:[%s8620_s0 + $0x5e0] sm:$0xff] }
 0x199   :  { %v1344_v52 = vpop.f32.mrf.mxu0  ;;  %v7206_v42 = vpop.f32.mrf.mxu1 }
 0x19a   :  { %8724 = vst [vmem:[#allocation37_spill] sm:$0xff] %v7206_v42 }
 0x19b   :  { %v7208_v3 = vpop.f32.mrf.mxu0  ;;  %1586 = vmatmul.mubr.f32.gmra.mxu0 %v218_v11  ;;  %v1949_v16 = vpop.f32.mrf.mxu1 }
 0x19c   :  { %8725 = vst [vmem:[#allocation38_spill] sm:$0xff] %v7208_v3  ;;  %5034 = vmatprep.mubr.msk.f32.mxu0 %vm451_vm0, %v221_v13  ;;  %v222_v16 = vld [vmem:[%s8620_s0 + $0x5f0] sm:$0xff]  ;;  %v225_v13 = vld [vmem:[%s8620_s0 + $0x608] sm:$0xff] }
 0x19d   :  { %v1349_v21 = vpop.f32.mrf.mxu0  ;;  %v7217_v52 = vpop.f32.mrf.mxu1 }
 0x19e   :  { %8726 = vst [vmem:[#allocation39_spill] sm:$0xff] %v7217_v52 }
 0x19f   :  { %v7219_v0 = vpop.f32.mrf.mxu0  ;;  %1591 = vmatmul.mubr.f32.gmra.mxu0 %v220_v33  ;;  %v1954_v42 = vpop.f32.mrf.mxu1 }
 0x1a0   :  { %8727 = vst [vmem:[#allocation40_spill] sm:$0xff] %v7219_v0  ;;  %5035 = vmatprep.mubr.msk.f32.mxu0 %vm451_vm0, %v223_v60  ;;  %v224_v42 = vld [vmem:[%s8620_s0 + $0x600] sm:$0xff]  ;;  %v227_v60 = vld [vmem:[%s8620_s0 + $0x618] sm:$0xff] }
 0x1a1   :  { %v1354_v11 = vpop.f32.mrf.mxu0  ;;  %v7228_v21 = vpop.f32.mrf.mxu1 }
 0x1a2   :  { %8728 = vst [vmem:[#allocation41_spill] sm:$0xff] %v7228_v21 }
 0x1a3   :  { %v7230_v3 = vpop.f32.mrf.mxu0  ;;  %1596 = vmatmul.mubr.f32.gmra.mxu0 %v222_v16  ;;  %v1959_v52 = vpop.f32.mrf.mxu1 }
 0x1a4   :  { %8729 = vst [vmem:[#allocation42_spill] sm:$0xff] %v7230_v3  ;;  %5036 = vmatprep.mubr.msk.f32.mxu0 %vm451_vm0, %v225_v13  ;;  %v226_v52 = vld [vmem:[%s8620_s0 + $0x610] sm:$0xff]  ;;  %v229_v13 = vld [vmem:[%s8620_s0 + $0x628] sm:$0xff] }
 0x1a5   :  { %v1359_v33 = vpop.f32.mrf.mxu0  ;;  %v7239_v11 = vpop.f32.mrf.mxu1 }
 0x1a6   :  { %8730 = vst [vmem:[#allocation43_spill] sm:$0xff] %v7239_v11 }
 0x1a7   :  { %v7241_v0 = vpop.f32.mrf.mxu0  ;;  %1601 = vmatmul.mubr.f32.gmra.mxu0 %v224_v42  ;;  %v1964_v21 = vpop.f32.mrf.mxu1 }
 0x1a8   :  { %8731 = vst [vmem:[#allocation44_spill] sm:$0xff] %v7241_v0  ;;  %5037 = vmatprep.mubr.msk.f32.mxu0 %vm451_vm0, %v227_v60  ;;  %v228_v21 = vld [vmem:[%s8620_s0 + $0x620] sm:$0xff]  ;;  %v231_v60 = vld [vmem:[%s8620_s0 + $0x638] sm:$0xff] }
 0x1a9   :  { %v1364_v16 = vpop.f32.mrf.mxu0  ;;  %v7250_v33 = vpop.f32.mrf.mxu1 }
 0x1aa   :  { %8732 = vst [vmem:[#allocation45_spill] sm:$0xff] %v7250_v33 }
 0x1ab   :  { %v7252_v3 = vpop.f32.mrf.mxu0  ;;  %1606 = vmatmul.mubr.f32.gmra.mxu0 %v226_v52  ;;  %v1969_v11 = vpop.f32.mrf.mxu1 }
 0x1ac   :  { %8733 = vst [vmem:[#allocation46_spill] sm:$0xff] %v7252_v3  ;;  %5038 = vmatprep.mubr.msk.f32.mxu0 %vm451_vm0, %v229_v13  ;;  %v7265_v11 = vsel %vm2121_vm2, %v6497_v25, -inf  ;;  %v230_v13 = vld [vmem:[%s8620_s0 + $0x630] sm:$0xff] }
 0x1ad   :  { %v1369_v42 = vpop.f32.mrf.mxu0  ;;  %v7261_v16 = vpop.f32.mrf.mxu1  ;;  %8735 = vst [vmem:[#allocation48_spill] sm:$0xff] %v7265_v11 }
 0x1ae   :  { %8734 = vst [vmem:[#allocation47_spill] sm:$0xff] %v7261_v16 }
 0x1af   :  { %v1372_v0 = vpop.f32.mrf.mxu0  ;;  %1611 = vmatmul.mubr.f32.gmra.mxu0 %v228_v21  ;;  %v1974_v33 = vpop.f32.mrf.mxu1 }
 0x1b0   :  { %v7268_v52 = vsel %vm2121_vm2, %v1372_v0, -inf  ;;  %5039 = vmatprep.mubr.msk.f32.mxu0 %vm451_vm0, %v231_v60  ;;  %v233_v33 = vld [vmem:[%s8620_s0 + $0x648] sm:$0xff]  ;;  %v7283_v60 = vsel %vm2121_vm2, %v6515_v32, -inf }
 0x1b1   :  { %8736 = vst [vmem:[#allocation49_spill] sm:$0xff] %v7268_v52  ;;  %v1374_v16 = vpop.f32.mrf.mxu0  ;;  %v7279_v21 = vpop.f32.mrf.mxu1  ;;  %8737 = vst [vmem:[#allocation50_spill] sm:$0xff] %v7283_v60 }
 0x1b2   :  { %v232_v16 = vld [vmem:[%s8620_s0 + $0x640] sm:$0xff] }
 0x1b3   :  { %v1377_v25 = vpop.f32.mrf.mxu0  ;;  %1616 = vmatmul.mubr.f32.gmra.mxu0 %v230_v13  ;;  %v1979_v0 = vpop.f32.mrf.mxu1  ;;  %v235_v13 = vld [vmem:[%s8620_s0 + $0x658] sm:$0xff] }
 0x1b4   :  { %v7286_v3 = vsel %vm2121_vm2, %v1377_v25, -inf  ;;  %5040 = vmatprep.mubr.msk.f32.mxu0 %vm451_vm0, %v233_v33  ;;  %v7301_v33 = vsel %vm2121_vm2, %v6536_v41, -inf }
 0x1b5   :  { %8738 = vst [vmem:[#allocation51_spill] sm:$0xff] %v7286_v3  ;;  %v1379_v52 = vpop.f32.mrf.mxu0  ;;  %v7297_v0 = vpop.f32.mrf.mxu1  ;;  %8739 = vst [vmem:[#allocation52_spill] sm:$0xff] %v7301_v33 }
 0x1b6   :  { %v234_v52 = vld [vmem:[%s8620_s0 + $0x650] sm:$0xff] }
 0x1b7   :  { %v1382_v32 = vpop.f32.mrf.mxu0  ;;  %1621 = vmatmul.mubr.f32.gmra.mxu0 %v232_v16  ;;  %v1984_v25 = vpop.f32.mrf.mxu1  ;;  %v237_v16 = vld [vmem:[%s8620_s0 + $0x668] sm:$0xff] }
 0x1b8   :  { %v7304_v11 = vsel %vm2121_vm2, %v1382_v32, -inf  ;;  %5041 = vmatprep.mubr.msk.f32.mxu0 %vm451_vm0, %v235_v13  ;;  %v7319_v13 = vsel %vm2121_vm2, %v6554_v49, -inf }
 0x1b9   :  { %8740 = vst [vmem:[#allocation53_spill] sm:$0xff] %v7304_v11  ;;  %v1384_v3 = vpop.f32.mrf.mxu0  ;;  %v7315_v25 = vpop.f32.mrf.mxu1  ;;  %8741 = vst [vmem:[#allocation54_spill] sm:$0xff] %v7319_v13 }
 0x1ba   :  { %v236_v3 = vld [vmem:[%s8620_s0 + $0x660] sm:$0xff] }
 0x1bb   :  { %v1387_v41 = vpop.f32.mrf.mxu0  ;;  %1626 = vmatmul.mubr.f32.gmra.mxu0 %v234_v52  ;;  %v1989_v32 = vpop.f32.mrf.mxu1  ;;  %v239_v52 = vld [vmem:[%s8620_s0 + $0x678] sm:$0xff] }
 0x1bc   :  { %v7322_v60 = vsel %vm2121_vm2, %v1387_v41, -inf  ;;  %5042 = vmatprep.mubr.msk.f32.mxu0 %vm451_vm0, %v237_v16  ;;  %v7337_v16 = vsel %vm2121_vm2, %v6572_v57, -inf }
 0x1bd   :  { %8742 = vst [vmem:[#allocation55_spill] sm:$0xff] %v7322_v60  ;;  %v1389_v11 = vpop.f32.mrf.mxu0  ;;  %v7333_v32 = vpop.f32.mrf.mxu1  ;;  %8743 = vst [vmem:[#allocation56_spill] sm:$0xff] %v7337_v16 }
 0x1be   :  { %v238_v11 = vld [vmem:[%s8620_s0 + $0x670] sm:$0xff] }
 0x1bf   :  { %v1392_v49 = vpop.f32.mrf.mxu0  ;;  %1631 = vmatmul.mubr.f32.gmra.mxu0 %v236_v3  ;;  %v1994_v41 = vpop.f32.mrf.mxu1  ;;  %v241_v3 = vld [vmem:[%s8620_s0 + $0x688] sm:$0xff] }
 0x1c0   :  { %v7340_v33 = vsel %vm2121_vm2, %v1392_v49, -inf  ;;  %5043 = vmatprep.mubr.msk.f32.mxu0 %vm451_vm0, %v239_v52  ;;  %v7355_v52 = vsel %vm2121_vm2, %v6590_v1, -inf }
 0x1c1   :  { %8744 = vst [vmem:[#allocation57_spill] sm:$0xff] %v7340_v33  ;;  %v1394_v60 = vpop.f32.mrf.mxu0  ;;  %v7351_v41 = vpop.f32.mrf.mxu1  ;;  %8745 = vst [vmem:[#allocation58_spill] sm:$0xff] %v7355_v52 }
 0x1c2   :  { %v240_v60 = vld [vmem:[%s8620_s0 + $0x680] sm:$0xff] }
 0x1c3   :  { %v1397_v57 = vpop.f32.mrf.mxu0  ;;  %1636 = vmatmul.mubr.f32.gmra.mxu0 %v238_v11  ;;  %v1999_v49 = vpop.f32.mrf.mxu1  ;;  %v243_v11 = vld [vmem:[%s8620_s0 + $0x698] sm:$0xff] }
 0x1c4   :  { %v7358_v13 = vsel %vm2121_vm2, %v1397_v57, -inf  ;;  %5044 = vmatprep.mubr.msk.f32.mxu0 %vm451_vm0, %v241_v3  ;;  %v7373_v3 = vsel %vm2121_vm2, %v6608_v9, -inf }
 0x1c5   :  { %8746 = vst [vmem:[#allocation59_spill] sm:$0xff] %v7358_v13  ;;  %v1399_v33 = vpop.f32.mrf.mxu0  ;;  %v7369_v49 = vpop.f32.mrf.mxu1  ;;  %8747 = vst [vmem:[#allocation60_spill] sm:$0xff] %v7373_v3 }
 0x1c6   :  { %v242_v33 = vld [vmem:[%s8620_s0 + $0x690] sm:$0xff] }
 0x1c7   :  { %v1402_v1 = vpop.f32.mrf.mxu0  ;;  %1641 = vmatmul.mubr.f32.gmra.mxu0 %v240_v60  ;;  %v2004_v57 = vpop.f32.mrf.mxu1  ;;  %v245_v60 = vld [vmem:[%s8620_s0 + $0x6a8] sm:$0xff] }
 0x1c8   :  { %v7376_v16 = vsel %vm2121_vm2, %v1402_v1, -inf  ;;  %5045 = vmatprep.mubr.msk.f32.mxu0 %vm451_vm0, %v243_v11  ;;  %v7391_v11 = vsel %vm2121_vm2, %v6626_v17, -inf }
 0x1c9   :  { %8748 = vst [vmem:[#allocation61_spill] sm:$0xff] %v7376_v16  ;;  %v1404_v13 = vpop.f32.mrf.mxu0  ;;  %v7387_v57 = vpop.f32.mrf.mxu1  ;;  %8749 = vst [vmem:[#allocation62_spill] sm:$0xff] %v7391_v11 }
 0x1ca   :  { %v244_v13 = vld [vmem:[%s8620_s0 + $0x6a0] sm:$0xff] }
 0x1cb   :  { %v1407_v9 = vpop.f32.mrf.mxu0  ;;  %1646 = vmatmul.mubr.f32.gmra.mxu0 %v242_v33  ;;  %v2009_v1 = vpop.f32.mrf.mxu1  ;;  %v247_v33 = vld [vmem:[%s8620_s0 + $0x6b8] sm:$0xff] }
 0x1cc   :  { %v7394_v52 = vsel %vm2121_vm2, %v1407_v9, -inf  ;;  %5046 = vmatprep.mubr.msk.f32.mxu0 %vm451_vm0, %v245_v60  ;;  %v7409_v60 = vsel %vm2121_vm2, %v6644_v26, -inf }
 0x1cd   :  { %8750 = vst [vmem:[#allocation63_spill] sm:$0xff] %v7394_v52  ;;  %v1409_v16 = vpop.f32.mrf.mxu0  ;;  %v7405_v1 = vpop.f32.mrf.mxu1  ;;  %8751 = vst [vmem:[#allocation64_spill] sm:$0xff] %v7409_v60 }
 0x1ce   :  { %v246_v16 = vld [vmem:[%s8620_s0 + $0x6b0] sm:$0xff] }
 0x1cf   :  { %v1412_v17 = vpop.f32.mrf.mxu0  ;;  %1651 = vmatmul.mubr.f32.gmra.mxu0 %v244_v13  ;;  %v2014_v9 = vpop.f32.mrf.mxu1  ;;  %v249_v13 = vld [vmem:[%s8620_s0 + $0x6c8] sm:$0xff] }
 0x1d0   :  { %v7412_v3 = vsel %vm2121_vm2, %v1412_v17, -inf  ;;  %5047 = vmatprep.mubr.msk.f32.mxu0 %vm451_vm0, %v247_v33  ;;  %v7427_v33 = vsel %vm2121_vm2, %v6662_v36, -inf }
 0x1d1   :  { %8752 = vst [vmem:[#allocation65_spill] sm:$0xff] %v7412_v3  ;;  %v1414_v52 = vpop.f32.mrf.mxu0  ;;  %v7423_v9 = vpop.f32.mrf.mxu1  ;;  %8753 = vst [vmem:[#allocation66_spill] sm:$0xff] %v7427_v33 }
 0x1d2   :  { %v248_v52 = vld [vmem:[%s8620_s0 + $0x6c0] sm:$0xff] }
 0x1d3   :  { %v1417_v26 = vpop.f32.mrf.mxu0  ;;  %1656 = vmatmul.mubr.f32.gmra.mxu0 %v246_v16  ;;  %v2019_v17 = vpop.f32.mrf.mxu1  ;;  %v251_v16 = vld [vmem:[%s8620_s0 + $0x6d8] sm:$0xff] }
 0x1d4   :  { %v7430_v11 = vsel %vm2121_vm2, %v1417_v26, -inf  ;;  %5048 = vmatprep.mubr.msk.f32.mxu0 %vm451_vm0, %v249_v13  ;;  %v7445_v13 = vsel %vm2121_vm2, %v6680_v46, -inf }
 0x1d5   :  { %8754 = vst [vmem:[#allocation67_spill] sm:$0xff] %v7430_v11  ;;  %v1419_v3 = vpop.f32.mrf.mxu0  ;;  %v7441_v17 = vpop.f32.mrf.mxu1  ;;  %8755 = vst [vmem:[#allocation68_spill] sm:$0xff] %v7445_v13 }
 0x1d6   :  { %v250_v3 = vld [vmem:[%s8620_s0 + $0x6d0] sm:$0xff] }
 0x1d7   :  { %v1422_v36 = vpop.f32.mrf.mxu0  ;;  %1661 = vmatmul.mubr.f32.gmra.mxu0 %v248_v52  ;;  %v2024_v26 = vpop.f32.mrf.mxu1  ;;  %v253_v52 = vld [vmem:[%s8620_s0 + $0x6e8] sm:$0xff] }
 0x1d8   :  { %v7448_v60 = vsel %vm2121_vm2, %v1422_v36, -inf  ;;  %5049 = vmatprep.mubr.msk.f32.mxu0 %vm451_vm0, %v251_v16  ;;  %v7463_v16 = vsel %vm2121_vm2, %v6698_v58, -inf }
 0x1d9   :  { %8756 = vst [vmem:[#allocation69_spill] sm:$0xff] %v7448_v60  ;;  %v1424_v11 = vpop.f32.mrf.mxu0  ;;  %v7459_v26 = vpop.f32.mrf.mxu1  ;;  %8757 = vst [vmem:[#allocation70_spill] sm:$0xff] %v7463_v16 }
 0x1da   :  { %v252_v11 = vld [vmem:[%s8620_s0 + $0x6e0] sm:$0xff] }
 0x1db   :  { %v1427_v46 = vpop.f32.mrf.mxu0  ;;  %1666 = vmatmul.mubr.f32.gmra.mxu0 %v250_v3  ;;  %v2029_v36 = vpop.f32.mrf.mxu1  ;;  %v255_v3 = vld [vmem:[%s8620_s0 + $0x6f8] sm:$0xff] }
 0x1dc   :  { %v7466_v33 = vsel %vm2121_vm2, %v1427_v46, -inf  ;;  %5050 = vmatprep.mubr.msk.f32.mxu0 %vm451_vm0, %v253_v52  ;;  %v7481_v52 = vsel %vm2121_vm2, %v6716_v4, -inf }
 0x1dd   :  { %8758 = vst [vmem:[#allocation71_spill] sm:$0xff] %v7466_v33  ;;  %v1429_v60 = vpop.f32.mrf.mxu0  ;;  %v7477_v36 = vpop.f32.mrf.mxu1  ;;  %8759 = vst [vmem:[#allocation72_spill] sm:$0xff] %v7481_v52 }
 0x1de   :  { %v254_v60 = vld [vmem:[%s8620_s0 + $0x6f0] sm:$0xff] }
 0x1df   :  { %v1432_v58 = vpop.f32.mrf.mxu0  ;;  %1671 = vmatmul.mubr.f32.gmra.mxu0 %v252_v11  ;;  %v2034_v46 = vpop.f32.mrf.mxu1  ;;  %v257_v11 = vld [vmem:[%s8620_s0 + $0x708] sm:$0xff] }
 0x1e0   :  { %v7484_v13 = vsel %vm2121_vm2, %v1432_v58, -inf  ;;  %5051 = vmatprep.mubr.msk.f32.mxu0 %vm451_vm0, %v255_v3  ;;  %v7499_v3 = vsel %vm2121_vm2, %v6734_v14, -inf }
 0x1e1   :  { %8760 = vst [vmem:[#allocation73_spill] sm:$0xff] %v7484_v13  ;;  %v1434_v33 = vpop.f32.mrf.mxu0  ;;  %v7495_v46 = vpop.f32.mrf.mxu1  ;;  %8761 = vst [vmem:[#allocation74_spill] sm:$0xff] %v7499_v3 }
 0x1e2   :  { %v256_v33 = vld [vmem:[%s8620_s0 + $0x700] sm:$0xff] }
 0x1e3   :  { %v1437_v4 = vpop.f32.mrf.mxu0  ;;  %1676 = vmatmul.mubr.f32.gmra.mxu0 %v254_v60  ;;  %v2039_v58 = vpop.f32.mrf.mxu1  ;;  %v259_v60 = vld [vmem:[%s8620_s0 + $0x718] sm:$0xff] }
 0x1e4   :  { %v7502_v16 = vsel %vm2121_vm2, %v1437_v4, -inf  ;;  %5052 = vmatprep.mubr.msk.f32.mxu0 %vm451_vm0, %v257_v11  ;;  %v7517_v11 = vsel %vm2121_vm2, %v6752_v27, -inf }
 0x1e5   :  { %8762 = vst [vmem:[#allocation75_spill] sm:$0xff] %v7502_v16  ;;  %v1439_v13 = vpop.f32.mrf.mxu0  ;;  %v7513_v58 = vpop.f32.mrf.mxu1  ;;  %8763 = vst [vmem:[#allocation76_spill] sm:$0xff] %v7517_v11 }
 0x1e6   :  { %v258_v13 = vld [vmem:[%s8620_s0 + $0x710] sm:$0xff] }
 0x1e7   :  { %v1442_v14 = vpop.f32.mrf.mxu0  ;;  %1681 = vmatmul.mubr.f32.gmra.mxu0 %v256_v33  ;;  %v2044_v4 = vpop.f32.mrf.mxu1  ;;  %v261_v33 = vld [vmem:[%s8620_s0 + $0x728] sm:$0xff] }
 0x1e8   :  { %v7520_v52 = vsel %vm2121_vm2, %v1442_v14, -inf  ;;  %5053 = vmatprep.mubr.msk.f32.mxu0 %vm451_vm0, %v259_v60  ;;  %v7535_v60 = vsel %vm2121_vm2, %v6770_v40, -inf }
 0x1e9   :  { %8764 = vst [vmem:[#allocation77_spill] sm:$0xff] %v7520_v52  ;;  %v1444_v16 = vpop.f32.mrf.mxu0  ;;  %v7531_v4 = vpop.f32.mrf.mxu1  ;;  %8765 = vst [vmem:[#allocation78_spill] sm:$0xff] %v7535_v60 }
 0x1ea   :  { %v260_v16 = vld [vmem:[%s8620_s0 + $0x720] sm:$0xff] }
 0x1eb   :  { %v1447_v27 = vpop.f32.mrf.mxu0  ;;  %1686 = vmatmul.mubr.f32.gmra.mxu0 %v258_v13  ;;  %v2049_v14 = vpop.f32.mrf.mxu1  ;;  %v263_v13 = vld [vmem:[%s8620_s0 + $0x738] sm:$0xff] }
 0x1ec   :  { %v7538_v3 = vsel %vm2121_vm2, %v1447_v27, -inf  ;;  %5054 = vmatprep.mubr.msk.f32.mxu0 %vm451_vm0, %v261_v33  ;;  %v7553_v33 = vsel %vm2121_vm2, %v6788_v53, -inf }
 0x1ed   :  { %8766 = vst [vmem:[#allocation79_spill] sm:$0xff] %v7538_v3  ;;  %v1449_v52 = vpop.f32.mrf.mxu0  ;;  %v7549_v14 = vpop.f32.mrf.mxu1  ;;  %8767 = vst [vmem:[#allocation80_spill] sm:$0xff] %v7553_v33 }
 0x1ee   :  { %v262_v52 = vld [vmem:[%s8620_s0 + $0x730] sm:$0xff] }
 0x1ef   :  { %v1452_v40 = vpop.f32.mrf.mxu0  ;;  %1691 = vmatmul.mubr.f32.gmra.mxu0 %v260_v16  ;;  %v2054_v27 = vpop.f32.mrf.mxu1  ;;  %v265_v16 = vld [vmem:[%s8620_s0 + $0x748] sm:$0xff] }
 0x1f0   :  { %v7556_v11 = vsel %vm2121_vm2, %v1452_v40, -inf  ;;  %5055 = vmatprep.mubr.msk.f32.mxu0 %vm451_vm0, %v263_v13  ;;  %v7571_v13 = vsel %vm2121_vm2, %v6806_v5, -inf }
 0x1f1   :  { %8768 = vst [vmem:[#allocation81_spill] sm:$0xff] %v7556_v11  ;;  %v1454_v3 = vpop.f32.mrf.mxu0  ;;  %v7567_v27 = vpop.f32.mrf.mxu1  ;;  %8769 = vst [vmem:[#allocation82_spill] sm:$0xff] %v7571_v13 }
 0x1f2   :  { %v264_v3 = vld [vmem:[%s8620_s0 + $0x740] sm:$0xff] }
 0x1f3   :  { %v1457_v53 = vpop.f32.mrf.mxu0  ;;  %1696 = vmatmul.mubr.f32.gmra.mxu0 %v262_v52  ;;  %v2059_v40 = vpop.f32.mrf.mxu1  ;;  %v267_v52 = vld [vmem:[%s8620_s0 + $0x758] sm:$0xff] }
 0x1f4   :  { %v7574_v60 = vsel %vm2121_vm2, %v1457_v53, -inf  ;;  %5056 = vmatprep.mubr.msk.f32.mxu0 %vm451_vm0, %v265_v16  ;;  %v7589_v16 = vsel %vm2121_vm2, %v6824_v19, -inf }
 0x1f5   :  { %8770 = vst [vmem:[#allocation83_spill] sm:$0xff] %v7574_v60  ;;  %v1459_v11 = vpop.f32.mrf.mxu0  ;;  %v7585_v40 = vpop.f32.mrf.mxu1  ;;  %8771 = vst [vmem:[#allocation84_spill] sm:$0xff] %v7589_v16 }
 0x1f6   :  { %v266_v11 = vld [vmem:[%s8620_s0 + $0x750] sm:$0xff] }
 0x1f7   :  { %v1462_v5 = vpop.f32.mrf.mxu0  ;;  %1701 = vmatmul.mubr.f32.gmra.mxu0 %v264_v3  ;;  %v2064_v53 = vpop.f32.mrf.mxu1  ;;  %v269_v3 = vld [vmem:[%s8620_s0 + $0x768] sm:$0xff] }
 0x1f8   :  { %v7592_v33 = vsel %vm2121_vm2, %v1462_v5, -inf  ;;  %5057 = vmatprep.mubr.msk.f32.mxu0 %vm451_vm0, %v267_v52  ;;  %v7607_v52 = vsel %vm2121_vm2, %v6842_v35, -inf }
 0x1f9   :  { %8772 = vst [vmem:[#allocation85_spill] sm:$0xff] %v7592_v33  ;;  %v1464_v60 = vpop.f32.mrf.mxu0  ;;  %v7603_v53 = vpop.f32.mrf.mxu1  ;;  %8773 = vst [vmem:[#allocation86_spill] sm:$0xff] %v7607_v52 }
 0x1fa   :  { %v268_v60 = vld [vmem:[%s8620_s0 + $0x760] sm:$0xff] }
 0x1fb   :  { %v1467_v19 = vpop.f32.mrf.mxu0  ;;  %1706 = vmatmul.mubr.f32.gmra.mxu0 %v266_v11  ;;  %v2069_v5 = vpop.f32.mrf.mxu1  ;;  %v271_v11 = vld [vmem:[%s8620_s0 + $0x778] sm:$0xff] }
 0x1fc   :  { %v7610_v13 = vsel %vm2121_vm2, %v1467_v19, -inf  ;;  %5058 = vmatprep.mubr.msk.f32.mxu0 %vm451_vm0, %v269_v3  ;;  %v7625_v3 = vsel %vm2121_vm2, %v6860_v56, -inf }
 0x1fd   :  { %8774 = vst [vmem:[#allocation87_spill] sm:$0xff] %v7610_v13  ;;  %v1469_v33 = vpop.f32.mrf.mxu0  ;;  %v7621_v5 = vpop.f32.mrf.mxu1  ;;  %8775 = vst [vmem:[#allocation88_spill] sm:$0xff] %v7625_v3 }
 0x1fe   :  { %v270_v33 = vld [vmem:[%s8620_s0 + $0x770] sm:$0xff] }
 0x1ff   :  { %v1472_v35 = vpop.f32.mrf.mxu0  ;;  %1711 = vmatmul.mubr.f32.gmra.mxu0 %v268_v60  ;;  %v2074_v19 = vpop.f32.mrf.mxu1  ;;  %v273_v60 = vld [vmem:[%s8620_s0 + $0x788] sm:$0xff] }
 0x200   :  { %v7628_v16 = vsel %vm2121_vm2, %v1472_v35, -inf  ;;  %5059 = vmatprep.mubr.msk.f32.mxu0 %vm451_vm0, %v271_v11  ;;  %v2269_v11 = vsel %vm2121_vm2, %v6878_v10, -inf }
 0x201   :  { %8776 = vst [vmem:[#allocation89_spill] sm:$0xff] %v7628_v16  ;;  %v1474_v13 = vpop.f32.mrf.mxu0  ;;  %v7639_v19 = vpop.f32.mrf.mxu1 }
 0x202   :  { %8777 = vst [vmem:[#allocation90_spill] sm:$0xff] %v7639_v19  ;;  %v272_v13 = vld [vmem:[%s8620_s0 + $0x780] sm:$0xff]  ;;  %v2272_v19 = vsel %vm2121_vm2, %v6509_v30, -inf }
 0x203   :  { %v1477_v56 = vpop.f32.mrf.mxu0  ;;  %1716 = vmatmul.mubr.f32.gmra.mxu0 %v270_v33  ;;  %v2079_v35 = vpop.f32.mrf.mxu1  ;;  %v7654_v33 = vsel %vm2121_vm2, %v7279_v21, -inf  ;;  %v2279_v21 = vsel %vm2121_vm2, %v6527_v38, -inf }
 0x204   :  { %v2270_v52 = vsel %vm2121_vm2, %v1477_v56, -inf  ;;  %5060 = vmatprep.mubr.msk.f32.mxu0 %vm451_vm0, %v273_v60  ;;  %v2276_v35 = vsel %vm2121_vm2, %v6896_v29, -inf }
 0x205   :  { %v2271_v42 = vmax.f32 %v2269_v11, %v2270_v52  ;;  %v1479_v16 = vpop.f32.mrf.mxu0  ;;  %v7648_v3 = vpop.f32.mrf.mxu1 }
 0x206   :  { %8778 = vst [vmem:[#allocation91_spill] sm:$0xff] %v7648_v3 }
 0x207   :  { %v1482_v10 = vpop.f32.mrf.mxu0  ;;  %1721 = vmatmul.mubr.f32.gmra.mxu0 %v272_v13  ;;  %v7656_v56 = vmax.f32 %v2271_v42, %v2272_v19  ;;  %v2084_v60 = vpop.f32.mrf.mxu1  ;;  %v7669_v42 = vsel %vm2121_vm2, %v7297_v0, -inf }
 0x208   :  { %v2277_v52 = vsel %vm2121_vm2, %v1482_v10, -inf  ;;  %8779 = vst [vmem:[#allocation92_spill] sm:$0xff] %v7669_v42  ;;  %v2283_v10 = vsel %vm2121_vm2, %v6914_v59, -inf  ;;  %v7690_v59 = vsel %vm2121_vm2, %v7315_v25, -inf  ;;  %v7705_v25 = vsel %vm2121_vm2, %v7333_v32, -inf }
 0x209   :  { %v2278_v16 = vmax.f32 %v2276_v35, %v2277_v52  ;;  %v1484_v3 = vpop.f32.mrf.mxu0  ;;  %v7663_v30 = vpop.f32.mrf.mxu1  ;;  %v7720_v32 = vsel %vm2121_vm2, %v7351_v41, -inf  ;;  %v7735_v41 = vsel %vm2121_vm2, %v7369_v49, -inf  ;;  %v7750_v49 = vsel %vm2121_vm2, %v7387_v57, -inf }
 0x20a   :  { %v7679_v3 = vld [vmem:[%s8621_s3 + $0x8] sm:$0xff]  ;;  %v7765_v57 = vsel %vm2121_vm2, %v7405_v1, -inf  ;;  %v7778_v1 = vsel %vm2121_vm2, %v7423_v9, -inf  ;;  %v7791_v9 = vsel %vm2121_vm2, %v7441_v17, -inf  ;;  %v7804_v17 = vsel %vm2121_vm2, %v7459_v26, -inf }
 0x20b   :  { %v1487_v19 = vpop.f32.mrf.mxu0  ;;  %v7671_v13 = vmax.f32 %v2278_v16, %v2279_v21  ;;  %v2089_v29 = vpop.f32.mrf.mxu1  ;;  %5385 = vmatprep.subr.mxu1 %v7679_v3  ;;  %v2286_v16 = vsel %vm2121_vm2, %v6548_v47, -inf  ;;  %v2293_v47 = vsel %vm2121_vm2, %v6566_v55, -inf  ;;  %v2300_v55 = vsel %vm2121_vm2, %v6584_v63, -inf }
 0x20c   :  { %v2284_v60 = vsel %vm2121_vm2, %v1487_v19, -inf  ;;  %v2307_v63 = vsel %vm2121_vm2, %v6602_v7, -inf  ;;  %v2314_v7 = vsel %vm2121_vm2, %v6620_v15, -inf  ;;  %v2321_v15 = vsel %vm2121_vm2, %v6638_v23, -inf }
 0x20d   :  { %v2285_v35 = vmax.f32 %v2283_v10, %v2284_v60  ;;  %v1489_v0 = vpop.f32.mrf.mxu0  ;;  %v7683_v52 = vpop.f32.mrf.mxu1  ;;  %v2290_v10 = vsel %vm2121_vm2, %v6932_v18, -inf  ;;  %v2328_v23 = vsel %vm2121_vm2, %v6656_v34, -inf  ;;  %v2335_v34 = vsel %vm2121_vm2, %v6674_v44, -inf }
 0x20e   :  { %v2342_v44 = vsel %vm2121_vm2, %v6692_v54, -inf  ;;  %v2349_v54 = vsel %vm2121_vm2, %v6710_v2, -inf  ;;  %v7817_v26 = vsel %vm2121_vm2, %v7477_v36, -inf  ;;  %v2356_v2 = vsel %vm2121_vm2, %v6728_v12, -inf }
 0x20f   :  { %v1492_v21 = vpop.f32.mrf.mxu0  ;;  %v7692_v19 = vmax.f32 %v2285_v35, %v2286_v16  ;;  %v2094_v29 = vpop.f32.mrf.mxu1  ;;  %v7830_v36 = vsel %vm2121_vm2, %v7495_v46, -inf  ;;  %v2363_v12 = vsel %vm2121_vm2, %v6746_v22, -inf  ;;  %v7843_v46 = vsel %vm2121_vm2, %v7513_v58, -inf }
 0x210   :  { %v2291_v60 = vsel %vm2121_vm2, %v1492_v21, -inf  ;;  %v2297_v21 = vsel %vm2121_vm2, %v6950_v45, -inf  ;;  %v2370_v22 = vsel %vm2121_vm2, %v6764_v37, -inf  ;;  %v7856_v58 = vsel %vm2121_vm2, %v7531_v4, -inf }
 0x211   :  { %v2292_v0 = vmax.f32 %v2290_v10, %v2291_v60  ;;  %v1494_v11 = vpop.f32.mrf.mxu0  ;;  %v7699_v42 = vpop.f32.mrf.mxu1  ;;  %v2377_v37 = vsel %vm2121_vm2, %v6782_v51, -inf  ;;  %v7869_v4 = vsel %vm2121_vm2, %v7549_v14, -inf  ;;  %v7882_v14 = vsel %vm2121_vm2, %v7567_v27, -inf }
 0x212   :  { %v7895_v27 = vsel %vm2121_vm2, %v7585_v40, -inf  ;;  %v7908_v40 = vsel %vm2121_vm2, %v7603_v53, -inf  ;;  %v7921_v53 = vsel %vm2121_vm2, %v7621_v5, -inf }
 0x213   :  { %v1497_v35 = vpop.f32.mrf.mxu0  ;;  %v7707_v16 = vmax.f32 %v2292_v0, %v2293_v47  ;;  %v2099_v18 = vpop.f32.mrf.mxu1 }
 0x214   :  { %v2298_v29 = vsel %vm2121_vm2, %v1497_v35, -inf  ;;  %v2304_v35 = vsel %vm2121_vm2, %v6968_v20, -inf }
 0x215   :  { %v2299_v10 = vmax.f32 %v2297_v21, %v2298_v29  ;;  %v1499_v60 = vpop.f32.mrf.mxu0  ;;  %v7714_v38 = vpop.f32.mrf.mxu1 }
 0x217   :  { %v1502_v0 = vpop.f32.mrf.mxu0  ;;  %v7722_v47 = vmax.f32 %v2299_v10, %v2300_v55  ;;  %v2104_v45 = vpop.f32.mrf.mxu1 }
 0x218   :  { %v2305_v18 = vsel %vm2121_vm2, %v1502_v0, -inf  ;;  %v2311_v0 = vsel %vm2121_vm2, %v6986_v61, -inf }
 0x219   :  { %v2306_v21 = vmax.f32 %v2304_v35, %v2305_v18  ;;  %v1504_v60 = vpop.f32.mrf.mxu0  ;;  %v7729_v11 = vpop.f32.mrf.mxu1 }
 0x21b   :  { %v1507_v10 = vpop.f32.mrf.mxu0  ;;  %v7737_v55 = vmax.f32 %v2306_v21, %v2307_v63  ;;  %v2109_v20 = vpop.f32.mrf.mxu1 }
 0x21c   :  { %v2312_v45 = vsel %vm2121_vm2, %v1507_v10, -inf  ;;  %v2318_v10 = vsel %vm2121_vm2, %v7004_v62, -inf }
 0x21d   :  { %v2313_v35 = vmax.f32 %v2311_v0, %v2312_v45  ;;  %v1509_v60 = vpop.f32.mrf.mxu0  ;;  %v7744_v29 = vpop.f32.mrf.mxu1 }
 0x21f   :  { %v1512_v21 = vpop.f32.mrf.mxu0  ;;  %v7752_v63 = vmax.f32 %v2313_v35, %v2314_v7  ;;  %v2114_v61 = vpop.f32.mrf.mxu1 }
 0x220   :  { %v2319_v20 = vsel %vm2121_vm2, %v1512_v21, -inf  ;;  %v2325_v21 = vsel %vm2121_vm2, %v7022_v43, -inf  ;;  %v2332_v43 = vsel %vm2121_vm2, %v7040_v28, -inf  ;;  %v2339_v28 = vsel %vm2121_vm2, %v7051_v8, -inf }
 0x221   :  { %v2320_v0 = vmax.f32 %v2318_v10, %v2319_v20  ;;  %v1514_v60 = vpop.f32.mrf.mxu0  ;;  %v7759_v18 = vpop.f32.mrf.mxu1  ;;  %v2346_v8 = vsel %vm2121_vm2, %v7062_v48, -inf  ;;  %v2353_v48 = vsel %vm2121_vm2, %v7073_v39, -inf  ;;  %v2360_v39 = vsel %vm2121_vm2, %v7084_v24, -inf }
 0x222   :  { %v2367_v24 = vsel %vm2121_vm2, %v7095_v6, -inf  ;;  %v2374_v6 = vsel %vm2121_vm2, %v7106_v50, -inf  ;;  %v2381_v50 = vsel %vm2121_vm2, %v7117_v31, -inf }
 0x223   :  { %v1517_v35 = vpop.f32.mrf.mxu0  ;;  %v7767_v7 = vmax.f32 %v2320_v0, %v2321_v15  ;;  %v2119_v62 = vpop.f32.mrf.mxu1 }
 0x224   :  { %v2326_v61 = vsel %vm2121_vm2, %v1517_v35, -inf }
 0x225   :  { %v2327_v10 = vmax.f32 %v2325_v21, %v2326_v61  ;;  %v1519_v60 = vpop.f32.mrf.mxu0  ;;  %v8793_v21 = vld [vmem:[#allocation91_spill] sm:$0xff] }
 0x227   :  { %v1522_v0 = vpop.f32.mrf.mxu0  ;;  %v7780_v15 = vmax.f32 %v2327_v10, %v2328_v23 }
 0x228   :  { %v2333_v35 = vsel %vm2121_vm2, %v1522_v0, -inf }
 0x229   :  { %v2334_v62 = vmax.f32 %v2332_v43, %v2333_v35  ;;  %v1524_v61 = vpop.f32.mrf.mxu0 }
 0x22b   :  { %v1527_v60 = vpop.f32.mrf.mxu0  ;;  %v7793_v10 = vmax.f32 %v2334_v62, %v2335_v34 }
 0x22c   :  { %v2340_v23 = vsel %vm2121_vm2, %v1527_v60, -inf }
 0x22d   :  { %v2341_v0 = vmax.f32 %v2339_v28, %v2340_v23  ;;  %v1529_v35 = vpop.f32.mrf.mxu0  ;;  %v8789_v28 = vld [vmem:[#allocation90_spill] sm:$0xff] }
 0x22e   :  { %v7934_v5 = vsel %vm2121_vm2, %v8789_v28, -inf  ;;  %v7947_v28 = vsel %vm2121_vm2, %v8793_v21, -inf  ;;  %v7960_v21 = vsel %vm2121_vm2, %v7663_v30, -inf  ;;  %v7973_v30 = vsel %vm2121_vm2, %v7683_v52, -inf }
 0x22f   :  { %v1532_v61 = vpop.f32.mrf.mxu0  ;;  %v7806_v62 = vmax.f32 %v2341_v0, %v2342_v44  ;;  %v7986_v52 = vsel %vm2121_vm2, %v7699_v42, -inf  ;;  %v7999_v42 = vsel %vm2121_vm2, %v7714_v38, -inf  ;;  %v8012_v38 = vsel %vm2121_vm2, %v7729_v11, -inf }
 0x230   :  { %v2347_v34 = vsel %vm2121_vm2, %v1532_v61, -inf  ;;  %8810 = vst [vmem:[#allocation90_spill] sm:$0xff] %v7999_v42  ;;  %v8025_v11 = vsel %vm2121_vm2, %v7744_v29, -inf  ;;  %v8038_v29 = vsel %vm2121_vm2, %v7759_v18, -inf }
 0x231   :  { %v2348_v60 = vmax.f32 %v2346_v8, %v2347_v34  ;;  %v1534_v23 = vpop.f32.mrf.mxu0 }
 0x233   :  { %v1537_v35 = vpop.f32.mrf.mxu0  ;;  %v7819_v0 = vmax.f32 %v2348_v60, %v2349_v54 }
 0x234   :  { %v2354_v44 = vsel %vm2121_vm2, %v1537_v35, -inf }
 0x235   :  { %v2355_v61 = vmax.f32 %v2353_v48, %v2354_v44  ;;  %v1539_v34 = vpop.f32.mrf.mxu0 }
 0x237   :  { %v1542_v23 = vpop.f32.mrf.mxu0  ;;  %v7832_v60 = vmax.f32 %v2355_v61, %v2356_v2 }
 0x238   :  { %v2361_v54 = vsel %vm2121_vm2, %v1542_v23, -inf }
 0x239   :  { %v2362_v35 = vmax.f32 %v2360_v39, %v2361_v54  ;;  %v1544_v44 = vpop.f32.mrf.mxu0 }
 0x23b   :  { %v1547_v34 = vpop.f32.mrf.mxu0  ;;  %v7845_v61 = vmax.f32 %v2362_v35, %v2363_v12 }
 0x23c   :  { %v2368_v2 = vsel %vm2121_vm2, %v1547_v34, -inf }
 0x23d   :  { %v2369_v23 = vmax.f32 %v2367_v24, %v2368_v2  ;;  %v1549_v54 = vpop.f32.mrf.mxu0 }
 0x23f   :  { %v1552_v44 = vpop.f32.mrf.mxu0  ;;  %v7858_v35 = vmax.f32 %v2369_v23, %v2370_v22 }
 0x240   :  { %v2375_v12 = vsel %vm2121_vm2, %v1552_v44, -inf }
 0x241   :  { %v2376_v34 = vmax.f32 %v2374_v6, %v2375_v12  ;;  %v1554_v2 = vpop.f32.mrf.mxu0  ;;  %v8782_v6 = vld [vmem:[#allocation3_spill] sm:$0xff] }
 0x242   :  { %v8780_v2 = vld [vmem:[#allocation2_spill] sm:$0xff] }
 0x243   :  { %v1557_v54 = vpop.f32.mrf.mxu0  ;;  %v7871_v23 = vmax.f32 %v2376_v34, %v2377_v37  ;;  %v2384_v51 = vsel %vm2121_vm2, %v8780_v2, -inf  ;;  %v8781_v37 = vld [vmem:[#allocation24_spill] sm:$0xff]  ;;  %v2391_v2 = vsel %vm2121_vm2, %v8782_v6, -inf  ;;  %8790 = vst [vmem:[#allocation2_spill] sm:$0xff] %v7934_v5 }
 0x244   :  { %v2382_v22 = vsel %vm2121_vm2, %v1557_v54, -inf  ;;  %v2388_v31 = vsel %vm2121_vm2, %v8781_v37, -inf  ;;  %8794 = vst [vmem:[#allocation24_spill] sm:$0xff] %v7947_v28 }
 0x245   :  { %v2383_v44 = vmax.f32 %v2381_v50, %v2382_v22  ;;  %v1559_v12 = vpop.f32.mrf.mxu0  ;;  %v8784_v22 = vld [vmem:[#allocation4_spill] sm:$0xff] }
 0x246   :  { %v2398_v6 = vsel %vm2121_vm2, %v8784_v22, -inf }
 0x247   :  { %v1562_v24 = vpop.f32.mrf.mxu0  ;;  %v7884_v34 = vmax.f32 %v2383_v44, %v2384_v51  ;;  %v8783_v51 = vld [vmem:[#allocation26_spill] sm:$0xff] }
 0x248   :  { %v2389_v54 = vsel %vm2121_vm2, %v1562_v24, -inf  ;;  %v2395_v37 = vsel %vm2121_vm2, %v8783_v51, -inf  ;;  %8798 = vst [vmem:[#allocation26_spill] sm:$0xff] %v7960_v21 }
 0x249   :  { %v2390_v50 = vmax.f32 %v2388_v31, %v2389_v54  ;;  %v1564_v12 = vpop.f32.mrf.mxu0  ;;  %v8786_v54 = vld [vmem:[#allocation5_spill] sm:$0xff] }
 0x24a   :  { %v2405_v22 = vsel %vm2121_vm2, %v8786_v54, -inf }
 0x24b   :  { %v1567_v39 = vpop.f32.mrf.mxu0  ;;  %v7897_v44 = vmax.f32 %v2390_v50, %v2391_v2  ;;  %v8785_v2 = vld [vmem:[#allocation28_spill] sm:$0xff] }
 0x24c   :  { %v2396_v24 = vsel %vm2121_vm2, %v1567_v39, -inf  ;;  %v2402_v51 = vsel %vm2121_vm2, %v8785_v2, -inf  ;;  %8802 = vst [vmem:[#allocation28_spill] sm:$0xff] %v7973_v30 }
 0x24d   :  { %v2397_v31 = vmax.f32 %v2395_v37, %v2396_v24  ;;  %v1569_v12 = vpop.f32.mrf.mxu0  ;;  %v8788_v24 = vld [vmem:[#allocation6_spill] sm:$0xff] }
 0x24e   :  { %v2412_v54 = vsel %vm2121_vm2, %v8788_v24, -inf }
 0x24f   :  { %v1572_v48 = vpop.f32.mrf.mxu0  ;;  %v7910_v50 = vmax.f32 %v2397_v31, %v2398_v6  ;;  %v8787_v6 = vld [vmem:[#allocation30_spill] sm:$0xff] }
 0x250   :  { %v2403_v39 = vsel %vm2121_vm2, %v1572_v48, -inf  ;;  %v2409_v2 = vsel %vm2121_vm2, %v8787_v6, -inf  ;;  %8806 = vst [vmem:[#allocation30_spill] sm:$0xff] %v7986_v52 }
 0x251   :  { %v2404_v37 = vmax.f32 %v2402_v51, %v2403_v39  ;;  %v1574_v12 = vpop.f32.mrf.mxu0  ;;  %v8792_v39 = vld [vmem:[#allocation7_spill] sm:$0xff] }
 0x252   :  { %v2419_v24 = vsel %vm2121_vm2, %v8792_v39, -inf  ;;  %8814 = vst [vmem:[#allocation7_spill] sm:$0xff] %v8012_v38 }
 0x253   :  { %v1577_v8 = vpop.f32.mrf.mxu0  ;;  %v7923_v31 = vmax.f32 %v2404_v37, %v2405_v22  ;;  %v8791_v22 = vld [vmem:[#allocation32_spill] sm:$0xff] }
 0x254   :  { %v2410_v48 = vsel %vm2121_vm2, %v1577_v8, -inf  ;;  %v2416_v6 = vsel %vm2121_vm2, %v8791_v22, -inf }
 0x255   :  { %v2411_v51 = vmax.f32 %v2409_v2, %v2410_v48  ;;  %v1579_v12 = vpop.f32.mrf.mxu0  ;;  %v8797_v48 = vld [vmem:[#allocation8_spill] sm:$0xff] }
 0x256   :  { %v2426_v39 = vsel %vm2121_vm2, %v8797_v48, -inf }
 0x257   :  { %v1582_v43 = vpop.f32.mrf.mxu0  ;;  %v7936_v37 = vmax.f32 %v2411_v51, %v2412_v54  ;;  %v8796_v54 = vld [vmem:[#allocation34_spill] sm:$0xff] }
 0x258   :  { %v2417_v8 = vsel %vm2121_vm2, %v1582_v43, -inf  ;;  %v2423_v22 = vsel %vm2121_vm2, %v8796_v54, -inf  ;;  %8818 = vst [vmem:[#allocation34_spill] sm:$0xff] %v8025_v11 }
 0x259   :  { %v2418_v2 = vmax.f32 %v2416_v6, %v2417_v8  ;;  %v1584_v12 = vpop.f32.mrf.mxu0  ;;  %v8801_v8 = vld [vmem:[#allocation9_spill] sm:$0xff] }
 0x25a   :  { %v2433_v48 = vsel %vm2121_vm2, %v8801_v8, -inf }
 0x25b   :  { %v1587_v20 = vpop.f32.mrf.mxu0  ;;  %v7949_v51 = vmax.f32 %v2418_v2, %v2419_v24  ;;  %v8800_v24 = vld [vmem:[#allocation36_spill] sm:$0xff] }
 0x25c   :  { %v2424_v43 = vsel %vm2121_vm2, %v1587_v20, -inf  ;;  %v2430_v54 = vsel %vm2121_vm2, %v8800_v24, -inf  ;;  %8822 = vst [vmem:[#allocation36_spill] sm:$0xff] %v8038_v29 }
 0x25d   :  { %8795 = vst [vmem:[#allocation3_spill] sm:$0xff] %v7949_v51  ;;  %v2425_v6 = vmax.f32 %v2423_v22, %v2424_v43  ;;  %v1589_v12 = vpop.f32.mrf.mxu0  ;;  %v8805_v43 = vld [vmem:[#allocation10_spill] sm:$0xff] }
 0x25e   :  { %v2440_v8 = vsel %vm2121_vm2, %v8805_v43, -inf }
 0x25f   :  { %v1592_v45 = vpop.f32.mrf.mxu0  ;;  %v7962_v2 = vmax.f32 %v2425_v6, %v2426_v39  ;;  %v8804_v39 = vld [vmem:[#allocation38_spill] sm:$0xff] }
 0x260   :  { %v2431_v20 = vsel %vm2121_vm2, %v1592_v45, -inf  ;;  %v2437_v24 = vsel %vm2121_vm2, %v8804_v39, -inf }
 0x261   :  { %8799 = vst [vmem:[#allocation4_spill] sm:$0xff] %v7962_v2  ;;  %v2432_v22 = vmax.f32 %v2430_v54, %v2431_v20  ;;  %v1594_v12 = vpop.f32.mrf.mxu0  ;;  %v8809_v20 = vld [vmem:[#allocation11_spill] sm:$0xff] }
 0x262   :  { %v2447_v43 = vsel %vm2121_vm2, %v8809_v20, -inf }
 0x263   :  { %v1597_v28 = vpop.f32.mrf.mxu0  ;;  %v7975_v6 = vmax.f32 %v2432_v22, %v2433_v48  ;;  %v8808_v48 = vld [vmem:[#allocation40_spill] sm:$0xff] }
 0x264   :  { %v2438_v45 = vsel %vm2121_vm2, %v1597_v28, -inf  ;;  %v2444_v39 = vsel %vm2121_vm2, %v8808_v48, -inf }
 0x265   :  { %8803 = vst [vmem:[#allocation5_spill] sm:$0xff] %v7975_v6  ;;  %v2439_v54 = vmax.f32 %v2437_v24, %v2438_v45  ;;  %v1599_v12 = vpop.f32.mrf.mxu0  ;;  %v8813_v45 = vld [vmem:[#allocation12_spill] sm:$0xff] }
 0x266   :  { %v2454_v20 = vsel %vm2121_vm2, %v8813_v45, -inf  ;;  %v8831_v6 = vld [vmem:[#allocation16_spill] sm:$0xff] }
 0x267   :  { %v1602_v21 = vpop.f32.mrf.mxu0  ;;  %v7988_v22 = vmax.f32 %v2439_v54, %v2440_v8  ;;  %v8812_v8 = vld [vmem:[#allocation42_spill] sm:$0xff] }
 0x268   :  { %v2445_v28 = vsel %vm2121_vm2, %v1602_v21, -inf  ;;  %v2451_v48 = vsel %vm2121_vm2, %v8812_v8, -inf }
 0x269   :  { %8807 = vst [vmem:[#allocation6_spill] sm:$0xff] %v7988_v22  ;;  %v2446_v24 = vmax.f32 %v2444_v39, %v2445_v28  ;;  %v1604_v12 = vpop.f32.mrf.mxu0  ;;  %v8817_v28 = vld [vmem:[#allocation13_spill] sm:$0xff] }
 0x26a   :  { %v2461_v45 = vsel %vm2121_vm2, %v8817_v28, -inf }
 0x26b   :  { %v1607_v30 = vpop.f32.mrf.mxu0  ;;  %v8001_v54 = vmax.f32 %v2446_v24, %v2447_v43  ;;  %v8816_v43 = vld [vmem:[#allocation44_spill] sm:$0xff] }
 0x26c   :  { %v2452_v21 = vsel %vm2121_vm2, %v1607_v30, -inf  ;;  %v2458_v8 = vsel %vm2121_vm2, %v8816_v43, -inf }
 0x26d   :  { %8811 = vst [vmem:[#allocation32_spill] sm:$0xff] %v8001_v54  ;;  %v2453_v39 = vmax.f32 %v2451_v48, %v2452_v21  ;;  %v1609_v12 = vpop.f32.mrf.mxu0  ;;  %v8821_v21 = vld [vmem:[#allocation14_spill] sm:$0xff] }
 0x26e   :  { %v2468_v28 = vsel %vm2121_vm2, %v8821_v21, -inf  ;;  %v8828_v54 = vld [vmem:[#allocation50_spill] sm:$0xff] }
 0x26f   :  { %v1612_v52 = vpop.f32.mrf.mxu0  ;;  %v8014_v24 = vmax.f32 %v2453_v39, %v2454_v20  ;;  %v8820_v20 = vld [vmem:[#allocation46_spill] sm:$0xff] }
 0x270   :  { %v2459_v30 = vsel %vm2121_vm2, %v1612_v52, -inf  ;;  %v2465_v43 = vsel %vm2121_vm2, %v8820_v20, -inf  ;;  %v8824_v20 = vld [vmem:[#allocation48_spill] sm:$0xff] }
 0x271   :  { %8815 = vst [vmem:[#allocation91_spill] sm:$0xff] %v8014_v24  ;;  %v2460_v48 = vmax.f32 %v2458_v8, %v2459_v30  ;;  %v1614_v12 = vpop.f32.mrf.mxu0  ;;  %v8825_v24 = vld [vmem:[#allocation49_spill] sm:$0xff]  ;;  %v8827_v30 = vld [vmem:[#allocation15_spill] sm:$0xff] }
 0x272   :  { %v2127_v21 = vsel %vm2121_vm2, %v8827_v30, -inf }
 0x273   :  { %v1617_v42 = vpop.f32.mrf.mxu0  ;;  %v8027_v39 = vmax.f32 %v2460_v48, %v2461_v45 }
 0x274   :  { %v2466_v52 = vsel %vm2121_vm2, %v1617_v42, -inf  ;;  %v8826_v42 = vmax.f32 %v8824_v20, %v8825_v24  ;;  %v2134_v24 = vsel %vm2121_vm2, %v8831_v6, -inf }
 0x275   :  { %8819 = vst [vmem:[#allocation8_spill] sm:$0xff] %v8027_v39  ;;  %v2467_v8 = vmax.f32 %v2465_v43, %v2466_v52  ;;  %v1619_v12 = vpop.f32.mrf.mxu0  ;;  %v8833_v52 = vld [vmem:[#allocation53_spill] sm:$0xff] }
 0x277   :  { %v1622_v38 = vpop.f32.mrf.mxu0  ;;  %v8040_v48 = vmax.f32 %v2467_v8, %v2468_v28  ;;  %v8829_v8 = vld [vmem:[#allocation51_spill] sm:$0xff] }
 0x278   :  { %v2125_v45 = vsel %vm2121_vm2, %v1622_v38, -inf  ;;  %v8830_v28 = vmax.f32 %v8828_v54, %v8829_v8  ;;  %v8065_v54 = vld [vmem:[%s8622_s2] ss:$0 sm:$0xff]  ;;  %v8837_v8 = vld [vmem:[#allocation55_spill] sm:$0xff] }
 0x279   :  { %8823 = vst [vmem:[#allocation9_spill] sm:$0xff] %v8040_v48  ;;  %v2126_v43 = vmax.f32 %v8826_v42, %v2125_v45  ;;  %v1624_v12 = vpop.f32.mrf.mxu0 }
 0x27a   :  { %v8832_v12 = vld [vmem:[#allocation52_spill] sm:$0xff] }
 0x27b   :  { %v2128_v11 = vmax.f32 %v2126_v43, %v2127_v21  ;;  %v1627_v39 = vpop.f32.mrf.mxu0  ;;  %v8834_v29 = vmax.f32 %v8832_v12, %v8833_v52  ;;  %v8835_v21 = vld [vmem:[#allocation17_spill] sm:$0xff] }
 0x27c   :  { %v2132_v18 = vsel %vm2121_vm2, %v1627_v39, -inf  ;;  %v2141_v39 = vsel %vm2121_vm2, %v8835_v21, -inf }
 0x27d   :  { %v2133_v22 = vmax.f32 %v8830_v28, %v2132_v18  ;;  %v1629_v38 = vpop.f32.mrf.mxu0  ;;  %v8836_v18 = vld [vmem:[#allocation54_spill] sm:$0xff] }
 0x27e   :  { %v8838_v28 = vmax.f32 %v8836_v18, %v8837_v8  ;;  %v8839_v38 = vld [vmem:[#allocation18_spill] sm:$0xff] }
 0x27f   :  { %v2135_v45 = vmax.f32 %v2133_v22, %v2134_v24  ;;  %v1632_v20 = vpop.f32.mrf.mxu0  ;;  %v2148_v24 = vsel %vm2121_vm2, %v8839_v38, -inf  ;;  %v2579_v38 = vld [vmem:[%s8621_s3] sm:$0xff] }
 0x280   :  { %v2139_v42 = vsel %vm2121_vm2, %v1632_v20, -inf }
 0x281   :  { %v2140_v30 = vmax.f32 %v8834_v29, %v2139_v42  ;;  %v1634_v43 = vpop.f32.mrf.mxu0 }
 0x283   :  { %v2142_v48 = vmax.f32 %v2140_v30, %v2141_v39  ;;  %v1637_v2 = vpop.f32.mrf.mxu0  ;;  %v2479_v30 = vadd.f32 %v8065_v54, %v2128_v11  ;;  %v8841_v39 = vld [vmem:[#allocation57_spill] sm:$0xff] }
 0x284   :  { %v2146_v6 = vsel %vm2121_vm2, %v1637_v2, -inf  ;;  %v8840_v2 = vld [vmem:[#allocation56_spill] sm:$0xff] }
 0x285   :  { %v2481_v22 = vadd.f32 %v8065_v54, %v2142_v48  ;;  %v2147_v52 = vmax.f32 %v8838_v28, %v2146_v6  ;;  %v1639_v29 = vpop.f32.mrf.mxu0  ;;  %v8842_v48 = vmax.f32 %v8840_v2, %v8841_v39  ;;  %v8843_v6 = vld [vmem:[#allocation19_spill] sm:$0xff]  ;;  %v2529_v11 = vmax.f32 %v2479_v30, 0.0 }
 0x286   :  { %v2155_v18 = vsel %vm2121_vm2, %v8843_v6, -inf  ;;  %v5148_v30 = vld [vmem:[%s8621_s3 + $0x28] sm:$0xff] }
 0x287   :  { %v2531_v20 = vmax.f32 %v2481_v22, 0.0  ;;  %v2149_v42 = vmax.f32 %v2147_v52, %v2148_v24  ;;  %v1642_v12 = vpop.f32.mrf.mxu0  ;;  %v2480_v22 = vadd.f32 %v8065_v54, %v2135_v45  ;;  %v8847_v45 = vld [vmem:[#allocation20_spill] sm:$0xff] }
 0x288   :  { %v2153_v43 = vsel %vm2121_vm2, %v1642_v12, -inf }
 0x289   :  { %v2482_v21 = vadd.f32 %v8065_v54, %v2149_v42  ;;  %v2154_v51 = vmax.f32 %v8842_v48, %v2153_v43  ;;  %v1644_v5 = vpop.f32.mrf.mxu0  ;;  %5382 = vmatprep.mubr.msk.f32.mxu1 %vm2121_vm2, %v2531_v20  ;;  %v8845_v42 = vld [vmem:[#allocation59_spill] sm:$0xff] }
 0x28a   :  { %v8844_v5 = vld [vmem:[#allocation58_spill] sm:$0xff] }
 0x28b   :  { %v2532_v8 = vmax.f32 %v2482_v21, 0.0  ;;  %v2156_v28 = vmax.f32 %v2154_v51, %v2155_v18  ;;  %v1647_v52 = vpop.f32.mrf.mxu0  ;;  %v8846_v20 = vmax.f32 %v8844_v5, %v8845_v42  ;;  %v2162_v51 = vsel %vm2121_vm2, %v8847_v45, -inf  ;;  %v5147_v18 = vld [vmem:[%s8621_s3 + $0x20] sm:$0xff] }
 0x28c   :  { %v2160_v29 = vsel %vm2121_vm2, %v1647_v52, -inf  ;;  %v2530_v21 = vmax.f32 %v2480_v22, 0.0  ;;  %v8851_v22 = vld [vmem:[#allocation21_spill] sm:$0xff] }
 0x28d   :  { %v2483_v24 = vadd.f32 %v8065_v54, %v2156_v28  ;;  %v2161_v12 = vmax.f32 %v8846_v20, %v2160_v29  ;;  %v1649_v43 = vpop.f32.mrf.mxu0  ;;  %5383 = vmatmul.mubr.msk.f32.vlgmr.msra.gmra.mxu1 %vm2121_vm2, %v2532_v8  ;;  %v8848_v8 = vld [vmem:[#allocation60_spill] sm:$0xff]  ;;  %v8849_v28 = vld [vmem:[#allocation61_spill] sm:$0xff] }
 0x28e   :  { %5386 = vmatpush3.msra.mxu1 %v7679_v3  ;;  %5389 = vmatprep.mubr.msk.f32.mxu1 %vm2121_vm2, %v2529_v11  ;;  %v8850_v52 = vmax.f32 %v8848_v8, %v8849_v28  ;;  %v5151_v43 = vld [vmem:[%s8621_s3 + $0x30] sm:$0xff] }
 0x28f   :  { %v2533_v2 = vmax.f32 %v2483_v24, 0.0  ;;  %v2163_v39 = vmax.f32 %v2161_v12, %v2162_v51  ;;  %v1652_v48 = vpop.f32.mrf.mxu0  ;;  %5387 = vmatprep.subr.mxu1 %v2579_v38  ;;  %v2169_v24 = vsel %vm2121_vm2, %v8851_v22, -inf  ;;  %v8852_v51 = vld [vmem:[#allocation62_spill] sm:$0xff]  ;;  %v8857_v22 = vld [vmem:[#allocation65_spill] sm:$0xff] }
 0x290   :  { %v2167_v6 = vsel %vm2121_vm2, %v1652_v48, -inf  ;;  %5388 = vmatpush3.msra.mxu1 %v2579_v38  ;;  %v5152_v38 = vld [vmem:[%s8621_s3 + $0x38] sm:$0xff]  ;;  %v8855_v48 = vld [vmem:[#allocation22_spill] sm:$0xff] }
 0x291   :  { %v2484_v3 = vadd.f32 %v8065_v54, %v2163_v39  ;;  %v2168_v11 = vmax.f32 %v8850_v52, %v2167_v6  ;;  %v1654_v29 = vpop.f32.mrf.mxu0  ;;  %5390 = vmatmul.mubr.msk.f32.vlgmr.msra.gmra.mxu1 %vm2121_vm2, %v2530_v21  ;;  %5392 = vmatprep.subr.mxu1 %v5148_v30  ;;  %v2176_v6 = vsel %vm2121_vm2, %v8855_v48, -inf }
 0x292   :  { %5393 = vmatpush3.msra.mxu1 %v5148_v30  ;;  %5396 = vmatprep.mubr.msk.f32.mxu1 %vm2121_vm2, %v2533_v2  ;;  %v8853_v30 = vld [vmem:[#allocation63_spill] sm:$0xff]  ;;  %v8856_v29 = vld [vmem:[#allocation64_spill] sm:$0xff] }
 0x293   :  { %v2534_v5 = vmax.f32 %v2484_v3, 0.0  ;;  %v2170_v42 = vmax.f32 %v2168_v11, %v2169_v24  ;;  %v1657_v20 = vpop.f32.mrf.mxu0  ;;  %5394 = vmatprep.subr.mxu1 %v5147_v18  ;;  %v8854_v21 = vmax.f32 %v8852_v51, %v8853_v30  ;;  %v8858_v24 = vmax.f32 %v8856_v29, %v8857_v22 }
 0x294   :  { %v2174_v12 = vsel %vm2121_vm2, %v1657_v20, -inf  ;;  %5395 = vmatpush3.msra.mxu1 %v5147_v18  ;;  %v5156_v18 = vld [vmem:[%s8621_s3 + $0x48] sm:$0xff] }
 0x295   :  { %v2485_v45 = vadd.f32 %v8065_v54, %v2170_v42  ;;  %v2175_v2 = vmax.f32 %v8854_v21, %v2174_v12  ;;  %v1659_v39 = vpop.f32.mrf.mxu0  ;;  %5397 = vmatmul.mubr.msk.f32.vlgmr.msra.gmra.mxu1 %vm2121_vm2, %v2534_v5  ;;  %5399 = vmatprep.subr.mxu1 %v5152_v38 }
 0x296   :  { %5400 = vmatpush3.msra.mxu1 %v5152_v38  ;;  %v8859_v38 = vld [vmem:[#allocation23_spill] sm:$0xff] }
 0x297   :  { %v2535_v3 = vmax.f32 %v2485_v45, 0.0  ;;  %v2177_v8 = vmax.f32 %v2175_v2, %v2176_v6  ;;  %v1662_v28 = vpop.f32.mrf.mxu0  ;;  %5401 = vmatprep.subr.mxu1 %v5151_v43  ;;  %v2183_v20 = vsel %vm2121_vm2, %v8859_v38, -inf  ;;  %v8860_v2 = vld [vmem:[#allocation66_spill] sm:$0xff]  ;;  %v8861_v39 = vld [vmem:[#allocation67_spill] sm:$0xff]  ;;  %v8865_v38 = vld [vmem:[#allocation69_spill] sm:$0xff] }
 0x298   :  { %v2181_v52 = vsel %vm2121_vm2, %v1662_v28, -inf  ;;  %5402 = vmatpush3.msra.mxu1 %v5151_v43  ;;  %v5155_v43 = vld [vmem:[%s8621_s3 + $0x40] sm:$0xff]  ;;  %v8862_v48 = vmax.f32 %v8860_v2, %v8861_v39 }
 0x299   :  { %v2486_v11 = vadd.f32 %v8065_v54, %v2177_v8  ;;  %v2182_v5 = vmax.f32 %v8858_v24, %v2181_v52  ;;  %v1664_v42 = vpop.f32.mrf.mxu0  ;;  %5403 = vmatprep.mubr.msk.f32.mxu1 %vm2121_vm2, %v2535_v3  ;;  %5406 = vmatprep.subr.mxu1 %v5156_v18  ;;  %v8863_v8 = vld [vmem:[#allocation25_spill] sm:$0xff] }
 0x29a   :  { %v2190_v28 = vsel %vm2121_vm2, %v8863_v8, -inf  ;;  %v5160_v52 = vld [vmem:[%s8621_s3 + $0x58] sm:$0xff]  ;;  %v8864_v42 = vld [vmem:[#allocation68_spill] sm:$0xff] }
 0x29b   :  { %v2536_v12 = vmax.f32 %v2486_v11, 0.0  ;;  %v2184_v45 = vmax.f32 %v2182_v5, %v2183_v20  ;;  %v1667_v51 = vpop.f32.mrf.mxu0  ;;  %v8866_v20 = vmax.f32 %v8864_v42, %v8865_v38 }
 0x29c   :  { %v2188_v30 = vsel %vm2121_vm2, %v1667_v51, -inf }
 0x29d   :  { %v2487_v21 = vadd.f32 %v8065_v54, %v2184_v45  ;;  %v2189_v6 = vmax.f32 %v8862_v48, %v2188_v30  ;;  %v1669_v3 = vpop.f32.mrf.mxu0  ;;  %5404 = vmatmul.mubr.msk.f32.vlgmr.msra.gmra.mxu1 %vm2121_vm2, %v2536_v12 }
 0x29e   :  { %5407 = vmatpush3.msra.mxu1 %v5156_v18  ;;  %v8867_v18 = vld [vmem:[#allocation27_spill] sm:$0xff] }
 0x29f   :  { %v2537_v11 = vmax.f32 %v2487_v21, 0.0  ;;  %v2191_v29 = vmax.f32 %v2189_v6, %v2190_v28  ;;  %v1672_v22 = vpop.f32.mrf.mxu0  ;;  %5408 = vmatprep.subr.mxu1 %v5155_v43  ;;  %v2197_v51 = vsel %vm2121_vm2, %v8867_v18, -inf  ;;  %v8868_v6 = vld [vmem:[#allocation70_spill] sm:$0xff]  ;;  %v8869_v3 = vld [vmem:[#allocation71_spill] sm:$0xff]  ;;  %v8873_v18 = vld [vmem:[#allocation73_spill] sm:$0xff] }
 0x2a0   :  { %v2195_v24 = vsel %vm2121_vm2, %v1672_v22, -inf  ;;  %5409 = vmatpush3.msra.mxu1 %v5155_v43  ;;  %v5159_v43 = vld [vmem:[%s8621_s3 + $0x50] sm:$0xff]  ;;  %v8870_v8 = vmax.f32 %v8868_v6, %v8869_v3 }
 0x2a1   :  { %v2488_v5 = vadd.f32 %v8065_v54, %v2191_v29  ;;  %v2196_v12 = vmax.f32 %v8866_v20, %v2195_v24  ;;  %v1674_v45 = vpop.f32.mrf.mxu0  ;;  %5410 = vmatprep.mubr.msk.f32.mxu1 %vm2121_vm2, %v2537_v11  ;;  %5413 = vmatprep.subr.mxu1 %v5160_v52  ;;  %v8871_v29 = vld [vmem:[#allocation29_spill] sm:$0xff]  ;;  %v5164_v24 = vld [vmem:[%s8621_s3 + $0x68] sm:$0xff] }
 0x2a2   :  { %v2204_v22 = vsel %vm2121_vm2, %v8871_v29, -inf  ;;  %v8872_v45 = vld [vmem:[#allocation72_spill] sm:$0xff] }
 0x2a3   :  { %v2538_v30 = vmax.f32 %v2488_v5, 0.0  ;;  %v2198_v21 = vmax.f32 %v2196_v12, %v2197_v51  ;;  %v1677_v2 = vpop.f32.mrf.mxu0  ;;  %v8874_v51 = vmax.f32 %v8872_v45, %v8873_v18 }
 0x2a4   :  { %v2202_v39 = vsel %vm2121_vm2, %v1677_v2, -inf }
 0x2a5   :  { %v2489_v48 = vadd.f32 %v8065_v54, %v2198_v21  ;;  %v2203_v28 = vmax.f32 %v8870_v8, %v2202_v39  ;;  %v1679_v11 = vpop.f32.mrf.mxu0  ;;  %5411 = vmatmul.mubr.msk.f32.vlgmr.msra.gmra.mxu1 %vm2121_vm2, %v2538_v30 }
 0x2a6   :  { %5414 = vmatpush3.msra.mxu1 %v5160_v52  ;;  %v8875_v52 = vld [vmem:[#allocation31_spill] sm:$0xff] }
 0x2a7   :  { %v2539_v5 = vmax.f32 %v2489_v48, 0.0  ;;  %v2205_v42 = vmax.f32 %v2203_v28, %v2204_v22  ;;  %v1682_v38 = vpop.f32.mrf.mxu0  ;;  %5415 = vmatprep.subr.mxu1 %v5159_v43  ;;  %v2211_v2 = vsel %vm2121_vm2, %v8875_v52, -inf  ;;  %v8876_v28 = vld [vmem:[#allocation74_spill] sm:$0xff]  ;;  %v8877_v11 = vld [vmem:[#allocation75_spill] sm:$0xff]  ;;  %v8881_v52 = vld [vmem:[#allocation77_spill] sm:$0xff] }
 0x2a8   :  { %v2209_v20 = vsel %vm2121_vm2, %v1682_v38, -inf  ;;  %5416 = vmatpush3.msra.mxu1 %v5159_v43  ;;  %v5163_v43 = vld [vmem:[%s8621_s3 + $0x60] sm:$0xff]  ;;  %v8878_v29 = vmax.f32 %v8876_v28, %v8877_v11 }
 0x2a9   :  { %v2490_v12 = vadd.f32 %v8065_v54, %v2205_v42  ;;  %v2210_v30 = vmax.f32 %v8874_v51, %v2209_v20  ;;  %v1684_v21 = vpop.f32.mrf.mxu0  ;;  %5417 = vmatprep.mubr.msk.f32.mxu1 %vm2121_vm2, %v2539_v5  ;;  %5420 = vmatprep.subr.mxu1 %v5164_v24  ;;  %v8879_v42 = vld [vmem:[#allocation33_spill] sm:$0xff] }
 0x2aa   :  { %v2218_v38 = vsel %vm2121_vm2, %v8879_v42, -inf  ;;  %v5168_v20 = vld [vmem:[%s8621_s3 + $0x78] sm:$0xff]  ;;  %v8880_v21 = vld [vmem:[#allocation76_spill] sm:$0xff] }
 0x2ab   :  { %v2540_v39 = vmax.f32 %v2490_v12, 0.0  ;;  %v2212_v48 = vmax.f32 %v2210_v30, %v2211_v2  ;;  %v1687_v6 = vpop.f32.mrf.mxu0  ;;  %v8882_v2 = vmax.f32 %v8880_v21, %v8881_v52 }
 0x2ac   :  { %v2216_v3 = vsel %vm2121_vm2, %v1687_v6, -inf }
 0x2ad   :  { %v2491_v8 = vadd.f32 %v8065_v54, %v2212_v48  ;;  %v2217_v22 = vmax.f32 %v8878_v29, %v2216_v3  ;;  %v1689_v5 = vpop.f32.mrf.mxu0  ;;  %5418 = vmatmul.mubr.msk.f32.vlgmr.msra.gmra.mxu1 %vm2121_vm2, %v2540_v39 }
 0x2ae   :  { %5421 = vmatpush3.msra.mxu1 %v5164_v24  ;;  %v8883_v24 = vld [vmem:[#allocation35_spill] sm:$0xff] }
 0x2af   :  { %v2541_v12 = vmax.f32 %v2491_v8, 0.0  ;;  %v2219_v45 = vmax.f32 %v2217_v22, %v2218_v38  ;;  %v1692_v18 = vpop.f32.mrf.mxu0  ;;  %5422 = vmatprep.subr.mxu1 %v5163_v43  ;;  %v2225_v6 = vsel %vm2121_vm2, %v8883_v24, -inf  ;;  %v8884_v22 = vld [vmem:[#allocation78_spill] sm:$0xff]  ;;  %v8885_v5 = vld [vmem:[#allocation79_spill] sm:$0xff]  ;;  %v8889_v24 = vld [vmem:[#allocation81_spill] sm:$0xff] }
 0x2b0   :  { %v2223_v51 = vsel %vm2121_vm2, %v1692_v18, -inf  ;;  %5423 = vmatpush3.msra.mxu1 %v5163_v43  ;;  %v5167_v43 = vld [vmem:[%s8621_s3 + $0x70] sm:$0xff]  ;;  %v8886_v42 = vmax.f32 %v8884_v22, %v8885_v5 }
 0x2b1   :  { %v2492_v30 = vadd.f32 %v8065_v54, %v2219_v45  ;;  %v2224_v39 = vmax.f32 %v8882_v2, %v2223_v51  ;;  %v1694_v48 = vpop.f32.mrf.mxu0  ;;  %5424 = vmatprep.mubr.msk.f32.mxu1 %vm2121_vm2, %v2541_v12  ;;  %5427 = vmatprep.subr.mxu1 %v5168_v20  ;;  %v8887_v45 = vld [vmem:[#allocation37_spill] sm:$0xff]  ;;  %v5172_v51 = vld [vmem:[%s8621_s3 + $0x88] sm:$0xff] }
 0x2b2   :  { %v2232_v18 = vsel %vm2121_vm2, %v8887_v45, -inf  ;;  %v8888_v48 = vld [vmem:[#allocation80_spill] sm:$0xff] }
 0x2b3   :  { %v2542_v3 = vmax.f32 %v2492_v30, 0.0  ;;  %v2226_v8 = vmax.f32 %v2224_v39, %v2225_v6  ;;  %v1697_v28 = vpop.f32.mrf.mxu0  ;;  %v8890_v6 = vmax.f32 %v8888_v48, %v8889_v24 }
 0x2b4   :  { %v2230_v11 = vsel %vm2121_vm2, %v1697_v28, -inf }
 0x2b5   :  { %v2493_v29 = vadd.f32 %v8065_v54, %v2226_v8  ;;  %v2231_v38 = vmax.f32 %v8886_v42, %v2230_v11  ;;  %v1699_v12 = vpop.f32.mrf.mxu0  ;;  %5425 = vmatmul.mubr.msk.f32.vlgmr.msra.gmra.mxu1 %vm2121_vm2, %v2542_v3 }
 0x2b6   :  { %5428 = vmatpush3.msra.mxu1 %v5168_v20  ;;  %v8891_v20 = vld [vmem:[#allocation39_spill] sm:$0xff] }
 0x2b7   :  { %v2543_v30 = vmax.f32 %v2493_v29, 0.0  ;;  %v2233_v21 = vmax.f32 %v2231_v38, %v2232_v18  ;;  %v1702_v52 = vpop.f32.mrf.mxu0  ;;  %5429 = vmatprep.subr.mxu1 %v5167_v43  ;;  %v2239_v28 = vsel %vm2121_vm2, %v8891_v20, -inf  ;;  %v8892_v38 = vld [vmem:[#allocation82_spill] sm:$0xff]  ;;  %v8893_v12 = vld [vmem:[#allocation83_spill] sm:$0xff]  ;;  %v8897_v20 = vld [vmem:[#allocation85_spill] sm:$0xff] }
 0x2b8   :  { %v2237_v2 = vsel %vm2121_vm2, %v1702_v52, -inf  ;;  %5430 = vmatpush3.msra.mxu1 %v5167_v43  ;;  %v5171_v43 = vld [vmem:[%s8621_s3 + $0x80] sm:$0xff]  ;;  %v8894_v45 = vmax.f32 %v8892_v38, %v8893_v12 }
 0x2b9   :  { %v2494_v39 = vadd.f32 %v8065_v54, %v2233_v21  ;;  %v2238_v3 = vmax.f32 %v8890_v6, %v2237_v2  ;;  %v1704_v8 = vpop.f32.mrf.mxu0  ;;  %5431 = vmatprep.mubr.msk.f32.mxu1 %vm2121_vm2, %v2543_v30  ;;  %5434 = vmatprep.subr.mxu1 %v5172_v51  ;;  %v8895_v21 = vld [vmem:[#allocation41_spill] sm:$0xff] }
 0x2ba   :  { %v2246_v52 = vsel %vm2121_vm2, %v8895_v21, -inf  ;;  %v5176_v2 = vld [vmem:[%s8621_s3 + $0x98] sm:$0xff]  ;;  %v8896_v8 = vld [vmem:[#allocation84_spill] sm:$0xff] }
 0x2bb   :  { %v2544_v11 = vmax.f32 %v2494_v39, 0.0  ;;  %v2240_v29 = vmax.f32 %v2238_v3, %v2239_v28  ;;  %v1707_v22 = vpop.f32.mrf.mxu0  ;;  %v8898_v28 = vmax.f32 %v8896_v8, %v8897_v20 }
 0x2bc   :  { %v2244_v5 = vsel %vm2121_vm2, %v1707_v22, -inf }
 0x2bd   :  { %v2495_v42 = vadd.f32 %v8065_v54, %v2240_v29  ;;  %v2245_v18 = vmax.f32 %v8894_v45, %v2244_v5  ;;  %v1709_v30 = vpop.f32.mrf.mxu0  ;;  %5432 = vmatmul.mubr.msk.f32.vlgmr.msra.gmra.mxu1 %vm2121_vm2, %v2544_v11 }
 0x2be   :  { %5435 = vmatpush3.msra.mxu1 %v5172_v51  ;;  %v8899_v51 = vld [vmem:[#allocation43_spill] sm:$0xff] }
 0x2bf   :  { %v2545_v39 = vmax.f32 %v2495_v42, 0.0  ;;  %v2247_v48 = vmax.f32 %v2245_v18, %v2246_v52  ;;  %v1712_v24 = vpop.f32.mrf.mxu0  ;;  %5436 = vmatprep.subr.mxu1 %v5171_v43  ;;  %v2253_v22 = vsel %vm2121_vm2, %v8899_v51, -inf  ;;  %v8900_v18 = vld [vmem:[#allocation86_spill] sm:$0xff]  ;;  %v8901_v30 = vld [vmem:[#allocation87_spill] sm:$0xff]  ;;  %v8905_v51 = vld [vmem:[#allocation89_spill] sm:$0xff] }
 0x2c0   :  { %v2251_v6 = vsel %vm2121_vm2, %v1712_v24, -inf  ;;  %5437 = vmatpush3.msra.mxu1 %v5171_v43  ;;  %v5175_v43 = vld [vmem:[%s8621_s3 + $0x90] sm:$0xff]  ;;  %v8902_v21 = vmax.f32 %v8900_v18, %v8901_v30  ;;  %v8908_v18 = vmax.f32 %v7656_v56, %v7654_v33  ;;  %v5179_v30 = vld [vmem:[%s8621_s3 + $0xa0] sm:$0xff]  ;;  %v5184_v33 = vld [vmem:[%s8621_s3 + $0xb8] sm:$0xff] }
 0x2c1   :  { %v2496_v3 = vadd.f32 %v8065_v54, %v2247_v48  ;;  %v2252_v11 = vmax.f32 %v8898_v28, %v2251_v6  ;;  %v1714_v29 = vpop.f32.mrf.mxu0  ;;  %5438 = vmatprep.mubr.msk.f32.mxu1 %vm2121_vm2, %v2545_v39  ;;  %5441 = vmatprep.subr.mxu1 %v5176_v2  ;;  %v8903_v48 = vld [vmem:[#allocation45_spill] sm:$0xff]  ;;  %v5180_v6 = vld [vmem:[%s8621_s3 + $0xa8] sm:$0xff] }
 0x2c2   :  { %v2260_v24 = vsel %vm2121_vm2, %v8903_v48, -inf  ;;  %v8904_v29 = vld [vmem:[#allocation88_spill] sm:$0xff] }
 0x2c3   :  { %v2546_v5 = vmax.f32 %v2496_v3, 0.0  ;;  %v2254_v42 = vmax.f32 %v2252_v11, %v2253_v22  ;;  %v1717_v38 = vpop.f32.mrf.mxu0  ;;  %v8906_v22 = vmax.f32 %v8904_v29, %v8905_v51  ;;  %v8914_v29 = vmax.f32 %v7737_v55, %v7735_v41 }
 0x2c4   :  { %v2258_v12 = vsel %vm2121_vm2, %v1717_v38, -inf  ;;  %v8915_v41 = vmax.f32 %v7752_v63, %v7750_v49  ;;  %v5196_v49 = vld [vmem:[%s8621_s3 + $0xe8] sm:$0xff] }
 0x2c5   :  { %v2497_v45 = vadd.f32 %v8065_v54, %v2254_v42  ;;  %v2259_v52 = vmax.f32 %v8902_v21, %v2258_v12  ;;  %v1719_v39 = vpop.f32.mrf.mxu0  ;;  %5439 = vmatmul.mubr.msk.f32.vlgmr.msra.gmra.mxu1 %vm2121_vm2, %v2546_v5  ;;  %v8909_v21 = vld [vmem:[#allocation92_spill] sm:$0xff]  ;;  %v2505_v51 = vadd.f32 %v8065_v54, %v8914_v29 }
 0x2c6   :  { %5442 = vmatpush3.msra.mxu1 %v5176_v2  ;;  %v8907_v2 = vld [vmem:[#allocation47_spill] sm:$0xff]  ;;  %v2506_v55 = vadd.f32 %v8065_v54, %v8915_v41  ;;  %v5215_v29 = vld [vmem:[%s8621_s3 + $0x130] sm:$0xff] }
 0x2c7   :  { %v2547_v3 = vmax.f32 %v2497_v45, 0.0  ;;  %v2261_v8 = vmax.f32 %v2259_v52, %v2260_v24  ;;  %v1722_v20 = vpop.f32.mrf.mxu0  ;;  %5443 = vmatprep.subr.mxu1 %v5175_v43  ;;  %v2267_v38 = vsel %vm2121_vm2, %v8907_v2, -inf  ;;  %v8910_v52 = vmax.f32 %v7671_v13, %v8909_v21 }
 0x2c8   :  { %v2265_v28 = vsel %vm2121_vm2, %v1722_v20, -inf  ;;  %5444 = vmatpush3.msra.mxu1 %v5175_v43  ;;  %v2500_v43 = vadd.f32 %v8065_v54, %v8908_v18  ;;  %v8912_v20 = vmax.f32 %v7707_v16, %v7705_v25  ;;  %v8913_v25 = vmax.f32 %v7722_v47, %v7720_v32  ;;  %v5192_v32 = vld [vmem:[%s8621_s3 + $0xd8] sm:$0xff] }
 0x2c9   :  { %v2498_v11 = vadd.f32 %v8065_v54, %v2261_v8  ;;  %v2266_v5 = vmax.f32 %v8906_v22, %v2265_v28  ;;  %v1724_v42 = vpop.f32.mrf.mxu0  ;;  %5445 = vmatprep.mubr.msk.f32.mxu1 %vm2121_vm2, %v2547_v3  ;;  %5448 = vmatprep.subr.mxu1 %v5180_v6  ;;  %v2501_v39 = vadd.f32 %v8065_v54, %v8910_v52  ;;  %v5187_v22 = vld [vmem:[%s8621_s3 + $0xc0] sm:$0xff]  ;;  %v2556_v63 = vmax.f32 %v2506_v55, 0.0 }
 0x2ca   :  { %v2550_v24 = vmax.f32 %v2500_v43, 0.0  ;;  %v8911_v3 = vmax.f32 %v7692_v19, %v7690_v59  ;;  %v2503_v28 = vadd.f32 %v8065_v54, %v8912_v20  ;;  %v5188_v59 = vld [vmem:[%s8621_s3 + $0xc8] sm:$0xff]  ;;  %v2504_v16 = vadd.f32 %v8065_v54, %v8913_v25  ;;  %v5195_v43 = vld [vmem:[%s8621_s3 + $0xe0] sm:$0xff]  ;;  %v5207_v20 = vld [vmem:[%s8621_s3 + $0x110] sm:$0xff] }
 0x2cb   :  { %v2548_v12 = vmax.f32 %v2498_v11, 0.0  ;;  %v2268_v45 = vmax.f32 %v2266_v5, %v2267_v38  ;;  %v2551_v13 = vmax.f32 %v2501_v39, 0.0  ;;  %v2555_v5 = vmax.f32 %v2505_v51, 0.0  ;;  %v5191_v38 = vld [vmem:[%s8621_s3 + $0xd0] sm:$0xff] }
 0x2cc   :  { %v2502_v8 = vadd.f32 %v8065_v54, %v8911_v3  ;;  %v2553_v11 = vmax.f32 %v2503_v28, 0.0  ;;  %v2554_v47 = vmax.f32 %v2504_v16, 0.0  ;;  %v8916_v42 = vmax.f32 %v7767_v7, %v7765_v57  ;;  %v5199_v39 = vld [vmem:[%s8621_s3 + $0xf0] sm:$0xff] }
 0x2cd   :  { %v2499_v48 = vadd.f32 %v8065_v54, %v2268_v45  ;;  %5446 = vmatmul.mubr.msk.f32.vlgmr.msra.gmra.mxu1 %vm2121_vm2, %v2548_v12  ;;  %v8917_v57 = vmax.f32 %v7780_v15, %v7778_v1  ;;  %v8918_v45 = vmax.f32 %v7793_v10, %v7791_v9  ;;  %v5200_v1 = vld [vmem:[%s8621_s3 + $0xf8] sm:$0xff]  ;;  %v8919_v9 = vmax.f32 %v7806_v62, %v7804_v17  ;;  %v5204_v17 = vld [vmem:[%s8621_s3 + $0x108] sm:$0xff] }
 0x2ce   :  { %5449 = vmatpush3.msra.mxu1 %v5180_v6  ;;  %v5183_v6 = vld [vmem:[%s8621_s3 + $0xb0] sm:$0xff]  ;;  %v2552_v19 = vmax.f32 %v2502_v8, 0.0  ;;  %v2507_v2 = vadd.f32 %v8065_v54, %v8916_v42  ;;  %v8920_v21 = vmax.f32 %v7819_v0, %v7817_v26  ;;  %v8921_v26 = vmax.f32 %v7832_v60, %v7830_v36  ;;  %v5208_v36 = vld [vmem:[%s8621_s3 + $0x118] sm:$0xff] }
 0x2cf   :  { %v2549_v56 = vmax.f32 %v2499_v48, 0.0  ;;  %5450 = vmatprep.subr.mxu1 %v5179_v30  ;;  %v2508_v7 = vadd.f32 %v8065_v54, %v8917_v57  ;;  %v2509_v18 = vadd.f32 %v8065_v54, %v8918_v45  ;;  %v2510_v10 = vadd.f32 %v8065_v54, %v8919_v9  ;;  %v8940_v9 = vld [vmem:[#allocation6_spill] sm:$0xff] }
 0x2d0   :  { %5451 = vmatpush3.msra.mxu1 %v5179_v30  ;;  %v2557_v12 = vmax.f32 %v2507_v2, 0.0  ;;  %v2511_v52 = vadd.f32 %v8065_v54, %v8920_v21  ;;  %v2512_v0 = vadd.f32 %v8065_v54, %v8921_v26  ;;  %v8924_v8 = vmax.f32 %v7871_v23, %v7869_v4  ;;  %v8934_v2 = vld [vmem:[#allocation4_spill] sm:$0xff] }
 0x2d1   :  { %5452 = vmatprep.mubr.msk.f32.mxu1 %vm2121_vm2, %v2549_v56  ;;  %5455 = vmatprep.subr.mxu1 %v5184_v33  ;;  %v2558_v15 = vmax.f32 %v2508_v7, 0.0  ;;  %v2559_v30 = vmax.f32 %v2509_v18, 0.0  ;;  %v2560_v62 = vmax.f32 %v2510_v10, 0.0  ;;  %v8925_v4 = vmax.f32 %v7884_v34, %v7882_v14  ;;  %v5216_v14 = vld [vmem:[%s8621_s3 + $0x138] sm:$0xff]  ;;  %v8941_v10 = vld [vmem:[#allocation30_spill] sm:$0xff] }
 0x2d2   :  { %5453 = vmatmul.mubr.msk.f32.vlgmr.msra.gmra.mxu1 %vm2121_vm2, %v2550_v24  ;;  %v2561_v48 = vmax.f32 %v2511_v52, 0.0  ;;  %v5203_v24 = vld [vmem:[%s8621_s3 + $0x100] sm:$0xff]  ;;  %v2562_v60 = vmax.f32 %v2512_v0, 0.0  ;;  %v8928_v16 = vmax.f32 %v7923_v31, %v7921_v53  ;;  %v8937_v7 = vld [vmem:[#allocation5_spill] sm:$0xff] }
 0x2d3   :  { %5456 = vmatpush3.msra.mxu1 %v5184_v33  ;;  %5459 = vmatprep.mubr.msk.f32.mxu1 %vm2121_vm2, %v2551_v13  ;;  %v8922_v33 = vmax.f32 %v7845_v61, %v7843_v46  ;;  %v8923_v46 = vmax.f32 %v7858_v35, %v7856_v58  ;;  %v2515_v13 = vadd.f32 %v8065_v54, %v8924_v8  ;;  %v5212_v58 = vld [vmem:[%s8621_s3 + $0x128] sm:$0xff]  ;;  %v8929_v53 = vld [vmem:[#allocation2_spill] sm:$0xff] }
 0x2d4   :  { %5457 = vmatprep.subr.mxu1 %v5183_v6  ;;  %v2516_v23 = vadd.f32 %v8065_v54, %v8925_v4  ;;  %v8930_v31 = vmax.f32 %v7936_v37, %v8929_v53  ;;  %v5224_v37 = vld [vmem:[%s8621_s3 + $0x158] sm:$0xff]  ;;  %v5227_v0 = vld [vmem:[%s8621_s3 + $0x160] sm:$0xff]  ;;  %v4740_v53 = vld [vmem:[%s8623_s5 + $0x28] sm:$0xff] }
 0x2d5   :  { %5458 = vmatpush3.msra.mxu1 %v5183_v6  ;;  %v2513_v56 = vadd.f32 %v8065_v54, %v8922_v33  ;;  %v2514_v61 = vadd.f32 %v8065_v54, %v8923_v46  ;;  %v2565_v28 = vmax.f32 %v2515_v13, 0.0  ;;  %v8926_v6 = vmax.f32 %v7897_v44, %v7895_v27  ;;  %v8952_v4 = vld [vmem:[#allocation9_spill] sm:$0xff] }
 0x2d6   :  { %5462 = vmatprep.subr.mxu1 %v5188_v59  ;;  %5460 = vmatmul.mubr.msk.f32.vlgmr.msra.gmra.mxu1 %vm2121_vm2, %v2552_v19  ;;  %v5211_v19 = vld [vmem:[%s8621_s3 + $0x120] sm:$0xff]  ;;  %v2566_v34 = vmax.f32 %v2516_v23, 0.0  ;;  %v8927_v27 = vmax.f32 %v7910_v50, %v7908_v40  ;;  %v5220_v40 = vld [vmem:[%s8621_s3 + $0x148] sm:$0xff]  ;;  %v2520_v51 = vadd.f32 %v8065_v54, %v8930_v31  ;;  %v8953_v23 = vld [vmem:[#allocation36_spill] sm:$0xff] }
 0x2d7   :  { %5463 = vmatpush3.msra.mxu1 %v5188_v59  ;;  %5466 = vmatprep.mubr.msk.f32.mxu1 %vm2121_vm2, %v2553_v11  ;;  %v2563_v3 = vmax.f32 %v2513_v56, 0.0  ;;  %v2564_v35 = vmax.f32 %v2514_v61, 0.0  ;;  %v2517_v59 = vadd.f32 %v8065_v54, %v8926_v6  ;;  %v2519_v11 = vadd.f32 %v8065_v54, %v8928_v16  ;;  %v8946_v56 = vld [vmem:[#allocation91_spill] sm:$0xff]  ;;  %v8949_v61 = vld [vmem:[#allocation8_spill] sm:$0xff]  ;;  %v4739_v31 = vld [vmem:[%s8623_s5 + $0x20] sm:$0xff] }
 0x2d8   :  { %5464 = vmatprep.subr.mxu1 %v5187_v22  ;;  %v2518_v44 = vadd.f32 %v8065_v54, %v8927_v27  ;;  %v2570_v42 = vmax.f32 %v2520_v51, 0.0  ;;  %v4748_v27 = vld [vmem:[%s8623_s5 + $0x68] sm:$0xff]  ;;  %v4745_v16 = vld [vmem:[%s8623_s5 + $0x50] sm:$0xff]  ;;  %v4738_v51 = vld [vmem:[%s8623_s5 + $0x18] sm:$0xff] }
 0x2d9   :  { %5465 = vmatpush3.msra.mxu1 %v5187_v22  ;;  %v2567_v25 = vmax.f32 %v2517_v59, 0.0  ;;  %v2569_v22 = vmax.f32 %v2519_v11, 0.0  ;;  %v4744_v11 = vld [vmem:[%s8623_s5 + $0x48] sm:$0xff] }
 0x2da   :  { %5469 = vmatprep.subr.mxu1 %v5192_v32  ;;  %5467 = vmatmul.mubr.msk.f32.vlgmr.msra.gmra.mxu1 %vm2121_vm2, %v2554_v47  ;;  %v2568_v50 = vmax.f32 %v2518_v44, 0.0  ;;  %v8932_v47 = vld [vmem:[#allocation24_spill] sm:$0xff]  ;;  %v4747_v44 = vld [vmem:[%s8623_s5 + $0x60] sm:$0xff] }
 0x2db   :  { %5470 = vmatpush3.msra.mxu1 %v5192_v32  ;;  %5473 = vmatprep.mubr.msk.f32.mxu1 %vm2121_vm2, %v2555_v5  ;;  %v8931_v32 = vld [vmem:[#allocation3_spill] sm:$0xff]  ;;  %v5219_v5 = vld [vmem:[%s8621_s3 + $0x140] sm:$0xff] }
 0x2dc   :  { %5471 = vmatprep.subr.mxu1 %v5191_v38  ;;  %v8933_v41 = vmax.f32 %v8931_v32, %v8932_v47  ;;  %v4736_v32 = vld [vmem:[%s8623_s5 + $0x8] sm:$0xff]  ;;  %v4735_v47 = vld [vmem:[%s8623_s5] sm:$0xff] }
 0x2dd   :  { %5472 = vmatpush3.msra.mxu1 %v5191_v38  ;;  %v8935_v38 = vld [vmem:[#allocation26_spill] sm:$0xff] }
 0x2de   :  { %5476 = vmatprep.subr.mxu1 %v5196_v49  ;;  %5474 = vmatmul.mubr.msk.f32.vlgmr.msra.gmra.mxu1 %vm2121_vm2, %v2556_v63  ;;  %v2521_v55 = vadd.f32 %v8065_v54, %v8933_v41 }
 0x2df   :  { %5477 = vmatpush3.msra.mxu1 %v5196_v49  ;;  %5480 = vmatprep.mubr.msk.f32.mxu1 %vm2121_vm2, %v2557_v12  ;;  %v8936_v49 = vmax.f32 %v8934_v2, %v8935_v38  ;;  %v8938_v12 = vld [vmem:[#allocation28_spill] sm:$0xff] }
 0x2e0   :  { %5478 = vmatprep.subr.mxu1 %v5195_v43  ;;  %v2571_v57 = vmax.f32 %v2521_v55, 0.0  ;;  %v8939_v45 = vmax.f32 %v8937_v7, %v8938_v12  ;;  %v8555_v55 = vld [vmem:[%s8624_s7 + $0x78] sm:$0xff] }
 0x2e1   :  { %5479 = vmatpush3.msra.mxu1 %v5195_v43  ;;  %v2522_v63 = vadd.f32 %v8065_v54, %v8936_v49  ;;  %v5223_v43 = vld [vmem:[%s8621_s3 + $0x150] sm:$0xff] }
 0x2e2   :  { %5483 = vmatprep.subr.mxu1 %v5200_v1  ;;  %5481 = vmatmul.mubr.msk.f32.vlgmr.msra.gmra.mxu1 %vm2121_vm2, %v2558_v15  ;;  %v2523_v18 = vadd.f32 %v8065_v54, %v8939_v45 }
 0x2e3   :  { %5484 = vmatpush3.msra.mxu1 %v5200_v1  ;;  %5487 = vmatprep.mubr.msk.f32.mxu1 %vm2121_vm2, %v2559_v30  ;;  %v5228_v1 = vld [vmem:[%s8621_s3 + $0x168] sm:$0xff]  ;;  %v2572_v15 = vmax.f32 %v2522_v63, 0.0  ;;  %v8942_v30 = vmax.f32 %v8940_v9, %v8941_v10 }
 0x2e4   :  { %5485 = vmatprep.subr.mxu1 %v5199_v39  ;;  %v2573_v52 = vmax.f32 %v2523_v18, 0.0 }
 0x2e5   :  { %5486 = vmatpush3.msra.mxu1 %v5199_v39  ;;  %v2524_v21 = vadd.f32 %v8065_v54, %v8942_v30  ;;  %v8943_v39 = vld [vmem:[#allocation32_spill] sm:$0xff] }
 0x2e6   :  { %5490 = vmatprep.subr.mxu1 %v5204_v17  ;;  %5488 = vmatmul.mubr.msk.f32.vlgmr.msra.gmra.mxu1 %vm2121_vm2, %v2560_v62 }
 0x2e7   :  { %5491 = vmatpush3.msra.mxu1 %v5204_v17  ;;  %5494 = vmatprep.mubr.msk.f32.mxu1 %vm2121_vm2, %v2561_v48  ;;  %v8944_v17 = vld [vmem:[#allocation90_spill] sm:$0xff]  ;;  %v5232_v48 = vld [vmem:[%s8621_s3 + $0x178] sm:$0xff]  ;;  %v2574_v33 = vmax.f32 %v2524_v21, 0.0 }
 0x2e8   :  { %5492 = vmatprep.subr.mxu1 %v5203_v24  ;;  %v8945_v62 = vmax.f32 %v8943_v39, %v8944_v17 }
 0x2e9   :  { %5493 = vmatpush3.msra.mxu1 %v5203_v24  ;;  %v8947_v24 = vld [vmem:[#allocation7_spill] sm:$0xff] }
 0x2ea   :  { %5497 = vmatprep.subr.mxu1 %v5208_v36  ;;  %5495 = vmatmul.mubr.msk.f32.vlgmr.msra.gmra.mxu1 %vm2121_vm2, %v2562_v60  ;;  %v2525_v26 = vadd.f32 %v8065_v54, %v8945_v62 }
 0x2eb   :  { %5498 = vmatpush3.msra.mxu1 %v5208_v36  ;;  %5501 = vmatprep.mubr.msk.f32.mxu1 %vm2121_vm2, %v2563_v3  ;;  %v8948_v36 = vmax.f32 %v8946_v56, %v8947_v24  ;;  %v8950_v3 = vld [vmem:[#allocation34_spill] sm:$0xff] }
 0x2ec   :  { %5499 = vmatprep.subr.mxu1 %v5207_v20  ;;  %v2575_v46 = vmax.f32 %v2525_v26, 0.0  ;;  %v8951_v8 = vmax.f32 %v8949_v61, %v8950_v3 }
 0x2ed   :  { %5500 = vmatpush3.msra.mxu1 %v5207_v20  ;;  %v2526_v60 = vadd.f32 %v8065_v54, %v8948_v36  ;;  %v5231_v20 = vld [vmem:[%s8621_s3 + $0x170] sm:$0xff] }
 0x2ee   :  { %5504 = vmatprep.subr.mxu1 %v5212_v58  ;;  %5502 = vmatmul.mubr.msk.f32.vlgmr.msra.gmra.mxu1 %vm2121_vm2, %v2564_v35  ;;  %v2527_v13 = vadd.f32 %v8065_v54, %v8951_v8 }
 0x2ef   :  { %5505 = vmatpush3.msra.mxu1 %v5212_v58  ;;  %5508 = vmatprep.mubr.msk.f32.mxu1 %vm2121_vm2, %v2565_v28  ;;  %v5236_v58 = vld [vmem:[%s8621_s3 + $0x188] sm:$0xff]  ;;  %v2576_v35 = vmax.f32 %v2526_v60, 0.0  ;;  %v8954_v28 = vmax.f32 %v8952_v4, %v8953_v23 }
 0x2f0   :  { %5506 = vmatprep.subr.mxu1 %v5211_v19  ;;  %v2577_v59 = vmax.f32 %v2527_v13, 0.0 }
 0x2f1   :  { %5507 = vmatpush3.msra.mxu1 %v5211_v19  ;;  %v2528_v6 = vadd.f32 %v8065_v54, %v8954_v28  ;;  %v5235_v19 = vld [vmem:[%s8621_s3 + $0x180] sm:$0xff]  ;;  %v4750_v54 = vld [vmem:[%s8623_s5 + $0x78] sm:$0xff] }
 0x2f2   :  { %5511 = vmatprep.subr.mxu1 %v5216_v14  ;;  %5509 = vmatmul.mubr.msk.f32.vlgmr.msra.gmra.mxu1 %vm2121_vm2, %v2566_v34  ;;  %v4749_v34 = vld [vmem:[%s8623_s5 + $0x70] sm:$0xff] }
 0x2f3   :  { %5512 = vmatpush3.msra.mxu1 %v5216_v14  ;;  %5515 = vmatprep.mubr.msk.f32.mxu1 %vm2121_vm2, %v2567_v25  ;;  %v2578_v14 = vmax.f32 %v2528_v6, 0.0  ;;  %v4746_v25 = vld [vmem:[%s8623_s5 + $0x58] sm:$0xff] }
 0x2f4   :  { %5513 = vmatprep.subr.mxu1 %v5215_v29 }
 0x2f5   :  { %5514 = vmatpush3.msra.mxu1 %v5215_v29  ;;  %v4743_v29 = vld [vmem:[%s8623_s5 + $0x40] sm:$0xff] }
 0x2f6   :  { %5518 = vmatprep.subr.mxu1 %v5220_v40  ;;  %5516 = vmatmul.mubr.msk.f32.vlgmr.msra.gmra.mxu1 %vm2121_vm2, %v2568_v50  ;;  %v4741_v50 = vld [vmem:[%s8623_s5 + $0x30] sm:$0xff] }
 0x2f7   :  { %5519 = vmatpush3.msra.mxu1 %v5220_v40  ;;  %5522 = vmatprep.mubr.msk.f32.mxu1 %vm2121_vm2, %v2569_v22  ;;  %v4742_v40 = vld [vmem:[%s8623_s5 + $0x38] sm:$0xff]  ;;  %v4737_v22 = vld [vmem:[%s8623_s5 + $0x10] sm:$0xff] }
 0x2f8   :  { %5520 = vmatprep.subr.mxu1 %v5219_v5 }
 0x2f9   :  { %5521 = vmatpush3.msra.mxu1 %v5219_v5 }
 0x2fa   :  { %5525 = vmatprep.subr.mxu1 %v5224_v37  ;;  %5523 = vmatmul.mubr.msk.f32.vlgmr.msra.gmra.mxu1 %vm2121_vm2, %v2570_v42 }
 0x2fb   :  { %5526 = vmatpush3.msra.mxu1 %v5224_v37  ;;  %5529 = vmatprep.mubr.msk.f32.mxu1 %vm2121_vm2, %v2571_v57 }
 0x2fc   :  { %5527 = vmatprep.subr.mxu1 %v5223_v43 }
 0x2fd   :  { %5528 = vmatpush3.msra.mxu1 %v5223_v43 }
 0x2fe   :  { %5532 = vmatprep.subr.mxu1 %v5228_v1  ;;  %5530 = vmatmul.mubr.msk.f32.vlgmr.msra.gmra.mxu1 %vm2121_vm2, %v2572_v15 }
 0x2ff   :  { %5533 = vmatpush3.msra.mxu1 %v5228_v1  ;;  %5536 = vmatprep.mubr.msk.f32.mxu1 %vm2121_vm2, %v2573_v52 }
 0x300   :  { %5534 = vmatprep.subr.mxu1 %v5227_v0 }
 0x301   :  { %5535 = vmatpush3.msra.mxu1 %v5227_v0 }
 0x302   :  { %5539 = vmatprep.subr.mxu1 %v5232_v48  ;;  %5537 = vmatmul.mubr.msk.f32.vlgmr.msra.gmra.mxu1 %vm2121_vm2, %v2574_v33 }
 0x303   :  { %5540 = vmatpush3.msra.mxu1 %v5232_v48  ;;  %5543 = vmatprep.mubr.msk.f32.mxu1 %vm2121_vm2, %v2575_v46 }
 0x304   :  { %5541 = vmatprep.subr.mxu1 %v5231_v20 }
 0x305   :  { %5542 = vmatpush3.msra.mxu1 %v5231_v20 }
 0x306   :  { %5546 = vmatprep.subr.mxu1 %v5236_v58  ;;  %5544 = vmatmul.mubr.msk.f32.vlgmr.msra.gmra.mxu1 %vm2121_vm2, %v2576_v35 }
 0x307   :  { %5547 = vmatpush3.msra.mxu1 %v5236_v58  ;;  %5550 = vmatprep.mubr.msk.f32.mxu1 %vm2121_vm2, %v2577_v59 }
 0x308   :  { %5548 = vmatprep.subr.mxu1 %v5235_v19 }
 0x309   :  { %5549 = vmatpush3.msra.mxu1 %v5235_v19 }
 0x30a   :  { %5551 = vmatmul.mubr.msk.f32.vlgmr.msra.gmra.mxu1 %vm2121_vm2, %v2578_v14  ;;  %5553 = vmatprep.subr.mxu1 %v4750_v54 }
 0x30b   :  { %5554 = vmatpush3.msra.mxu1 %v4750_v54 }
 0x30c   :  { %5555 = vmatprep.subr.mxu1 %v4749_v34 }
 0x30d   :  { %5556 = vmatpush3.msra.mxu1 %v4749_v34 }
 0x30e   :  { %5557 = vmatprep.subr.mxu1 %v4748_v27 }
 0x30f   :  { %5558 = vmatpush3.msra.mxu1 %v4748_v27 }
 0x310   :  { %5559 = vmatprep.subr.mxu1 %v4747_v44 }
 0x311   :  { %5560 = vmatpush3.msra.mxu1 %v4747_v44 }
 0x312   :  { %5561 = vmatprep.subr.mxu1 %v4746_v25 }
 0x313   :  { %5562 = vmatpush3.msra.mxu1 %v4746_v25 }
 0x314   :  { %5563 = vmatprep.subr.mxu1 %v4745_v16 }
 0x315   :  { %5564 = vmatpush3.msra.mxu1 %v4745_v16 }
 0x316   :  { %5565 = vmatprep.subr.mxu1 %v4744_v11 }
 0x317   :  { %5566 = vmatpush3.msra.mxu1 %v4744_v11 }
 0x318   :  { %5567 = vmatprep.subr.mxu1 %v4743_v29 }
 0x319   :  { %5568 = vmatpush3.msra.mxu1 %v4743_v29 }
 0x31a   :  { %5569 = vmatprep.subr.mxu1 %v4742_v40 }
 0x31b   :  { %5570 = vmatpush3.msra.mxu1 %v4742_v40 }
 0x31c   :  { %5571 = vmatprep.subr.mxu1 %v4741_v50 }
 0x31d   :  { %5572 = vmatpush3.msra.mxu1 %v4741_v50 }
 0x31e   :  { %5573 = vmatprep.subr.mxu1 %v4740_v53 }
 0x31f   :  { %5574 = vmatpush3.msra.mxu1 %v4740_v53 }
 0x320   :  { %5575 = vmatprep.subr.mxu1 %v4739_v31 }
 0x321   :  { %5576 = vmatpush3.msra.mxu1 %v4739_v31 }
 0x322   :  { %5577 = vmatprep.subr.mxu1 %v4738_v51 }
 0x323   :  { %5578 = vmatpush3.msra.mxu1 %v4738_v51 }
 0x324   :  { %5579 = vmatprep.subr.mxu1 %v4737_v22 }
 0x325   :  { %5580 = vmatpush3.msra.mxu1 %v4737_v22 }
 0x326   :  { %5581 = vmatprep.subr.mxu1 %v4736_v32 }
 0x327   :  { %5582 = vmatpush3.msra.mxu1 %v4736_v32 }
 0x328   :  { %5583 = vmatprep.subr.mxu1 %v4735_v47 }
 0x329   :  { %5584 = vmatpush3.msra.mxu1 %v4735_v47 }
 0x32a   :  { %5588 = vmatprep.subr.mxu1 %v8555_v55 }
 0x34d   :  { %v5384_v41 = vpop.f32.mrf.mxu1 }
 0x34f   :  { %v2656_v5 = vpop.f32.mrf.mxu1 }
 0x351   :  { %v5391_v37 = vpop.f32.mrf.mxu1 }
 0x352   :  { %v2743_v48 = vadd.f32 %v5391_v37, %v5384_v41 }
 0x353   :  { %v2737_v42 = vpop.f32.mrf.mxu1 }
 0x354   :  { %v2738_v56 = vadd.f32 %v2737_v42, %v2656_v5 }
 0x355   :  { %v5398_v2 = vpop.f32.mrf.mxu1 }
 0x356   :  { %v2831_v24 = vadd.f32 %v5398_v2, %v2743_v48 }
 0x357   :  { %v2821_v38 = vpop.f32.mrf.mxu1 }
 0x358   :  { %v2830_v60 = vadd.f32 %v2821_v38, %v2738_v56 }
 0x35d   :  { %v5405_v49 = vpop.f32.mrf.mxu1 }
 0x35e   :  { %v2917_v46 = vadd.f32 %v5405_v49, %v2831_v24 }
 0x35f   :  { %v2907_v63 = vpop.f32.mrf.mxu1 }
 0x360   :  { %v2916_v3 = vadd.f32 %v2907_v63, %v2830_v60 }
 0x365   :  { %v5412_v57 = vpop.f32.mrf.mxu1 }
 0x366   :  { %v3003_v8 = vadd.f32 %v5412_v57, %v2917_v46 }
 0x367   :  { %v2993_v7 = vpop.f32.mrf.mxu1 }
 0x368   :  { %v3002_v20 = vadd.f32 %v2993_v7, %v2916_v3 }
 0x36d   :  { %v5419_v12 = vpop.f32.mrf.mxu1 }
 0x36e   :  { %v3089_v58 = vadd.f32 %v5419_v12, %v3003_v8 }
 0x36f   :  { %v3079_v45 = vpop.f32.mrf.mxu1 }
 0x370   :  { %v3088_v4 = vadd.f32 %v3079_v45, %v3002_v20 }
 0x375   :  { %v5426_v18 = vpop.f32.mrf.mxu1 }
 0x376   :  { %v3175_v23 = vadd.f32 %v5426_v18, %v3089_v58 }
 0x377   :  { %v3165_v43 = vpop.f32.mrf.mxu1 }
 0x378   :  { %v3174_v6 = vadd.f32 %v3165_v43, %v3088_v4  ;;  %v4849_v4 = vld [vmem:[%s8624_s7 + $0x70] sm:$0xff] }
 0x37d   :  { %v5433_v1 = vpop.f32.mrf.mxu1 }
 0x37e   :  { %v3261_v59 = vadd.f32 %v5433_v1, %v3175_v23  ;;  %v4848_v23 = vld [vmem:[%s8624_s7 + $0x68] sm:$0xff] }
 0x37f   :  { %v3251_v15 = vpop.f32.mrf.mxu1 }
 0x380   :  { %v3260_v14 = vadd.f32 %v3251_v15, %v3174_v6  ;;  %v4846_v6 = vld [vmem:[%s8624_s7 + $0x58] sm:$0xff] }
 0x385   :  { %v5440_v9 = vpop.f32.mrf.mxu1 }
 0x386   :  { %v3347_v54 = vadd.f32 %v5440_v9, %v3261_v59  ;;  %v4844_v59 = vld [vmem:[%s8624_s7 + $0x48] sm:$0xff] }
 0x387   :  { %v3337_v10 = vpop.f32.mrf.mxu1 }
 0x388   :  { %v3346_v27 = vadd.f32 %v3337_v10, %v3260_v14  ;;  %v4842_v14 = vld [vmem:[%s8624_s7 + $0x38] sm:$0xff] }
 0x38d   :  { %v5447_v30 = vpop.f32.mrf.mxu1 }
 0x38e   :  { %v3433_v44 = vadd.f32 %v5447_v30, %v3347_v54  ;;  %v4841_v54 = vld [vmem:[%s8624_s7 + $0x30] sm:$0xff] }
 0x38f   :  { %v3423_v21 = vpop.f32.mrf.mxu1 }
 0x390   :  { %v3432_v16 = vadd.f32 %v3423_v21, %v3346_v27  ;;  %v4839_v27 = vld [vmem:[%s8624_s7 + $0x20] sm:$0xff] }
 0x392   :  { %v5454_v52 = vpop.f32.mrf.mxu1 }
 0x393   :  { %v3519_v11 = vadd.f32 %v5454_v52, %v3433_v44  ;;  %v4838_v44 = vld [vmem:[%s8624_s7 + $0x18] sm:$0xff] }
 0x394   :  { %v3509_v39 = vpop.f32.mrf.mxu1 }
 0x395   :  { %v3518_v40 = vadd.f32 %v3509_v39, %v3432_v16  ;;  %v4836_v16 = vld [vmem:[%s8624_s7 + $0x8] sm:$0xff] }
 0x396   :  { %v5461_v17 = vpop.f32.mrf.mxu1 }
 0x397   :  { %v3605_v50 = vadd.f32 %v5461_v17, %v3519_v11  ;;  %v4835_v11 = vld [vmem:[%s8624_s7] sm:$0xff] }
 0x398   :  { %v3595_v62 = vpop.f32.mrf.mxu1 }
 0x399   :  { %v3604_v31 = vadd.f32 %v3595_v62, %v3518_v40 }
 0x39a   :  { %v5468_v26 = vpop.f32.mrf.mxu1 }
 0x39b   :  { %v3691_v51 = vadd.f32 %v5468_v26, %v3605_v50 }
 0x39c   :  { %v3681_v0 = vpop.f32.mrf.mxu1 }
 0x39d   :  { %v3690_v32 = vadd.f32 %v3681_v0, %v3604_v31 }
 0x39e   :  { %v5475_v33 = vpop.f32.mrf.mxu1 }
 0x39f   :  { %v3777_v47 = vadd.f32 %v5475_v33, %v3691_v51 }
 0x3a0   :  { %v3767_v36 = vpop.f32.mrf.mxu1 }
 0x3a1   :  { %v3776_v5 = vadd.f32 %v3767_v36, %v3690_v32  ;;  %v5241_v32 = vld [vmem:[%s8627_s8] ss:$0 sm:$0xff] }
 0x3a2   :  { %v5482_v61 = vpop.f32.mrf.mxu1 }
 0x3a3   :  { %v3863_v37 = vadd.f32 %v5482_v61, %v3777_v47  ;;  %v5239_v61 = vld [vmem:[%s8625_s4] ss:$0 sm:$0xff] }
 0x3a4   :  { %v3853_v13 = vpop.f32.mrf.mxu1 }
 0x3a5   :  { %v3862_v2 = vadd.f32 %v3853_v13, %v3776_v5 }
 0x3a6   :  { %v5489_v35 = vpop.f32.mrf.mxu1 }
 0x3a7   :  { %v3949_v38 = vadd.f32 %v5489_v35, %v3863_v37 }
 0x3a8   :  { %v3939_v28 = vpop.f32.mrf.mxu1 }
 0x3a9   :  { %v3948_v63 = vadd.f32 %v3939_v28, %v3862_v2  ;;  %v4847_v28 = vld [vmem:[%s8624_s7 + $0x60] sm:$0xff] }
 0x3aa   :  { %v5496_v19 = vpop.f32.mrf.mxu1 }
 0x3ab   :  { %v4035_v57 = vadd.f32 %v5496_v19, %v3949_v38  ;;  %v4843_v19 = vld [vmem:[%s8624_s7 + $0x40] sm:$0xff] }
 0x3ac   :  { %v4025_v34 = vpop.f32.mrf.mxu1 }
 0x3ad   :  { %v4034_v12 = vadd.f32 %v4025_v34, %v3948_v63  ;;  %v4840_v34 = vld [vmem:[%s8624_s7 + $0x28] sm:$0xff] }
 0x3ae   :  { %v5503_v25 = vpop.f32.mrf.mxu1 }
 0x3af   :  { %v4121_v45 = vadd.f32 %v5503_v25, %v4035_v57  ;;  %v4837_v25 = vld [vmem:[%s8624_s7 + $0x10] sm:$0xff] }
 0x3b0   :  { %v4111_v29 = vpop.f32.mrf.mxu1 }
 0x3b1   :  { %v4120_v43 = vadd.f32 %v4111_v29, %v4034_v12  ;;  %v5240_v29 = vld [vmem:[%s8626_s6] ss:$0 sm:$0xff] }
 0x3b2   :  { %v5510_v53 = vpop.f32.mrf.mxu1 }
 0x3b3   :  { %v4207_v1 = vadd.f32 %v5510_v53, %v4121_v45 }
 0x3b4   :  { %v4197_v22 = vpop.f32.mrf.mxu1 }
 0x3b5   :  { %v4206_v9 = vadd.f32 %v4197_v22, %v4120_v43 }
 0x3b6   :  { %v5517_v41 = vpop.f32.mrf.mxu1 }
 0x3b7   :  { %v4293_v10 = vadd.f32 %v5517_v41, %v4207_v1 }
 0x3b8   :  { %v4283_v42 = vpop.f32.mrf.mxu1 }
 0x3b9   :  { %v4292_v21 = vadd.f32 %v4283_v42, %v4206_v9 }
 0x3ba   :  { %v5524_v49 = vpop.f32.mrf.mxu1 }
 0x3bb   :  { %v4379_v52 = vadd.f32 %v5524_v49, %v4293_v10 }
 0x3bc   :  { %v4369_v7 = vpop.f32.mrf.mxu1 }
 0x3bd   :  { %v4378_v17 = vadd.f32 %v4369_v7, %v4292_v21 }
 0x3be   :  { %v5531_v18 = vpop.f32.mrf.mxu1 }
 0x3bf   :  { %v4465_v62 = vadd.f32 %v5531_v18, %v4379_v52 }
 0x3c0   :  { %v4455_v15 = vpop.f32.mrf.mxu1 }
 0x3c1   :  { %v4464_v0 = vadd.f32 %v4455_v15, %v4378_v17 }
 0x3c2   :  { %v5538_v30 = vpop.f32.mrf.mxu1 }
 0x3c3   :  { %v4551_v48 = vadd.f32 %v5538_v30, %v4465_v62 }
 0x3c4   :  { %v4541_v39 = vpop.f32.mrf.mxu1 }
 0x3c5   :  { %v4550_v56 = vadd.f32 %v4541_v39, %v4464_v0 }
 0x3c6   :  { %v5545_v26 = vpop.f32.mrf.mxu1 }
 0x3c7   :  { %v4637_v24 = vadd.f32 %v5545_v26, %v4551_v48 }
 0x3c8   :  { %v4627_v33 = vpop.f32.mrf.mxu1 }
 0x3c9   :  { %v4636_v60 = vadd.f32 %v4627_v33, %v4550_v56 }
 0x3ca   :  { %v5552_v36 = vpop.f32.mrf.mxu1 }
 0x3cb   :  { %v4723_v46 = vadd.f32 %v5552_v36, %v4637_v24 }
 0x3cc   :  { %v4713_v3 = vpop.f32.mrf.mxu1 }
 0x3cd   :  { %v4722_v8 = vadd.f32 %v4713_v3, %v4636_v60  ;;  %v4732_v13 = vadd.f32 %v5239_v61, %v4723_v46 }
 0x3cf   :  { %v4731_v20 = vadd.f32 %v5239_v61, %v4722_v8  ;;  %v4734_v35 = vmax.f32 %v4732_v13, 0.0 }
 0x3d1   :  { %v4733_v58 = vmax.f32 %v4731_v20, 0.0 }
 0x3d3   :  { %5585 = vmatprep.mubr.f32.mxu1 %v4733_v58 }
 0x3d4   :  { %5586 = vmatmul.mubr.f32.vlgmr.msra.gmra.mxu1 %v4734_v35 }
 0x3d5   :  { %5589 = vmatpush3.msra.mxu1 %v8555_v55  ;;  %v4845_v55 = vld [vmem:[%s8624_s7 + $0x50] sm:$0xff] }
 0x3d6   :  { %5590 = vmatprep.subr.mxu1 %v4849_v4 }
 0x3d7   :  { %5591 = vmatpush3.msra.mxu1 %v4849_v4 }
 0x3d8   :  { %5592 = vmatprep.subr.mxu1 %v4848_v23 }
 0x3d9   :  { %5593 = vmatpush3.msra.mxu1 %v4848_v23 }
 0x3da   :  { %5594 = vmatprep.subr.mxu1 %v4847_v28 }
 0x3db   :  { %5595 = vmatpush3.msra.mxu1 %v4847_v28 }
 0x3dc   :  { %5596 = vmatprep.subr.mxu1 %v4846_v6 }
 0x3dd   :  { %5597 = vmatpush3.msra.mxu1 %v4846_v6 }
 0x3de   :  { %5598 = vmatprep.subr.mxu1 %v4845_v55 }
 0x3df   :  { %5599 = vmatpush3.msra.mxu1 %v4845_v55 }
 0x3e0   :  { %5600 = vmatprep.subr.mxu1 %v4844_v59 }
 0x3e1   :  { %5601 = vmatpush3.msra.mxu1 %v4844_v59 }
 0x3e2   :  { %5602 = vmatprep.subr.mxu1 %v4843_v19 }
 0x3e3   :  { %5603 = vmatpush3.msra.mxu1 %v4843_v19 }
 0x3e4   :  { %5604 = vmatprep.subr.mxu1 %v4842_v14 }
 0x3e5   :  { %5605 = vmatpush3.msra.mxu1 %v4842_v14 }
 0x3e6   :  { %5606 = vmatprep.subr.mxu1 %v4841_v54 }
 0x3e7   :  { %5607 = vmatpush3.msra.mxu1 %v4841_v54 }
 0x3e8   :  { %5608 = vmatprep.subr.mxu1 %v4840_v34 }
 0x3e9   :  { %5609 = vmatpush3.msra.mxu1 %v4840_v34 }
 0x3ea   :  { %5610 = vmatprep.subr.mxu1 %v4839_v27 }
 0x3eb   :  { %5611 = vmatpush3.msra.mxu1 %v4839_v27 }
 0x3ec   :  { %5612 = vmatprep.subr.mxu1 %v4838_v44 }
 0x3ed   :  { %5613 = vmatpush3.msra.mxu1 %v4838_v44 }
 0x3ee   :  { %5614 = vmatprep.subr.mxu1 %v4837_v25 }
 0x3ef   :  { %5615 = vmatpush3.msra.mxu1 %v4837_v25 }
 0x3f0   :  { %5616 = vmatprep.subr.mxu1 %v4836_v16 }
 0x3f1   :  { %5617 = vmatpush3.msra.mxu1 %v4836_v16 }
 0x3f2   :  { %5618 = vmatprep.subr.mxu1 %v4835_v11 }
 0x3f3   :  { %5619 = vmatpush3.msra.mxu1 %v4835_v11 }
 0x494   :  { %v5587_v40 = vpop.f32.mrf.mxu1 }
 0x495   :  { %v4830_v50 = vadd.f32 %v5587_v40, %v5240_v29 }
 0x496   :  { %v4824_v53 = vpop.f32.mrf.mxu1 }
 0x497   :  { %v4825_v31 = vadd.f32 %v5240_v29, %v4824_v53  ;;  %v4834_v22 = vmax.f32 %v4830_v50, 0.0 }
 0x499   :  { %v4833_v51 = vmax.f32 %v4825_v31, 0.0 }
 0x49b   :  { %5620 = vmatprep.mubr.f32.mxu1 %v4833_v51 }
 0x49c   :  { %5621 = vmatmul.mubr.f32.vlgmr.msra.gmra.mxu1 %v4834_v22 }
 0x55c   :  { %v5622_v47 = vpop.f32.mrf.mxu1 }
 0x55d   :  { %v4930_v41 = vadd.f32 %v5622_v47, %v5241_v32 }
 0x55e   :  { %v4924_v5 = vpop.f32.mrf.mxu1 }
 0x55f   :  { %4934 = vst [vmem:[%s8628_s9 + $0x8] sm:$0xff] %v4930_v41  ;;  %v4925_v37 = vadd.f32 %v5241_v32, %v4924_v5 }
 0x561   :  { %4933 = vst [vmem:[%s8628_s9] sm:$0xff] %v4925_v37 }

</bundles_post_ra>
